<compile_context>
chip_gen: v5e
topology: v5e:2x2
jax: 0.10.0
libtpu: 0.0.40
codegen_flags: <defaults>
</compile_context>

<pallas_src>
import jax
import jax.numpy as jnp
from jax import lax
from jax.experimental import pallas as pl
from jax.experimental.pallas import tpu as pltpu

NORM_EPS = 1e-5
LANE = 128


def _make_divisible(v, divisor, min_value=None):
    if min_value is None:
        min_value = divisor
    new_v = max(min_value, int(v + divisor / 2) // divisor * divisor)
    if new_v < 0.9 * v:
        new_v += divisor
    return new_v


def _rup(v, m):
    return ((v + m - 1) // m) * m


# ------------------------------ parameters ----------------------------------

def bn_params(key, c):
    k1, k2, k3, k4 = jax.random.split(key, 4)
    gamma = 1.0 + 0.1 * jax.random.normal(k1, (c,), jnp.float32)
    beta = 0.1 * jax.random.normal(k2, (c,), jnp.float32)
    mean = 0.1 * jax.random.normal(k3, (c,), jnp.float32)
    var = jnp.abs(jax.random.normal(k4, (c,), jnp.float32)) + 0.5
    return gamma, beta, mean, var


def bn_fold(bn):
    g, b, m, v = bn
    s = g / jnp.sqrt(v + NORM_EPS)
    sh = b - m * s
    return s.reshape(1, -1), sh.reshape(1, -1)


def init_params(key, cin, cout, head_dim, hidden):
    ks = jax.random.split(key, 10)

    def u(k, shape, scale=0.2):
        return jax.random.uniform(k, shape, jnp.float32, -scale, scale)

    p = {}
    # PatchEmbed: conv1x1 (no bias) + BN  (in_channels != out_channels path)
    p['pe_w'] = u(ks[0], (cout, cin, 1, 1))
    p['pe_bn'] = bn_params(ks[1], cout)
    # MHCA: grouped 3x3 conv (no bias) + BN + ReLU + 1x1 conv (no bias)
    p['g_w'] = u(ks[2], (cout, head_dim, 3, 3))
    p['mhca_bn'] = bn_params(ks[3], cout)
    p['proj_w'] = u(ks[4], (cout, cout, 1, 1))
    # self.norm BN
    p['norm_bn'] = bn_params(ks[5], cout)
    # Mlp: conv1x1 + bias, ReLU, conv1x1 + bias
    p['mlp_w1'] = u(ks[6], (hidden, cout, 1, 1))
    p['mlp_b1'] = u(ks[7], (hidden,))
    p['mlp_w2'] = u(ks[8], (cout, hidden, 1, 1))
    p['mlp_b2'] = u(ks[9], (cout,))
    return p


# ------------------------------ NCB forward ----------------------------------

def ncb_forward(x_nchw, p, head_dim):
    B, Cin, H, W = x_nchw.shape
    Cout = p['pe_w'].shape[0]
    hd = head_dim
    G = Cout // hd
    HW = H * W
    hidden = p['mlp_w1'].shape[0]
    f32, bf16 = jnp.float32, jnp.bfloat16

    Cpad = _rup(Cout, LANE)       # lane-dense output / inner channel dim
    Cinp = _rup(Cin, LANE)        # lane-dense input channel dim
    Hpad = _rup(hidden, LANE)     # lane-dense MLP hidden dim
    Vpad = max(Cpad, Hpad)

    # ---- activations: NCHW -> (B, HW, Cin) rows, zero-padded to 128 lanes, bf16.
    # TODO(synk): in a full network keep activations NHWC (lane-dense) end-to-end so
    # this transpose + pad disappears between blocks.
    x_rows = jnp.transpose(x_nchw, (0, 2, 3, 1)).reshape(B, HW, Cin)
    x_rows = jnp.pad(x_rows, ((0, 0), (0, 0), (0, Cinp - Cin))).astype(bf16)

    # ---- fold BN scales into weights (f32), pad lane-dense, then cast to bf16 ----
    s1, b1 = bn_fold(p['pe_bn'])
    pe_w = jnp.transpose(p['pe_w'][:, :, 0, 0]) * s1                       # (Cin, Cout)
    pe_w = jnp.pad(pe_w, ((0, Cinp - Cin), (0, Cpad - Cout))).astype(bf16)

    s2, b2 = bn_fold(p['mhca_bn'])
    # Dense block-diagonal grouped-conv weight, one (Cout, Cout) slab per 3x3 tap.
    # TODO(synk): at production widths switch to per-group batched dots when
    # G >= MXU_N/hd (block-diagonal form wastes G-x MXU FLOPs).
    wg = jnp.zeros((9, Cout, Cout), f32)
    for g in range(G):
        blk = p['g_w'][g * hd:(g + 1) * hd]                        # (hd_out, hd_in, 3, 3)
        blk9 = jnp.transpose(blk, (2, 3, 1, 0)).reshape(9, hd, hd)  # (tap, ci, co)
        wg = wg.at[:, g * hd:(g + 1) * hd, g * hd:(g + 1) * hd].set(blk9)
    wg = wg * s2.reshape(1, 1, Cout)                               # fold BN scale (f32)
    wg = jnp.pad(wg, ((0, 0), (0, Cpad - Cout), (0, Cpad - Cout)))
    wg = wg.reshape(9 * Cpad, Cpad).astype(bf16)

    wp = jnp.transpose(p['proj_w'][:, :, 0, 0])                    # (Cout, Cout)
    wp = jnp.pad(wp, ((0, Cpad - Cout), (0, Cpad - Cout))).astype(bf16)

    s3, b3 = bn_fold(p['norm_bn'])
    w1_raw = jnp.transpose(p['mlp_w1'][:, :, 0, 0])                # (Cout, hidden)
    w1 = s3.reshape(Cout, 1) * w1_raw                              # fold norm scale
    mb1 = p['mlp_b1'].reshape(1, hidden) + b3 @ w1_raw             # fold norm shift (f32)
    w1 = jnp.pad(w1, ((0, Cpad - Cout), (0, Hpad - hidden))).astype(bf16)
    w2 = jnp.transpose(p['mlp_w2'][:, :, 0, 0])                    # (hidden, Cout)
    w2 = jnp.pad(w2, ((0, Hpad - hidden), (0, Cpad - Cout))).astype(bf16)
    mb2 = p['mlp_b2'].reshape(1, -1)

    # Pack the remaining per-channel shift/bias vectors into ONE (4, Vpad) array.
    vecs = jnp.zeros((4, Vpad), f32)
    vecs = vecs.at[0, :Cout].set(b1[0])        # patch-embed BN shift
    vecs = vecs.at[1, :Cout].set(b2[0])        # mhca BN shift
    vecs = vecs.at[2, :hidden].set(mb1[0])     # mlp bias 1 (+ folded norm shift)
    vecs = vecs.at[3, :Cout].set(mb2[0])       # mlp bias 2

    PAD = _rup(W + 1, 8)        # zero rows above/below the flattened image (>= W+1)

    # --------------------------- fused kernel body ---------------------------
    def ncb_kernel(x_ref, pe_w_ref, wg_ref, wp_ref, w1_ref, w2_ref, vecs_ref, o_ref):
        v = vecs_ref[...]
        b1v = v[0:1, 0:Cpad]
        b2v = v[1:2, 0:Cpad]
        mb1v = v[2:3, 0:Hpad]
        mb2v = v[3:4, 0:Cpad]

        # ---- PatchEmbed 1x1 conv (BN scale folded into weights) + shift --------
        y1 = jnp.dot(x_ref[...], pe_w_ref[...],
                     preferred_element_type=jnp.float32) + b1v        # (HW, Cpad) f32

        # ---- MHCA grouped 3x3 conv: 9 shifted taps from a single bf16 copy of
        # y1, accumulated through 9 MXU matmuls (no (HW, 9C) VMEM intermediate).
        y1_bf = y1.astype(jnp.bfloat16)
        zpad = jnp.zeros((PAD, Cpad), jnp.bfloat16)
        p_flat = jnp.concatenate([zpad, y1_bf, zpad], axis=0)         # (HW+2*PAD, Cpad)
        col = lax.broadcasted_iota(jnp.int32, (HW, 1), 0) % W
        mask_l = col >= 1            # valid when taking the w-1 neighbour
        mask_r = col <= W - 2        # valid when taking the w+1 neighbour

        acc = None
        tap = 0
        for dy in (-1, 0, 1):
            for dx in (-1, 0, 1):
                start = dy * W + dx + PAD
                t = p_flat[start:start + HW, :]
                if dx == -1:
                    t = jnp.where(mask_l, t, 0.0)
                elif dx == 1:
                    t = jnp.where(mask_r, t, 0.0)
                w_tap = wg_ref[tap * Cpad:(tap + 1) * Cpad, :]
                c = jnp.dot(t, w_tap, preferred_element_type=jnp.float32)
                acc = c if acc is None else acc + c
                tap += 1

        z = jnp.maximum(acc + b2v, 0.0)                               # BN shift + ReLU
        z = jnp.dot(z.astype(jnp.bfloat16), wp_ref[...],
                    preferred_element_type=jnp.float32)               # 1x1 projection
        y2 = y1 + z                                                   # residual

        # ---- self.norm (folded into w1/mb1) + Mlp (1x1 -> ReLU -> 1x1) + residual
        h = jnp.dot(y2.astype(jnp.bfloat16), w1_ref[...],
                    preferred_element_type=jnp.float32) + mb1v
        h = jnp.maximum(h, 0.0)
        m = jnp.dot(h.astype(jnp.bfloat16), w2_ref[...],
                    preferred_element_type=jnp.float32) + mb2v
        # TODO(synk): emit bf16 here if the next block consumes bf16 (halves the
        # dominant HBM writeback stream).
        o_ref[...] = y2 + m

    # ------------------------------ pallas_call ------------------------------
    # TODO(synk): at production NextViT shapes (HW=3136, C>=96) add an HW row-tile
    # grid axis with 1-row halo recompute of y1 so the per-step footprint fits
    # v7x's 64 MiB VMEM / v5e's 16 MiB scoped default, and make that axis the
    # "parallel" one when B == 1.
    flops = 2 * B * HW * (Cinp * Cpad + 9 * Cpad * Cpad + Cpad * Cpad
                          + Cpad * Hpad + Hpad * Cpad)
    bytes_accessed = int(x_rows.size * 2 + B * HW * Cpad * 4
                         + (pe_w.size + wg.size + wp.size + w1.size + w2.size) * 2
                         + vecs.size * 4)

    const = lambda b: (0, 0)   # constant-block index map (weights / packed vectors)
    y = pl.pallas_call(
        ncb_kernel,
        out_shape=jax.ShapeDtypeStruct((B, HW, Cpad), f32),
        grid=(B,),
        in_specs=[
            pl.BlockSpec((None, HW, Cinp), lambda b: (b, 0, 0)),      # x rows
            pl.BlockSpec((Cinp, Cpad), const),                        # pe_w (BN folded)
            pl.BlockSpec((9 * Cpad, Cpad), const),                    # grouped conv (folded)
            pl.BlockSpec((Cpad, Cpad), const),                        # projection
            pl.BlockSpec((Cpad, Hpad), const),                        # mlp w1 (folded)
            pl.BlockSpec((Hpad, Cpad), const),                        # mlp w2
            pl.BlockSpec((4, Vpad), const),                           # packed shift/bias
        ],
        out_specs=pl.BlockSpec((None, HW, Cpad), lambda b: (b, 0, 0)),
        compiler_params=pltpu.CompilerParams(
            dimension_semantics=("parallel",),        # batch shards across v7x's 2 TCs
            vmem_limit_bytes=32 * 1024 * 1024),
        cost_estimate=pl.CostEstimate(flops=flops, transcendentals=0,
                                      bytes_accessed=bytes_accessed),
    )(x_rows, pe_w, wg, wp, w1, w2, vecs)

    y = y[:, :, :Cout].reshape(B, H, W, Cout)
    return jnp.transpose(y, (0, 3, 1, 2))


# ------------------------------ pure-JAX reference ---------------------------
# Mirrors the kernel's precision choices (bf16 matmul operands, f32 accumulate,
# f32 elementwise) so the comparison measures kernel correctness only.

def ncb_reference(x_nchw, p, head_dim):
    B, Cin, H, W = x_nchw.shape
    Cout = p['pe_w'].shape[0]
    G = Cout // head_dim
    bf16 = jnp.bfloat16
    x = jnp.transpose(x_nchw, (0, 2, 3, 1))  # NHWC, f32

    def conv1x1(x, w, b=None):
        y = jnp.einsum('bhwc,cd->bhwd', x.astype(bf16),
                       jnp.transpose(w[:, :, 0, 0]).astype(bf16),
                       preferred_element_type=jnp.float32)
        if b is not None:
            y = y + b
        return y

    def bn(x, bnp):
        g, be, m, v = bnp
        return (x - m) / jnp.sqrt(v + NORM_EPS) * g + be

    y1 = bn(conv1x1(x, p['pe_w']), p['pe_bn'])
    w_hwio = jnp.transpose(p['g_w'], (2, 3, 1, 0)).astype(bf16)     # (3,3,hd,Cout)
    z = lax.conv_general_dilated(y1.astype(bf16), w_hwio, (1, 1), 'SAME',
                                 dimension_numbers=('NHWC', 'HWIO', 'NHWC'),
                                 feature_group_count=G,
                                 preferred_element_type=jnp.float32)
    z = jax.nn.relu(bn(z, p['mhca_bn']))
    z = conv1x1(z, p['proj_w'])
    y2 = y1 + z
    out = bn(y2, p['norm_bn'])
    h = jax.nn.relu(conv1x1(out, p['mlp_w1'], p['mlp_b1']))
    y3 = y2 + conv1x1(h, p['mlp_w2'], p['mlp_b2'])
    return jnp.transpose(y3, (0, 3, 1, 2))


# ----------------------------------- main ------------------------------------

if __name__ == "__main__":
    B, Cin, Cout, H, W = 2, 16, 32, 16, 16
    head_dim, mlp_ratio = 8, 3
    hidden = _make_divisible(Cout * mlp_ratio, 32)

    key = jax.random.PRNGKey(0)
    kx, kp = jax.random.split(key)
    x = jax.random.normal(kx, (B, Cin, H, W), jnp.float32)
    params = init_params(kp, Cin, Cout, head_dim, hidden)

    y = ncb_forward(x, params, head_dim)
    y = jax.block_until_ready(y)

    y_ref = ncb_reference(x, params, head_dim)
    assert y.shape == (B, Cout, H, W)
    err = float(jnp.max(jnp.abs(y - y_ref)))
    assert err < 5e-2, f"max abs error {err}"
    print("KERNEL_OK")
</pallas_src>

<mosaic_0001>
module attributes {stable_mosaic.version = 11 : i64} {
  func.func @ncb_kernel(%arg0: i32, %arg1: memref<1x256x128xbf16, #tpu.memory_space<vmem>>, %arg2: memref<128x128xbf16, #tpu.memory_space<vmem>>, %arg3: memref<1152x128xbf16, #tpu.memory_space<vmem>>, %arg4: memref<128x128xbf16, #tpu.memory_space<vmem>>, %arg5: memref<128x128xbf16, #tpu.memory_space<vmem>>, %arg6: memref<128x128xbf16, #tpu.memory_space<vmem>>, %arg7: memref<4x128xf32, #tpu.memory_space<vmem>>, %arg8: memref<1x256x128xf32, #tpu.memory_space<vmem>>) attributes {dimension_semantics = [#tpu.dimension_semantics<parallel>], iteration_bounds = array<i64: 2>, scalar_prefetch = 0 : i64, scratch_operands = 0 : i64, tpu.core_type = #tpu.core_type<tc>, window_params = [{transform_indices = @transform_0, window_bounds = array<i64: 1, 256, 128>}, {pipeline_mode = #tpu.pipeline_mode<synchronous>, transform_indices = @transform_1, window_bounds = array<i64: 128, 128>}, {pipeline_mode = #tpu.pipeline_mode<synchronous>, transform_indices = @transform_2, window_bounds = array<i64: 1152, 128>}, {pipeline_mode = #tpu.pipeline_mode<synchronous>, transform_indices = @transform_3, window_bounds = array<i64: 128, 128>}, {pipeline_mode = #tpu.pipeline_mode<synchronous>, transform_indices = @transform_4, window_bounds = array<i64: 128, 128>}, {pipeline_mode = #tpu.pipeline_mode<synchronous>, transform_indices = @transform_5, window_bounds = array<i64: 128, 128>}, {pipeline_mode = #tpu.pipeline_mode<synchronous>, transform_indices = @transform_6, window_bounds = array<i64: 4, 128>}, {transform_indices = @transform_7, window_bounds = array<i64: 1, 256, 128>}]} {
    %c0 = arith.constant 0 : index
    %c0_0 = arith.constant 0 : index
    %0 = vector.load %arg7[%c0, %c0_0] : memref<4x128xf32, #tpu.memory_space<vmem>>, vector<4x128xf32>
    %1 = vector.extract_strided_slice %0 {offsets = [0, 0], sizes = [1, 128], strides = [1, 1]} : vector<4x128xf32> to vector<1x128xf32>
    %2 = vector.extract_strided_slice %0 {offsets = [1, 0], sizes = [1, 128], strides = [1, 1]} : vector<4x128xf32> to vector<1x128xf32>
    %3 = vector.extract_strided_slice %0 {offsets = [2, 0], sizes = [1, 128], strides = [1, 1]} : vector<4x128xf32> to vector<1x128xf32>
    %4 = vector.extract_strided_slice %0 {offsets = [3, 0], sizes = [1, 128], strides = [1, 1]} : vector<4x128xf32> to vector<1x128xf32>
    %c0_1 = arith.constant 0 : index
    %c0_2 = arith.constant 0 : index
    %c0_3 = arith.constant 0 : index
    %5 = vector.load %arg1[%c0_1, %c0_2, %c0_3] : memref<1x256x128xbf16, #tpu.memory_space<vmem>>, vector<1x256x128xbf16>
    %6 = vector.shape_cast %5 : vector<1x256x128xbf16> to vector<256x128xbf16>
    %c0_4 = arith.constant 0 : index
    %c0_5 = arith.constant 0 : index
    %7 = vector.load %arg2[%c0_4, %c0_5] : memref<128x128xbf16, #tpu.memory_space<vmem>>, vector<128x128xbf16>
    %cst = arith.constant dense<0.000000e+00> : vector<256x128xf32>
    %8 = tpu.matmul %6, %7, %cst {dimension_numbers = #tpu.dot_dimension_numbers<[1], [0], [0], [1], [0, 0, 1, 1], [], []>} : vector<256x128xbf16>, vector<128x128xbf16>, vector<256x128xf32> -> vector<256x128xf32>
    %9 = vector.broadcast %1 : vector<1x128xf32> to vector<256x128xf32>
    %10 = arith.addf %8, %9 : vector<256x128xf32>
    %11 = arith.truncf %10 : vector<256x128xf32> to vector<256x128xbf16>
    %cst_6 = arith.constant 0.000000e+00 : bf16
    %12 = vector.broadcast %cst_6 : bf16 to vector<24x128xbf16>
    %13 = tpu.concatenate %12, %11, %12 in 0 : vector<24x128xbf16>, vector<256x128xbf16>, vector<24x128xbf16> -> vector<304x128xbf16>
    %14 = tpu.iota {dimensions = array<i32: 0>} : vector<256x1xi32>
    %c16_i32 = arith.constant 16 : i32
    %c0_i32 = arith.constant 0 : i32
    %15 = arith.cmpi eq, %c16_i32, %c0_i32 : i32
    %c1_i32 = arith.constant 1 : i32
    %16 = arith.select %15, %c1_i32, %c16_i32 : i32
    %17 = vector.broadcast %16 : i32 to vector<256x1xi32>
    %18 = arith.remsi %14, %17 : vector<256x1xi32>
    %c0_i32_7 = arith.constant 0 : i32
    %19 = vector.broadcast %c0_i32_7 : i32 to vector<256x1xi32>
    %20 = arith.cmpi ne, %18, %19 : vector<256x1xi32>
    %c0_i32_8 = arith.constant 0 : i32
    %21 = vector.broadcast %c0_i32_8 : i32 to vector<256x1xi32>
    %22 = arith.cmpi slt, %18, %21 : vector<256x1xi32>
    %c0_i32_9 = arith.constant 0 : i32
    %23 = arith.cmpi slt, %16, %c0_i32_9 : i32
    %24 = vector.broadcast %23 : i1 to vector<256x1xi1>
    %25 = vector.broadcast %24 : vector<256x1xi1> to vector<256x1xi1>
    %26 = arith.xori %22, %25 : vector<256x1xi1>
    %27 = arith.andi %26, %20 : vector<256x1xi1>
    %28 = vector.broadcast %16 : i32 to vector<256x1xi32>
    %29 = arith.addi %18, %28 : vector<256x1xi32>
    %30 = arith.select %27, %29, %18 : vector<256x1xi1>, vector<256x1xi32>
    %c1_i32_10 = arith.constant 1 : i32
    %31 = vector.broadcast %c1_i32_10 : i32 to vector<256x1xi32>
    %32 = arith.cmpi sge, %30, %31 : vector<256x1xi32>
    %c14_i32 = arith.constant 14 : i32
    %33 = vector.broadcast %c14_i32 : i32 to vector<256x1xi32>
    %34 = arith.cmpi sle, %30, %33 : vector<256x1xi32>
    %35 = vector.extract_strided_slice %13 {offsets = [7, 0], sizes = [256, 128], strides = [1, 1]} : vector<304x128xbf16> to vector<256x128xbf16>
    %cst_11 = arith.constant 0.000000e+00 : f32
    %36 = arith.truncf %cst_11 : f32 to bf16
    %37 = vector.shape_cast %32 : vector<256x1xi1> to vector<256x1xi1>
    %38 = vector.broadcast %37 : vector<256x1xi1> to vector<256x128xi1>
    %39 = vector.broadcast %36 : bf16 to vector<256x128xbf16>
    %40 = arith.select %38, %35, %39 : vector<256x128xi1>, vector<256x128xbf16>
    %c0_12 = arith.constant 0 : index
    %c0_13 = arith.constant 0 : index
    %41 = vector.load %arg3[%c0_12, %c0_13] : memref<1152x128xbf16, #tpu.memory_space<vmem>>, vector<128x128xbf16>
    %cst_14 = arith.constant dense<0.000000e+00> : vector<256x128xf32>
    %42 = tpu.matmul %40, %41, %cst_14 {dimension_numbers = #tpu.dot_dimension_numbers<[1], [0], [0], [1], [0, 0, 1, 1], [], []>} : vector<256x128xbf16>, vector<128x128xbf16>, vector<256x128xf32> -> vector<256x128xf32>
    %43 = vector.extract_strided_slice %13 {offsets = [8, 0], sizes = [256, 128], strides = [1, 1]} : vector<304x128xbf16> to vector<256x128xbf16>
    %c128 = arith.constant 128 : index
    %c0_15 = arith.constant 0 : index
    %44 = vector.load %arg3[%c128, %c0_15] : memref<1152x128xbf16, #tpu.memory_space<vmem>>, vector<128x128xbf16>
    %cst_16 = arith.constant dense<0.000000e+00> : vector<256x128xf32>
    %45 = tpu.matmul %43, %44, %cst_16 {dimension_numbers = #tpu.dot_dimension_numbers<[1], [0], [0], [1], [0, 0, 1, 1], [], []>} : vector<256x128xbf16>, vector<128x128xbf16>, vector<256x128xf32> -> vector<256x128xf32>
    %46 = arith.addf %42, %45 : vector<256x128xf32>
    %47 = vector.extract_strided_slice %13 {offsets = [9, 0], sizes = [256, 128], strides = [1, 1]} : vector<304x128xbf16> to vector<256x128xbf16>
    %cst_17 = arith.constant 0.000000e+00 : f32
    %48 = arith.truncf %cst_17 : f32 to bf16
    %49 = vector.shape_cast %34 : vector<256x1xi1> to vector<256x1xi1>
    %50 = vector.broadcast %49 : vector<256x1xi1> to vector<256x128xi1>
    %51 = vector.broadcast %48 : bf16 to vector<256x128xbf16>
    %52 = arith.select %50, %47, %51 : vector<256x128xi1>, vector<256x128xbf16>
    %c256 = arith.constant 256 : index
    %c0_18 = arith.constant 0 : index
    %53 = vector.load %arg3[%c256, %c0_18] : memref<1152x128xbf16, #tpu.memory_space<vmem>>, vector<128x128xbf16>
    %cst_19 = arith.constant dense<0.000000e+00> : vector<256x128xf32>
    %54 = tpu.matmul %52, %53, %cst_19 {dimension_numbers = #tpu.dot_dimension_numbers<[1], [0], [0], [1], [0, 0, 1, 1], [], []>} : vector<256x128xbf16>, vector<128x128xbf16>, vector<256x128xf32> -> vector<256x128xf32>
    %55 = arith.addf %46, %54 : vector<256x128xf32>
    %56 = vector.extract_strided_slice %13 {offsets = [23, 0], sizes = [256, 128], strides = [1, 1]} : vector<304x128xbf16> to vector<256x128xbf16>
    %cst_20 = arith.constant 0.000000e+00 : f32
    %57 = arith.truncf %cst_20 : f32 to bf16
    %58 = vector.shape_cast %32 : vector<256x1xi1> to vector<256x1xi1>
    %59 = vector.broadcast %58 : vector<256x1xi1> to vector<256x128xi1>
    %60 = vector.broadcast %57 : bf16 to vector<256x128xbf16>
    %61 = arith.select %59, %56, %60 : vector<256x128xi1>, vector<256x128xbf16>
    %c384 = arith.constant 384 : index
    %c0_21 = arith.constant 0 : index
    %62 = vector.load %arg3[%c384, %c0_21] : memref<1152x128xbf16, #tpu.memory_space<vmem>>, vector<128x128xbf16>
    %cst_22 = arith.constant dense<0.000000e+00> : vector<256x128xf32>
    %63 = tpu.matmul %61, %62, %cst_22 {dimension_numbers = #tpu.dot_dimension_numbers<[1], [0], [0], [1], [0, 0, 1, 1], [], []>} : vector<256x128xbf16>, vector<128x128xbf16>, vector<256x128xf32> -> vector<256x128xf32>
    %64 = arith.addf %55, %63 : vector<256x128xf32>
    %65 = vector.extract_strided_slice %13 {offsets = [24, 0], sizes = [256, 128], strides = [1, 1]} : vector<304x128xbf16> to vector<256x128xbf16>
    %c512 = arith.constant 512 : index
    %c0_23 = arith.constant 0 : index
    %66 = vector.load %arg3[%c512, %c0_23] : memref<1152x128xbf16, #tpu.memory_space<vmem>>, vector<128x128xbf16>
    %cst_24 = arith.constant dense<0.000000e+00> : vector<256x128xf32>
    %67 = tpu.matmul %65, %66, %cst_24 {dimension_numbers = #tpu.dot_dimension_numbers<[1], [0], [0], [1], [0, 0, 1, 1], [], []>} : vector<256x128xbf16>, vector<128x128xbf16>, vector<256x128xf32> -> vector<256x128xf32>
    %68 = arith.addf %64, %67 : vector<256x128xf32>
    %69 = vector.extract_strided_slice %13 {offsets = [25, 0], sizes = [256, 128], strides = [1, 1]} : vector<304x128xbf16> to vector<256x128xbf16>
    %cst_25 = arith.constant 0.000000e+00 : f32
    %70 = arith.truncf %cst_25 : f32 to bf16
    %71 = vector.shape_cast %34 : vector<256x1xi1> to vector<256x1xi1>
    %72 = vector.broadcast %71 : vector<256x1xi1> to vector<256x128xi1>
    %73 = vector.broadcast %70 : bf16 to vector<256x128xbf16>
    %74 = arith.select %72, %69, %73 : vector<256x128xi1>, vector<256x128xbf16>
    %c640 = arith.constant 640 : index
    %c0_26 = arith.constant 0 : index
    %75 = vector.load %arg3[%c640, %c0_26] : memref<1152x128xbf16, #tpu.memory_space<vmem>>, vector<128x128xbf16>
    %cst_27 = arith.constant dense<0.000000e+00> : vector<256x128xf32>
    %76 = tpu.matmul %74, %75, %cst_27 {dimension_numbers = #tpu.dot_dimension_numbers<[1], [0], [0], [1], [0, 0, 1, 1], [], []>} : vector<256x128xbf16>, vector<128x128xbf16>, vector<256x128xf32> -> vector<256x128xf32>
    %77 = arith.addf %68, %76 : vector<256x128xf32>
    %78 = vector.extract_strided_slice %13 {offsets = [39, 0], sizes = [256, 128], strides = [1, 1]} : vector<304x128xbf16> to vector<256x128xbf16>
    %cst_28 = arith.constant 0.000000e+00 : f32
    %79 = arith.truncf %cst_28 : f32 to bf16
    %80 = vector.shape_cast %32 : vector<256x1xi1> to vector<256x1xi1>
    %81 = vector.broadcast %80 : vector<256x1xi1> to vector<256x128xi1>
    %82 = vector.broadcast %79 : bf16 to vector<256x128xbf16>
    %83 = arith.select %81, %78, %82 : vector<256x128xi1>, vector<256x128xbf16>
    %c768 = arith.constant 768 : index
    %c0_29 = arith.constant 0 : index
    %84 = vector.load %arg3[%c768, %c0_29] : memref<1152x128xbf16, #tpu.memory_space<vmem>>, vector<128x128xbf16>
    %cst_30 = arith.constant dense<0.000000e+00> : vector<256x128xf32>
    %85 = tpu.matmul %83, %84, %cst_30 {dimension_numbers = #tpu.dot_dimension_numbers<[1], [0], [0], [1], [0, 0, 1, 1], [], []>} : vector<256x128xbf16>, vector<128x128xbf16>, vector<256x128xf32> -> vector<256x128xf32>
    %86 = arith.addf %77, %85 : vector<256x128xf32>
    %87 = vector.extract_strided_slice %13 {offsets = [40, 0], sizes = [256, 128], strides = [1, 1]} : vector<304x128xbf16> to vector<256x128xbf16>
    %c896 = arith.constant 896 : index
    %c0_31 = arith.constant 0 : index
    %88 = vector.load %arg3[%c896, %c0_31] : memref<1152x128xbf16, #tpu.memory_space<vmem>>, vector<128x128xbf16>
    %cst_32 = arith.constant dense<0.000000e+00> : vector<256x128xf32>
    %89 = tpu.matmul %87, %88, %cst_32 {dimension_numbers = #tpu.dot_dimension_numbers<[1], [0], [0], [1], [0, 0, 1, 1], [], []>} : vector<256x128xbf16>, vector<128x128xbf16>, vector<256x128xf32> -> vector<256x128xf32>
    %90 = arith.addf %86, %89 : vector<256x128xf32>
    %91 = vector.extract_strided_slice %13 {offsets = [41, 0], sizes = [256, 128], strides = [1, 1]} : vector<304x128xbf16> to vector<256x128xbf16>
    %cst_33 = arith.constant 0.000000e+00 : f32
    %92 = arith.truncf %cst_33 : f32 to bf16
    %93 = vector.shape_cast %34 : vector<256x1xi1> to vector<256x1xi1>
    %94 = vector.broadcast %93 : vector<256x1xi1> to vector<256x128xi1>
    %95 = vector.broadcast %92 : bf16 to vector<256x128xbf16>
    %96 = arith.select %94, %91, %95 : vector<256x128xi1>, vector<256x128xbf16>
    %c1024 = arith.constant 1024 : index
    %c0_34 = arith.constant 0 : index
    %97 = vector.load %arg3[%c1024, %c0_34] : memref<1152x128xbf16, #tpu.memory_space<vmem>>, vector<128x128xbf16>
    %cst_35 = arith.constant dense<0.000000e+00> : vector<256x128xf32>
    %98 = tpu.matmul %96, %97, %cst_35 {dimension_numbers = #tpu.dot_dimension_numbers<[1], [0], [0], [1], [0, 0, 1, 1], [], []>} : vector<256x128xbf16>, vector<128x128xbf16>, vector<256x128xf32> -> vector<256x128xf32>
    %99 = arith.addf %90, %98 : vector<256x128xf32>
    %100 = vector.broadcast %2 : vector<1x128xf32> to vector<256x128xf32>
    %101 = arith.addf %99, %100 : vector<256x128xf32>
    %cst_36 = arith.constant 0.000000e+00 : f32
    %102 = vector.broadcast %cst_36 : f32 to vector<256x128xf32>
    %103 = arith.maximumf %101, %102 : vector<256x128xf32>
    %104 = arith.truncf %103 : vector<256x128xf32> to vector<256x128xbf16>
    %c0_37 = arith.constant 0 : index
    %c0_38 = arith.constant 0 : index
    %105 = vector.load %arg4[%c0_37, %c0_38] : memref<128x128xbf16, #tpu.memory_space<vmem>>, vector<128x128xbf16>
    %cst_39 = arith.constant dense<0.000000e+00> : vector<256x128xf32>
    %106 = tpu.matmul %104, %105, %cst_39 {dimension_numbers = #tpu.dot_dimension_numbers<[1], [0], [0], [1], [0, 0, 1, 1], [], []>} : vector<256x128xbf16>, vector<128x128xbf16>, vector<256x128xf32> -> vector<256x128xf32>
    %107 = arith.addf %10, %106 : vector<256x128xf32>
    %108 = arith.truncf %107 : vector<256x128xf32> to vector<256x128xbf16>
    %c0_40 = arith.constant 0 : index
    %c0_41 = arith.constant 0 : index
    %109 = vector.load %arg5[%c0_40, %c0_41] : memref<128x128xbf16, #tpu.memory_space<vmem>>, vector<128x128xbf16>
    %cst_42 = arith.constant dense<0.000000e+00> : vector<256x128xf32>
    %110 = tpu.matmul %108, %109, %cst_42 {dimension_numbers = #tpu.dot_dimension_numbers<[1], [0], [0], [1], [0, 0, 1, 1], [], []>} : vector<256x128xbf16>, vector<128x128xbf16>, vector<256x128xf32> -> vector<256x128xf32>
    %111 = vector.broadcast %3 : vector<1x128xf32> to vector<256x128xf32>
    %112 = arith.addf %110, %111 : vector<256x128xf32>
    %cst_43 = arith.constant 0.000000e+00 : f32
    %113 = vector.broadcast %cst_43 : f32 to vector<256x128xf32>
    %114 = arith.maximumf %112, %113 : vector<256x128xf32>
    %115 = arith.truncf %114 : vector<256x128xf32> to vector<256x128xbf16>
    %c0_44 = arith.constant 0 : index
    %c0_45 = arith.constant 0 : index
    %116 = vector.load %arg6[%c0_44, %c0_45] : memref<128x128xbf16, #tpu.memory_space<vmem>>, vector<128x128xbf16>
    %cst_46 = arith.constant dense<0.000000e+00> : vector<256x128xf32>
    %117 = tpu.matmul %115, %116, %cst_46 {dimension_numbers = #tpu.dot_dimension_numbers<[1], [0], [0], [1], [0, 0, 1, 1], [], []>} : vector<256x128xbf16>, vector<128x128xbf16>, vector<256x128xf32> -> vector<256x128xf32>
    %118 = vector.broadcast %4 : vector<1x128xf32> to vector<256x128xf32>
    %119 = arith.addf %117, %118 : vector<256x128xf32>
    %120 = arith.addf %107, %119 : vector<256x128xf32>
    %c0_47 = arith.constant 0 : index
    %c0_48 = arith.constant 0 : index
    %c0_49 = arith.constant 0 : index
    %121 = vector.load %arg8[%c0_47, %c0_48, %c0_49] : memref<1x256x128xf32, #tpu.memory_space<vmem>>, vector<1x256x128xf32>
    %122 = vector.shape_cast %121 : vector<1x256x128xf32> to vector<256x128xf32>
    %123 = vector.shape_cast %120 : vector<256x128xf32> to vector<1x256x128xf32>
    tpu.vector_store %arg8[%c0_47, %c0_48, %c0_49], %123 {strides = array<i32>} : memref<1x256x128xf32, #tpu.memory_space<vmem>>, vector<1x256x128xf32>,
    return
  }
  func.func @transform_0(%arg0: i32) -> (i32, i32, i32) {
    %c0_i32 = arith.constant 0 : i32
    %c0_i32_0 = arith.constant 0 : i32
    %c0_i32_1 = arith.constant 0 : i32
    return %arg0, %c0_i32, %c0_i32_0 : i32, i32, i32
  }
  func.func @transform_1(%arg0: i32) -> (i32, i32) {
    %c0_i32 = arith.constant 0 : i32
    %c0_i32_0 = arith.constant 0 : i32
    %c0_i32_1 = arith.constant 0 : i32
    return %c0_i32, %c0_i32_0 : i32, i32
  }
  func.func @transform_2(%arg0: i32) -> (i32, i32) {
    %c0_i32 = arith.constant 0 : i32
    %c0_i32_0 = arith.constant 0 : i32
    %c0_i32_1 = arith.constant 0 : i32
    return %c0_i32, %c0_i32_0 : i32, i32
  }
  func.func @transform_3(%arg0: i32) -> (i32, i32) {
    %c0_i32 = arith.constant 0 : i32
    %c0_i32_0 = arith.constant 0 : i32
    %c0_i32_1 = arith.constant 0 : i32
    return %c0_i32, %c0_i32_0 : i32, i32
  }
  func.func @transform_4(%arg0: i32) -> (i32, i32) {
    %c0_i32 = arith.constant 0 : i32
    %c0_i32_0 = arith.constant 0 : i32
    %c0_i32_1 = arith.constant 0 : i32
    return %c0_i32, %c0_i32_0 : i32, i32
  }
  func.func @transform_5(%arg0: i32) -> (i32, i32) {
    %c0_i32 = arith.constant 0 : i32
    %c0_i32_0 = arith.constant 0 : i32
    %c0_i32_1 = arith.constant 0 : i32
    return %c0_i32, %c0_i32_0 : i32, i32
  }
  func.func @transform_6(%arg0: i32) -> (i32, i32) {
    %c0_i32 = arith.constant 0 : i32
    %c0_i32_0 = arith.constant 0 : i32
    %c0_i32_1 = arith.constant 0 : i32
    return %c0_i32, %c0_i32_0 : i32, i32
  }
  func.func @transform_7(%arg0: i32) -> (i32, i32, i32) {
    %c0_i32 = arith.constant 0 : i32
    %c0_i32_0 = arith.constant 0 : i32
    %c0_i32_1 = arith.constant 0 : i32
    return %arg0, %c0_i32, %c0_i32_0 : i32, i32, i32
  }
}

</mosaic_0001>

<bundles_post_ra>
// kernel: tpu_custom_call.1
= control target key start
LH: loop header
LB: loop body
LE: loop exit
PB: predicated region body
PF: predicated region fallthrough
CT: control target
= control target key end

     0   :  { %s9359_s0 = inlined_call_operand.hbm [shape: bf16[2,256,128], index: 0, kind: input, shape index: {}]   ;;  %s9360_s1 = inlined_call_operand.hbm [shape: bf16[128,128], index: 1, kind: input, shape index: {}]   ;;  %s9361_s2 = inlined_call_operand.hbm [shape: bf16[1152,128], index: 2, kind: input, shape index: {}]   ;;  %s9362_s3 = inlined_call_operand.hbm [shape: bf16[128,128], index: 3, kind: input, shape index: {}]   ;;  %s9363_s4 = inlined_call_operand.hbm [shape: bf16[128,128], index: 4, kind: input, shape index: {}]   ;;  %s9364_s5 = inlined_call_operand.hbm [shape: bf16[128,128], index: 5, kind: input, shape index: {}]   ;;  %s9365_s6 = inlined_call_operand.vmem [shape: f32[4,128], index: 6, kind: input, shape index: {}]   ;;  %s9366_s7 = inlined_call_operand.hbm [shape: f32[2,256,128], index: 7, kind: output, shape index: {}]  }
   0x1   :  { %9537 = sst [smem:[#allocation101_spill]] %s9360_s1 }
   0x2   :  { %12 = vsyncpa [#allocation3], 0 }
   0x3   :  { %14 = vsyncpa [#allocation3 + $0x1], 0 }
   0x4   :  { %15 = vsyncpa [#allocation6], 0 }
   0x5   :  { %16 = vsyncpa [#allocation9], 0 }
   0x6   :  { %17 = vsyncpa [#allocation12], 0 }
   0x7   :  { %18 = vsyncpa [#allocation4], 0 }
   0x8   :  { %20 = vsyncpa [#allocation4 + $0x1], 0  ;;  %s6810_s24 = smov 0   ;;  %s6812_s25 = smov 0  }
   0x9   :  { %s6814_s26 = smov 0   ;;  %s6816_s27 = smov 0  }
   0xa LB: > { %s9538_s1 = sld [smem:[#allocation101_spill]]  ;;  %s6834_s8 = sadd.s32 4294967295, %s6757_s27   ;;  %s6757_s27 = sphi %s6816_s27, %s10061_s27   ;;  %s6753_s26 = sphi %s6814_s26, %s10060_s26   ;;  %s6749_s25 = sphi %s6812_s25, %s10059_s25   ;;  %s6745_s24 = sphi %s6810_s24, %s10058_s24  }
   0xb   : > { %p5746_p0 = scmp.ge.s32.totalorder %s6757_s27, 1  ;;  %p47_p1 = scmp.eq.s32.totalorder %s6834_s8, 0 }
   0xc   : > { %p209_p2 = scmp.lt.s32.totalorder %s6757_s27, 3  ;;  %s6759_s10 = smov [#allocation5]  }
   0xd   : > { %s222_s11 = sshll.u32 %s6759_s10, 4  ;;  %s248_s14 = sshll.u32 %s9362_s3, 4  ;;  %s223_s11 = int_to_ptr.vmem [resolvable:$true] %s222_s11  ;;  %s249_s14 = int_to_ptr.hbm [resolvable:$true] %s248_s14 }
   0xe   : > { %p6839_p3 = pnand %p5746_p0, %p209_p2  ;;  %s234_s18 = sshll.u32 %s9361_s2, 4  ;;  %s235_s18 = int_to_ptr.hbm [resolvable:$true] %s234_s18 }
   0xf   : > { %s6760_s19 = smov [#allocation8]   ;;  %s9367_s21 = smov 64  }
  0x10   : > { %s220_s30 = sshll.u32 %s9538_s1, 4  ;;  %p6419_p4 = pneg %p6839_p3  ;;  %s221_s30 = int_to_ptr.hbm [resolvable:$true] %s220_s30 }
  0x11   : > { %s250_s20 = sshll.u32 %s6760_s19, 4  ;;  %s9368_s22 = smov 4   ;;  %s251_s20 = int_to_ptr.vmem [resolvable:$true] %s250_s20 }
  0x12   : > { %p6851_p6 = pnand %p6419_p4, %p47_p1  ;;  %s262_s29 = sshll.u32 %s9363_s4, 4  ;;  %s263_s29 = int_to_ptr.hbm [resolvable:$true] %s262_s29 }
  0x13   : > { %s6763_s10 = smov [#allocation7]   ;;  %s276_s16 = sshll.u32 %s9364_s5, 4  ;;  %s277_s16 = int_to_ptr.hbm [resolvable:$true] %s276_s16 }
  0x14   : > { %6422 = dma.hbm_to_vmem [thread:$0]  (!%p6851_p6), %s221_s30, 1024, %s223_s11, [#allocation6], %s9367_s21, %s9367_s21, %s9368_s22  }
  0x15   : > { %6428 = dma.hbm_to_vmem [thread:$0]  (!%p6851_p6), %s249_s14, 1024, %s251_s20, [#allocation9], %s9367_s21, %s9367_s21, %s9368_s22  }
  0x16   : > { %s236_s12 = sshll.u32 %s6763_s10, 4  ;;  %s6764_s30 = smov [#allocation10]   ;;  %s237_s12 = int_to_ptr.vmem [resolvable:$true] %s236_s12 }
  0x17   : > { %6425 = dma.hbm_to_vmem [thread:$0]  (!%p6851_p6), %s235_s18, 9216, %s237_s12, [#allocation6], %s9367_s21, %s9367_s21, %s9368_s22  }
  0x18   : > { %s264_s11 = sshll.u32 %s6764_s30, 4  ;;  %s6765_s17 = smov [#allocation11]   ;;  %s265_s11 = int_to_ptr.vmem [resolvable:$true] %s264_s11 }
  0x19   : > { %6431 = dma.hbm_to_vmem [thread:$0]  (!%p6851_p6), %s263_s29, 1024, %s265_s11, [#allocation9], %s9367_s21, %s9367_s21, %s9368_s22  }
  0x1a   : > { %s278_s18 = sshll.u32 %s6765_s17, 4  ;;  %s5745_s19 = sadd.s32 4294967294, %s6757_s27   ;;  %s279_s18 = int_to_ptr.vmem [resolvable:$true] %s278_s18 }
  0x1b   : > { %6434 = dma.hbm_to_vmem [thread:$0]  (!%p6851_p6), %s277_s16, 1024, %s279_s18, [#allocation12], %s9367_s21, %s9367_s21, %s9368_s22  }
  0x1c   : > { %s6891_s20 = sadd.s32 1, %s6757_s27   ;;  %s33_s23 = sadd.s32 1, %s6753_s26 }
  0x1d   : > { %s30_s28 = ssub.s32 %s6757_s27, %s6891_s20  ;;  %p40_p7 = scmp.ne.s32.totalorder %s6753_s26, %s6749_s25 }
  0x1e   : > { %p31_p8 = scmp.eq.s32.totalorder %s30_s28, 0  ;;  %p41_p9 = scmp.eq.s32.totalorder %s6757_s27, 0 }
  0x1f   : > { %p46_p10 = scmp.ne.s32.totalorder %s6749_s25, %s6745_s24  ;;  %p196_p11 = scmp.eq.s32.totalorder %s6834_s8, 1 }
  0x20   : > { %s6903_s29 = scalar_select %p31_p8, %s6753_s26, %s33_s23  }
  0x21   : > { %p6907_p12 = por %p47_p1, %p46_p10  ;;  %p6911_p13 = por %p196_p11, %p40_p7 }
  0x22   : > { %p202_p0 = scmp.eq.s32.totalorder %s5745_s19, 1  ;;  %p42_p2 = por %p41_p9, %p40_p7 }
  0x23   : > { %s295_s12 = sand.u32 1, %s6753_s26   ;;  %p6448_p6 = scmp.lt.s32.totalorder %s6757_s27, 2 }
  0x24   : > { %p6916_p4 = por %p202_p0, %p46_p10  ;;  %s5753_s11 = sshll.u32 %s295_s12, 7 }
  0x25   : > { %s6249_s13 = sshll.u32 %s6757_s27, 7  ;;  %s299_s23 = scalar_lea.vmem [#allocation2], %s5753_s11 }
  0x26   : > { %s304_s17 = scalar_lea.hbm %s9359_s0, %s6249_s13  ;;  %s307_s28 = sshll.u32 %s299_s23, 4  ;;  %s308_s28 = int_to_ptr.vmem [resolvable:$true] %s307_s28 }
  0x27   : > { %s305_s18 = sshll.u32 %s304_s17, 4  ;;  %p6925_p8 = pnand %p6448_p6, %p42_p2  ;;  %s306_s18 = int_to_ptr.hbm [resolvable:$true] %s305_s18 }
  0x28   : > { %s296_s21 = scalar_lea.sflag [#allocation3], %s295_s12  ;;  %s6649_s22 = sshra.s32 %s306_s18, 4  ;;  %s6650_s22 = int_to_ptr.hbm [resolvable:$true] %s6649_s22 }
  0x29   : > { %s6651_s1 = scalar_lea.hbm %s6650_s22, 128  ;;  %p6653_p9 = pneg %p6925_p8 }
  0x2a   : > { %p6652_p7 = scmp.ne.s32.totalorder %s6650_s22, %s6651_s1  ;;  %s6656_s11 = scalar_lea.hbm %s9359_s0, 256 }
  0x2b   : > { %p6657_p0 = scmp.lt.s32.totalorder %s6650_s22, %s9359_s0  ;;  %p6658_p2 = scmp.lt.s32.totalorder %s6656_s11, %s6651_s1 }
  0x2c   : > { %p6654_p10 = pnand %p6653_p9, %p6652_p7 }
  0x2d   : > { %p6659_p6 = por %p6658_p2, %p6657_p0 }
  0x2e   : > { %p6655_p11 = pneg %p6654_p10 }
  0x30   : > { %p6660_p5 = pnand %p6659_p6, %p6655_p11 }
  0x32   : > { %6663 = shalt.err (!%p6660_p5)
}
  0x33   : > { %s9545_s12 = smov 4   ;;  %s9546_s23 = smov 64  }
  0x34   : > { %6438 = dma.hbm_to_vmem [thread:$0]  (!%p6925_p8), %s306_s18, 2048, %s308_s28, %s296_s21, %s9546_s23, %s9546_s23, %s9545_s12  }
  0x35   : > { %319 = sbr.rel (%p6839_p3) target bundleno = 1584 (0x630), region = 48 }
  0x3a   : > { %s6945_s13 = sand.u32 1, %s6749_s25  }
  0x3b   : > { %s5757_s22 = sshll.u32 %s6945_s13, 7  ;;  %s322_s1 = scalar_lea.sflag [#allocation3], %s6945_s13 }
  0x3c   : > { %s6949_s14 = scalar_lea.vmem [#allocation2], %s5757_s22 }
  0x3d   : > { %6724 = dma.done.wait (%p6907_p12), %s322_s1, 2048  }
  0x3e   : > { %6726 = vsyncadd (%p6907_p12), %s322_s1, 4294965248 }
  0x3f   : > { %6728 = dma.done.wait (%p47_p1), [#allocation6], 10240  }
  0x40   : > { %6730 = vsyncadd (%p47_p1), [#allocation6], 4294957056 }
  0x41   : > { %6732 = dma.done.wait (%p47_p1), [#allocation9], 2048  }
  0x42   : > { %6734 = vsyncadd (%p47_p1), [#allocation9], 4294965248 }
  0x43   : > { %6736 = dma.done.wait (%p47_p1), [#allocation12], 1024  }
  0x44   : > { %6738 = vsyncadd (%p47_p1), [#allocation12], 4294966272  ;;  %v6273_v0 = vld [vmem:[#allocation5 + $0x38] sm:$0xff]  ;;  %v6272_v1 = vld [vmem:[#allocation5 + $0x30] sm:$0xff]  ;;  %v804_v37 = vlaneseq  ;;  %vm6766_vm2 = vmmov 1   ;;  %v9372_v55 = vmov 0  }
  0x45   : > { %579 = vmatpush.bf16.msra.mxu0 %v6273_v0  ;;  %6371 = vmatpush.bf16.msra.mxu1 %v6273_v0  ;;  %v6271_v2 = vld [vmem:[#allocation5 + $0x28] sm:$0xff]  ;;  %v6270_v3 = vld [vmem:[#allocation5 + $0x20] sm:$0xff]  ;;  %v6269_v4 = vld [vmem:[#allocation5 + $0x18] sm:$0xff]  ;;  %vm9396_vm14 = vsmask.f32 3328  ;;  %s5763_s28 = sshll.u32 %s6945_s13, 8 }
  0x46   : > { %6372 = vmatpush.bf16.msra.mxu2 %v6273_v0  ;;  %6373 = vmatpush.bf16.msra.mxu3 %v6273_v0  ;;  %v6268_v5 = vld [vmem:[#allocation5 + $0x10] sm:$0xff]  ;;  %v6267_v6 = vld [vmem:[#allocation5 + $0x8] sm:$0xff]  ;;  %v6266_v7 = vld [vmem:[#allocation5] sm:$0xff]  ;;  %v6981_v38 = vshrl.u32 %v804_v37, 7  ;;  %vm9370_vm15 = vsmask.f32 4352 }
  0x47   : > { %v6250_v8 = vld [vmem:[%s6949_s14] sm:$0xff]  ;;  %v6251_v10 = vld [vmem:[%s6949_s14 + $0x8] sm:$0xff]  ;;  %v6289_v12 = vld [vmem:[#allocation7 + $0x78] sm:$0xff]  ;;  %s9215_s19 = scalar_lea.vmem [#allocation13], %s5763_s28  ;;  %s6370_s11 = sshll.u32 %s6834_s8, 8 }
  0x48   : > { %v6254_v9 = vld [vmem:[%s6949_s14 + $0x20] sm:$0xff]  ;;  %v6255_v11 = vld [vmem:[%s6949_s14 + $0x28] sm:$0xff]  ;;  %v6288_v15 = vld [vmem:[#allocation7 + $0x70] sm:$0xff]  ;;  %v806_v39 = vadd.s32 8, %v6981_v38  ;;  %v807_v40 = vadd.s32 16, %v6981_v38  ;;  %v808_v42 = vadd.s32 24, %v6981_v38  ;;  %s5620_s12 = scalar_lea.hbm %s9366_s7, %s6370_s11 }
  0x49   : > { %580 = vmatpush.bf16.msra.mxu0 %v6272_v1  ;;  %6374 = vmatpush.bf16.msra.mxu1 %v6272_v1  ;;  %v6258_v13 = vld [vmem:[%s6949_s14 + $0x40] sm:$0xff]  ;;  %v6281_v16 = vld [vmem:[#allocation7 + $0x38] sm:$0xff]  ;;  %v6287_v18 = vld [vmem:[#allocation7 + $0x68] sm:$0xff]  ;;  %v841_v43 = vand.u32 15, %v6981_v38  ;;  %v811_v47 = vadd.s32 48, %v6981_v38  ;;  %v812_v48 = vadd.s32 56, %v6981_v38 }
  0x4a   : > { %6375 = vmatpush.bf16.msra.mxu2 %v6272_v1  ;;  %6376 = vmatpush.bf16.msra.mxu3 %v6272_v1  ;;  %v6262_v14 = vld [vmem:[%s6949_s14 + $0x60] sm:$0xff]  ;;  %v6297_v17 = vld [vmem:[#allocation7 + $0xb8] sm:$0xff]  ;;  %v6280_v19 = vld [vmem:[#allocation7 + $0x30] sm:$0xff]  ;;  %v848_v41 = vand.u32 15, %v806_v39  ;;  %v855_v44 = vand.u32 15, %v807_v40  ;;  %v862_v46 = vand.u32 15, %v808_v42 }
  0x4b   : > { %v6296_v20 = vld [vmem:[#allocation7 + $0xb0] sm:$0xff]  ;;  %v6286_v21 = vld [vmem:[#allocation7 + $0x60] sm:$0xff]  ;;  %v6279_v22 = vld [vmem:[#allocation7 + $0x28] sm:$0xff]  ;;  %vm6991_vm1 = vcmp.ge.s32.totalorder %v841_v43, 1  ;;  %s5621_s23 = sshll.u32 %s9215_s19, 4  ;;  %s5623_s22 = sshll.u32 %s5620_s12, 4  ;;  %s5622_s23 = int_to_ptr.vmem [resolvable:$true] %s5621_s23  ;;  %s5624_s22 = int_to_ptr.hbm [resolvable:$true] %s5623_s22 }
  0x4c   : > { %v6295_v23 = vld [vmem:[#allocation7 + $0xa8] sm:$0xff]  ;;  %v6252_v24 = vld [vmem:[%s6949_s14 + $0x10] sm:$0xff]  ;;  %v6285_v27 = vld [vmem:[#allocation7 + $0x58] sm:$0xff]  ;;  %vm6987_vm0 = vcmp.le.s32.totalorder %v848_v41, 14  ;;  %vm6998_vm5 = vcmp.ge.s32.totalorder %v855_v44, 1  ;;  %vm7005_vm7 = vcmp.le.s32.totalorder %v862_v46, 14 }
  0x4d   : > { %581 = vmatpush.bf16.msra.mxu0 %v6271_v2  ;;  %6377 = vmatpush.bf16.msra.mxu1 %v6271_v2  ;;  %v6256_v25 = vld [vmem:[%s6949_s14 + $0x30] sm:$0xff]  ;;  %v6259_v26 = vld [vmem:[%s6949_s14 + $0x48] sm:$0xff]  ;;  %v6278_v29 = vld [vmem:[#allocation7 + $0x20] sm:$0xff]  ;;  %s5609_s1 = scalar_lea.sflag [#allocation4], %s6945_s13  ;;  %s6693_s8 = sshra.s32 %s5624_s22, 4  ;;  %s6694_s8 = int_to_ptr.hbm [resolvable:$true] %s6693_s8 }
  0x4e   : > { %6378 = vmatpush.bf16.msra.mxu2 %v6271_v2  ;;  %6379 = vmatpush.bf16.msra.mxu3 %v6271_v2  ;;  %v6263_v28 = vld [vmem:[%s6949_s14 + $0x68] sm:$0xff]  ;;  %v6294_v30 = vld [vmem:[#allocation7 + $0xa0] sm:$0xff]  ;;  %v6284_v31 = vld [vmem:[#allocation7 + $0x50] sm:$0xff]  ;;  %s6699_s15 = scalar_lea.hbm %s9366_s7, 512  ;;  %p6700_p12 = scmp.lt.s32.totalorder %s6694_s8, %s9366_s7 }
  0x4f   : > { %v6283_v32 = vld [vmem:[#allocation7 + $0x48] sm:$0xff]  ;;  %v6253_v33 = vld [vmem:[%s6949_s14 + $0x18] sm:$0xff]  ;;  %v6260_v35 = vld [vmem:[%s6949_s14 + $0x50] sm:$0xff] }
  0x50   : > { %v6257_v34 = vld [vmem:[%s6949_s14 + $0x38] sm:$0xff]  ;;  %v6264_v36 = vld [vmem:[%s6949_s14 + $0x70] sm:$0xff]  ;;  %vm1350_vm3 = vmpackc.low %vm6766_vm2, %vm6766_vm2 }
  0x51   : > { %582 = vmatpush.bf16.msra.mxu0 %v6270_v3  ;;  %6380 = vmatpush.bf16.msra.mxu1 %v6270_v3  ;;  %vm2324_vm4 = vmpackc.low %vm6987_vm0, %vm6987_vm0  ;;  %v6261_v50 = vld [vmem:[%s6949_s14 + $0x58] sm:$0xff]  ;;  %v1382_v56 = vsel %vm1350_vm3, 65537, %v9372_v55  ;;  %v6304_v58 = vld [vmem:[#allocation7 + $0xf0] sm:$0xff] }
  0x52   : > { %6381 = vmatpush.bf16.msra.mxu2 %v6270_v3  ;;  %6382 = vmatpush.bf16.msra.mxu3 %v6270_v3  ;;  %vm1349_vm6 = vmpackc.low %vm6991_vm1, %vm6991_vm1  ;;  %v6265_v51 = vld [vmem:[%s6949_s14 + $0x78] sm:$0xff]  ;;  %v2356_v57 = vsel %vm2324_vm4, 65537, %v9372_v55  ;;  %v6276_v61 = vld [vmem:[#allocation7 + $0x10] sm:$0xff]  ;;  %v7027_v0 = vunpack.c.l.b16 %v1382_v56  ;;  %v890_v56 = vand.u32 15, %v812_v48  ;;  %s6695_s14 = scalar_lea.hbm %s6694_s8, 256 }
  0x53   : > { %v6305_v52 = vld [vmem:[#allocation7 + $0xf8] sm:$0xff]  ;;  %vm1351_vm8 = vmpackc.low %vm6998_vm5, %vm6998_vm5  ;;  %v1381_v59 = vsel %vm1349_vm6, 65537, %v9372_v55  ;;  %v6292_v62 = vld [vmem:[#allocation7 + $0x90] sm:$0xff]  ;;  %v2388_v1 = vunpack.c.l.b16 %v2356_v57  ;;  %p6696_p1 = scmp.ne.s32.totalorder %s6694_s8, %s6695_s14  ;;  %p6701_p8 = scmp.lt.s32.totalorder %s6699_s15, %s6695_s14 }
  0x54   : > { %v6277_v53 = vld [vmem:[#allocation7 + $0x18] sm:$0xff]  ;;  %vm2326_vm9 = vmpackc.low %vm7005_vm7, %vm7005_vm7  ;;  %v1383_v60 = vsel %vm1351_vm8, 65537, %v9372_v55  ;;  %v1413_v2 = vunpack.c.l.b16 %v1381_v59  ;;  %v6300_v45 = vld [vmem:[#allocation7 + $0xd0] sm:$0xff]  ;;  %vm7064_vm1 = vcmp.le.s32.totalorder %v890_v56, 14  ;;  %vm9374_vm8 = vcmask 1043456  }
  0x55   : > { %583 = vmatpush.bf16.msra.mxu0 %v6269_v4  ;;  %6383 = vmatpush.bf16.msra.mxu1 %v6269_v4  ;;  %v6293_v54 = vld [vmem:[#allocation7 + $0x98] sm:$0xff]  ;;  %v2358_v63 = vsel %vm2326_vm9, 65537, %v9372_v55  ;;  %v1415_v3 = vunpack.c.l.b16 %v1383_v60  ;;  %v6299_v57 = vld [vmem:[#allocation7 + $0xc8] sm:$0xff]  ;;  %v385_v60 = vld [vmem:[%s9365_s6] sm:$0xf]  ;;  %p6697_p3 = pnand %p6696_p1, %p6911_p13  ;;  %p6702_p7 = por %p6701_p8, %p6700_p12 }
  0x56   : > { %6384 = vmatpush.bf16.msra.mxu2 %v6269_v4  ;;  %6385 = vmatpush.bf16.msra.mxu3 %v6269_v4  ;;  %v6282_v4 = vld [vmem:[#allocation7 + $0x40] sm:$0xff]  ;;  %vm2330_vm3 = vmpackc.low %vm7064_vm1, %vm7064_vm1 }
  0x57   : > { %p6698_p5 = pneg %p6697_p3 }
  0x59   : > { %584 = vmatpush.bf16.msra.mxu0 %v6268_v5  ;;  %6386 = vmatpush.bf16.msra.mxu1 %v6268_v5  ;;  %p6703_p9 = pnand %p6702_p7, %p6698_p5 }
  0x5a   : > { %6387 = vmatpush.bf16.msra.mxu2 %v6268_v5  ;;  %6388 = vmatpush.bf16.msra.mxu3 %v6268_v5  ;;  %v6303_v5 = vld [vmem:[#allocation7 + $0xe8] sm:$0xff] }
  0x5d   : > { %585 = vmatpush.bf16.msra.mxu0 %v6267_v6  ;;  %6389 = vmatpush.bf16.msra.mxu1 %v6267_v6 }
  0x5e   : > { %6390 = vmatpush.bf16.msra.mxu2 %v6267_v6  ;;  %6391 = vmatpush.bf16.msra.mxu3 %v6267_v6  ;;  %v2390_v6 = vunpack.c.l.b16 %v2358_v63 }
  0x61   : > { %586 = vmatpush.bf16.msra.mxu0 %v6266_v7  ;;  %6392 = vmatpush.bf16.msra.mxu1 %v6266_v7 }
  0x62   : > { %6393 = vmatpush.bf16.msra.mxu2 %v6266_v7  ;;  %6394 = vmatpush.bf16.msra.mxu3 %v6266_v7  ;;  %v809_v7 = vadd.s32 32, %v6981_v38 }
  0x64   : > { %587 = vmatmul.bf16.vlgmr.msra.gmra.mxu0 %v6250_v8  ;;  %607 = vmatmul.bf16.vlgmr.msra.gmra.mxu1 %v6254_v9  ;;  %v6275_v8 = vld [vmem:[#allocation7 + $0x8] sm:$0xff] }
  0x65   : > { %1865 = vmatpush.bf16.msrb.mxu1 %v6289_v12  ;;  %627 = vmatmul.bf16.vlgmr.msra.gmra.mxu2 %v6258_v13  ;;  %v6291_v9 = vld [vmem:[#allocation7 + $0x88] sm:$0xff]  ;;  %v1445_v12 = vpack.c.b16 %v7027_v0, %v1413_v2  ;;  %v1446_v13 = vpack.c.b16 %v7027_v0, %v1415_v3 }
  0x66   : > { %647 = vmatmul.bf16.vlgmr.msra.gmra.mxu3 %v6262_v14  ;;  %2170 = vmatpush.bf16.msrb.mxu2 %v6281_v16  ;;  %v869_v14 = vand.u32 15, %v809_v7  ;;  %v6302_v16 = vld [vmem:[#allocation7 + $0xe0] sm:$0xff] }
  0x67   : > { %2933 = vmatpush.bf16.msrb.mxu3 %v6297_v17  ;;  %3310 = vmatpush.bf16.msrb.mxu0 %v6305_v52  ;;  %v2420_v17 = vpack.c.b16 %v2390_v6, %v7027_v0 }
  0x68   : > { %vm7035_vm10 = vcmp.ge.s32.totalorder %v869_v14, 1 }
  0x69   : > { %1866 = vmatpush.bf16.msrb.mxu1 %v6288_v15  ;;  %vm1353_vm12 = vmpackc.low %vm7035_vm10, %vm7035_vm10 }
  0x6a   : > { %2171 = vmatpush.bf16.msrb.mxu2 %v6280_v19  ;;  %v6274_v19 = vld [vmem:[#allocation7] sm:$0xff] }
  0x6b   : > { %2934 = vmatpush.bf16.msrb.mxu3 %v6296_v20  ;;  %3311 = vmatpush.bf16.msrb.mxu0 %v6304_v58  ;;  %v6290_v20 = vld [vmem:[#allocation7 + $0x80] sm:$0xff] }
  0x6d   : > { %1867 = vmatpush.bf16.msrb.mxu1 %v6287_v18  ;;  %v6313_v18 = vld [vmem:[#allocation7 + $0x138] sm:$0xff] }
  0x6e   : > { %2172 = vmatpush.bf16.msrb.mxu2 %v6279_v22 }
  0x6f   : > { %2935 = vmatpush.bf16.msrb.mxu3 %v6295_v23  ;;  %3312 = vmatpush.bf16.msrb.mxu0 %v6303_v5  ;;  %v6298_v5 = vld [vmem:[#allocation7 + $0xc0] sm:$0xff] }
  0x71   : > { %1868 = vmatpush.bf16.msrb.mxu1 %v6286_v21 }
  0x72   : > { %2173 = vmatpush.bf16.msrb.mxu2 %v6278_v29  ;;  %v2444_v29 = vshrl.u32 %v2420_v17, 16 }
  0x73   : > { %2936 = vmatpush.bf16.msrb.mxu3 %v6294_v30  ;;  %3313 = vmatpush.bf16.msrb.mxu0 %v6302_v16  ;;  %v2447_v30 = vshll.u32 %v2420_v17, 16 }
  0x74   : > { %592 = vmatmul.bf16.gmra.mxu0 %v6251_v10  ;;  %612 = vmatmul.bf16.gmra.mxu1 %v6255_v11  ;;  %v810_v10 = vadd.s32 40, %v6981_v38  ;;  %v2419_v11 = vpack.c.b16 %v2388_v1, %v7027_v0  ;;  %v2446_v42 = vrot.slane %v2444_v29, 3  ;;  %v2723_v29 = vrot.slane %v9372_v55, 5 }
  0x75   : > { %632 = vmatmul.bf16.gmra.mxu2 %v6259_v26  ;;  %1869 = vmatpush.bf16.msrb.mxu1 %v6285_v27  ;;  %v1466_v26 = vshll.u32 %v1445_v12, 16  ;;  %v1471_v27 = vshrl.u32 %v1446_v13, 16  ;;  %v2449_v43 = vrot.slane %v2447_v30, 4 }
  0x76   : > { %652 = vmatmul.bf16.gmra.mxu3 %v6263_v28  ;;  %2174 = vmatpush.bf16.msrb.mxu2 %v6277_v53  ;;  %v876_v15 = vand.u32 15, %v810_v10  ;;  %v2436_v22 = vshrl.u32 %v2419_v11, 16  ;;  %v2439_v23 = vshll.u32 %v2419_v11, 16  ;;  %v1474_v28 = vshll.u32 %v1446_v13, 16 }
  0x77   : > { %2937 = vmatpush.bf16.msrb.mxu3 %v6293_v54  ;;  %v1468_v39 = vrot.slane %v1466_v26, 5  ;;  %v1473_v40 = vrot.slane %v1471_v27, 4  ;;  %v7058_v52 = vor.u32 %v2449_v43, %v2446_v42  ;;  %v883_v54 = vand.u32 15, %v811_v47 }
  0x78   : > { %vm7039_vm11 = vcmp.le.s32.totalorder %v876_v15, 14  ;;  %v1476_v41 = vrot.slane %v1474_v28, 5  ;;  %v2362_v11 = vsel %vm2330_vm3, 65537, %v9372_v55  ;;  %v1957_v28 = vrot.slane %v9372_v55, 3 }
  0x79   : > { %1870 = vmatpush.bf16.msrb.mxu1 %v6284_v31  ;;  %v6301_v31 = vld [vmem:[#allocation7 + $0xd8] sm:$0xff]  ;;  %vm2328_vm13 = vmpackc.low %vm7039_vm11, %vm7039_vm11  ;;  %vm1227_vm0 = vcmp.ge.s32.totalorder %v883_v54, 1 }
  0x7a   : > { %2175 = vmatpush.bf16.msrb.mxu2 %v6276_v61  ;;  %3314 = vmatpush.bf16.msrb.mxu0 %v6301_v31  ;;  %vm1355_vm2 = vmpackc.low %vm1227_vm0, %vm1227_vm0 }
  0x7b   : > { %2938 = vmatpush.bf16.msrb.mxu3 %v6292_v62  ;;  %v1387_v3 = vsel %vm1355_vm2, 65537, %v9372_v55 }
  0x7d   : > { %1871 = vmatpush.bf16.msrb.mxu1 %v6283_v32  ;;  %v1385_v32 = vsel %vm1353_vm12, 65537, %v9372_v55 }
  0x7e   : > { %2176 = vmatpush.bf16.msrb.mxu2 %v6275_v8  ;;  %3315 = vmatpush.bf16.msrb.mxu0 %v6300_v45  ;;  %v1419_v8 = vunpack.c.l.b16 %v1387_v3 }
  0x7f   : > { %2939 = vmatpush.bf16.msrb.mxu3 %v6291_v9  ;;  %v7080_v9 = vunpack.c.l.b16 %v9372_v55 }
  0x81   : > { %1872 = vmatpush.bf16.msrb.mxu1 %v6282_v4  ;;  %v7077_v4 = vperm.slane %v385_v60, 0  ;;  %v813_v60 = vadd.s32 64, %v6981_v38 }
  0x82   : > { %2177 = vmatpush.bf16.msrb.mxu2 %v6274_v19  ;;  %3316 = vmatpush.bf16.msrb.mxu0 %v6299_v57  ;;  %v2394_v19 = vunpack.c.l.b16 %v2362_v11 }
  0x83   : > { %2940 = vmatpush.bf16.msrb.mxu3 %v6290_v20 }
  0x84   : > { %597 = vmatmul.bf16.gmra.mxu0 %v6252_v24  ;;  %617 = vmatmul.bf16.gmra.mxu1 %v6256_v25  ;;  %v1463_v25 = vshrl.u32 %v1445_v12, 16  ;;  %v7084_v12 = vunpack.c.h.b16 %v9372_v55 }
  0x85   : > { %637 = vmatmul.bf16.gmra.mxu2 %v6260_v35  ;;  %3499 = vmatpush.bf16.msra.mxu1 %v6313_v18  ;;  %v1417_v35 = vunpack.c.l.b16 %v1385_v32  ;;  %v2422_v32 = vpack.c.b16 %v2394_v19, %v7027_v0 }
  0x86   : > { %657 = vmatmul.bf16.gmra.mxu3 %v6264_v36  ;;  %v2360_v36 = vsel %vm2328_vm13, 65537, %v9372_v55  ;;  %v1465_v37 = vrot.slane %v1463_v25, 4  ;;  %3317 = vmatpush.bf16.msrb.mxu0 %v6298_v5 }
  0x87   : > { %v2392_v44 = vunpack.c.l.b16 %v2360_v36  ;;  %v1447_v46 = vpack.c.b16 %v7027_v0, %v1417_v35  ;;  %v2462_v48 = vshrl.u32 %v2422_v32, 16 }
  0x89   : > { %v2421_v53 = vpack.c.b16 %v2392_v44, %v7027_v0  ;;  %v1480_v58 = vshrl.u32 %v1447_v46, 16  ;;  %v1483_v59 = vshll.u32 %v1447_v46, 16  ;;  %v2464_v3 = vrot.slane %v2462_v48, 3 }
  0x8b   : > { %v2453_v1 = vshrl.u32 %v2421_v53, 16  ;;  %v2456_v2 = vshll.u32 %v2421_v53, 16  ;;  %v1482_v6 = vrot.slane %v1480_v58, 4  ;;  %v1485_v7 = vrot.slane %v1483_v59, 5 }
  0x8d   : > { %v2455_v17 = vrot.slane %v2453_v1, 3  ;;  %v2458_v18 = vrot.slane %v2456_v2, 4  ;;  %v7089_v21 = vor.u32 %v1485_v7, %v1482_v6  ;;  %v814_v1 = vadd.s32 72, %v6981_v38 }
  0x8f   : > { %v7111_v31 = vor.u32 %v2458_v18, %v2455_v17  ;;  %v897_v17 = vand.u32 15, %v813_v60 }
  0x91   : > { %v2460_v53 = vsel %vm9370_vm15, %v7058_v52, %v7111_v31  ;;  %vm1229_vm3 = vcmp.ge.s32.totalorder %v897_v17, 1 }
  0x92   : > { %v2586_v19 = vunpack.c.h.b16 %v2460_v53 }
  0x94   : > { %602 = vmatmul.bf16.gmra.mxu0 %v6253_v33  ;;  %622 = vmatmul.bf16.gmra.mxu1 %v6257_v34  ;;  %v2438_v33 = vrot.slane %v2436_v22, 3  ;;  %v2441_v34 = vrot.slane %v2439_v23, 4  ;;  %v1448_v22 = vpack.c.b16 %v7027_v0, %v1419_v8  ;;  %v7093_v23 = vrot.slane %v9372_v55, 4 }
  0x95   : > { %642 = vmatmul.bf16.gmra.mxu2 %v6261_v50  ;;  %v7056_v50 = vor.u32 %v1468_v39, %v1465_v37 }
  0x96   : > { %662 = vmatmul.bf16.gmra.mxu3 %v6265_v51  ;;  %v7054_v49 = vor.u32 %v2441_v34, %v2438_v33  ;;  %v1477_v51 = vor.u32 %v1476_v41, %v1473_v40  ;;  %9562 = vst [vmem:[#allocation20_spill] sm:$0xff] %v7093_v23  ;;  %v1489_v35 = vshrl.u32 %v1448_v22, 16  ;;  %v1492_v36 = vshll.u32 %v1448_v22, 16 }
  0x97   : > { %v3054_v25 = vunpack.c.l.b16 %v7056_v50  ;;  %v3055_v26 = vunpack.c.h.b16 %v7056_v50  ;;  %v7128_v41 = vor.u32 %v1957_v28, %v7093_v23  ;;  %v7135_v43 = vor.u32 %v2723_v29, %v7093_v23 }
  0x98   : > { %v1478_v62 = vsel %vm9396_vm14, %v7056_v50, %v1477_v51  ;;  %v2451_v63 = vsel %vm9370_vm15, %v7054_v49, %v7058_v52  ;;  %v1487_v34 = vsel %vm9396_vm14, %v1477_v51, %v7089_v21  ;;  %v2465_v50 = vshll.u32 %v2422_v32, 16 }
  0x99   : > { %v1605_v10 = vunpack.c.l.b16 %v1478_v62  ;;  %v1606_v13 = vunpack.c.h.b16 %v1478_v62  ;;  %v2578_v14 = vunpack.c.l.b16 %v2451_v63  ;;  %v2579_v16 = vunpack.c.h.b16 %v2451_v63  ;;  %9569 = vst [vmem:[#allocation21_spill] sm:$0xff] %v7128_v41 }
  0x9a   : > { %vm7123_vm10 = vcmp.ne.s32.totalorder %v3054_v25, %v7080_v9  ;;  %9572 = vst [vmem:[#allocation22_spill] sm:$0xff] %v7135_v43  ;;  %vm7138_vm12 = vcmp.ne.s32.totalorder %v3055_v26, %v7084_v12  ;;  %v1612_v46 = vunpack.c.l.b16 %v1487_v34  ;;  %v1613_v47 = vunpack.c.h.b16 %v1487_v34 }
  0x9b   : > { %vm7096_vm4 = vcmp.ne.s32.totalorder %v1605_v10, %v7080_v9  ;;  %vm1610_vm5 = vcmp.ne.s32.totalorder %v1606_v13, %v7084_v12  ;;  %vm2582_vm6 = vcmp.ne.s32.totalorder %v2578_v14, %v7080_v9  ;;  %vm2583_vm7 = vcmp.ne.s32.totalorder %v2579_v16, %v7084_v12  ;;  %vm9369_vm13 = vmpackc.low %vm7138_vm12, %vm7123_vm10  ;;  %v6312_v13 = vld [vmem:[#allocation7 + $0x130] sm:$0xff] }
  0x9c   : > { %vm7118_vm9 = vmpackc.low %vm1610_vm5, %vm7096_vm4  ;;  %v1491_v54 = vrot.slane %v1489_v35, 4  ;;  %v1494_v56 = vrot.slane %v1492_v36, 5  ;;  %v2467_v5 = vrot.slane %v2465_v50, 4  ;;  %3500 = vmatpush.bf16.msra.mxu1 %v6312_v13  ;;  %v904_v22 = vand.u32 15, %v814_v1 }
  0x9d   : > { %vm7130_vm11 = vmpackc.low %vm2583_vm7, %vm2582_vm6  ;;  %vm7183_vm0 = vcmp.ne.s32.totalorder %v1612_v46, %v7080_v9  ;;  %vm7188_vm1 = vcmp.ne.s32.totalorder %v1613_v47, %v7084_v12  ;;  %vm7218_vm6 = vcmp.ne.s32.totalorder %v2586_v19, %v7084_v12 }
  0x9e   : > { %v7170_v16 = vor.u32 %v1494_v56, %v1491_v54  ;;  %v7200_v34 = vor.u32 %v2467_v5, %v2464_v3  ;;  %vm1357_vm4 = vmpackc.low %vm1229_vm3, %vm1229_vm3  ;;  %vm1262_vm5 = vcmp.le.s32.totalorder %v904_v22, 14 }
  0x9f   : > { %v1389_v50 = vsel %vm1357_vm4, 65537, %v9372_v55  ;;  %vm2332_vm7 = vmpackc.low %vm1262_vm5, %vm1262_vm5 }
  0xa0   : > { %vm7238_vm3 = vmpackc.low %vm7188_vm1, %vm7183_vm0 }
  0xe1   : > { %v588_v15 = vpop.f32.mrf.mxu0  ;;  %v7107_v30 = vpop.f32.mrf.mxu1 }
  0xe2   : > { %v7087_v20 = vadd.f32 %v588_v15, %v7077_v4  ;;  %v2585_v15 = vunpack.c.l.b16 %v2460_v53  ;;  %v815_v53 = vadd.s32 80, %v6981_v38  ;;  %v7232_v60 = vadd.f32 %v7107_v30, %v7077_v4 }
  0xe4   : > { %9561 = vst [vmem:[#allocation19_spill] sm:$0xff] %v7087_v20  ;;  %v668_v27 = vpack.c.bf16 %v7087_v20, %v7087_v20  ;;  %vm7206_vm2 = vcmp.ne.s32.totalorder %v2585_v15, %v7080_v9 }
  0xe5   : > { %9585 = vst [vmem:[#allocation25_spill] sm:$0xff] %v7232_v60  ;;  %vm7250_vm4 = vmpackc.low %vm7218_vm6, %vm7206_vm2 }
  0xe6   : > { %v732_v33 = vunpack.c.l.b16 %v668_v27 }
  0xe8   : > { %v764_v40 = vpack.c.b16 %v732_v33, %v732_v33 }
  0xe9   : > { %v590_v45 = vpop.f32.mrf.mxu0  ;;  %v7168_v11 = vpop.f32.mrf.mxu1 }
  0xea   : > { %v7143_v51 = vsel %vm9374_vm8, 0, %v764_v40  ;;  %v7162_v6 = vadd.f32 %v590_v45, %v7077_v4  ;;  %v7213_v40 = vsel %vm9396_vm14, %v7089_v21, %v7170_v16  ;;  %v816_v21 = vadd.s32 88, %v6981_v38 }
  0xeb   : > { %v1769_v57 = vrot.slane %v7143_v51, 4  ;;  %v1717_v58 = vsel %vm7118_vm9, %v7143_v51, 0  ;;  %v2690_v59 = vsel %vm7130_vm11, %v7143_v51, 0  ;;  %v3061_v26 = vsel %vm9369_vm13, %v7143_v51, 0 }
  0xec   : > { %v1963_v61 = vshrl.u32 %v1717_v58, 16  ;;  %v1966_v62 = vshll.u32 %v1717_v58, 16  ;;  %v2726_v63 = vshrl.u32 %v2690_v59, 16  ;;  %v2729_v2 = vshll.u32 %v2690_v59, 16  ;;  %9575 = vst [vmem:[#allocation23_spill] sm:$0xff] %v7162_v6 }
  0xed   : > { %v1770_v52 = vsel %vm9374_vm8, %v7093_v23, %v1769_v57  ;;  %v669_v29 = vpack.c.bf16 %v7162_v6, %v7162_v6  ;;  %v3095_v46 = vshrl.u32 %v3061_v26, 16  ;;  %v3098_v47 = vshll.u32 %v3061_v26, 16 }
  0xee   : > { %1873 = vmatmul.bf16.vlgmr.msrb.gmra.mxu1 %v1770_v52  ;;  %v1965_v7 = vrot.slane %v1963_v61, 3  ;;  %v1968_v8 = vrot.slane %v1966_v62, 4  ;;  %v2728_v10 = vrot.slane %v2726_v63, 4  ;;  %v2731_v14 = vrot.slane %v2729_v2, 5 }
  0xef   : > { %v733_v54 = vunpack.c.l.b16 %v669_v29  ;;  %v7228_v58 = vsel %vm9370_vm15, %v7111_v31, %v7200_v34  ;;  %v1421_v59 = vunpack.c.l.b16 %v1389_v50  ;;  %v9586_v61 = vmov 0 }
  0xf0   : > { %v7172_v18 = vor.u32 %v1968_v8, %v1965_v7  ;;  %v7174_v25 = vor.u32 %v2731_v14, %v2728_v10  ;;  %v9587_v61 = vsel %vm7238_vm3, 4294967295, %v9586_v61  ;;  %v1619_v62 = vunpack.c.l.b16 %v7213_v40 }
  0xf1   : > { %v593_v24 = vpop.f32.mrf.mxu0  ;;  %9588 = vst [vmem:[#allocation26_spill] sm:$0xff] %v9587_v61  ;;  %v2364_v63 = vsel %vm2332_vm7, 65537, %v9372_v55  ;;  %v3097_v1 = vrot.slane %v3095_v46, 3  ;;  %v3100_v52 = vrot.slane %v3098_v47, 4  ;;  %v7254_v2 = vpop.f32.mrf.mxu1  ;;  %v1620_v3 = vunpack.c.h.b16 %v7213_v40 }
  0xf2   : > { %v7195_v32 = vadd.f32 %v593_v24, %v7077_v4  ;;  %v1970_v33 = vsel %vm9370_vm15, %v7128_v41, %v7172_v18  ;;  %v2733_v35 = vsel %vm9396_vm14, %v7135_v43, %v7174_v25  ;;  %v2592_v7 = vunpack.c.l.b16 %v7228_v58 }
  0xf3   : > { %2178 = vmatmul.bf16.vlgmr.msrb.gmra.mxu2 %v1970_v33  ;;  %2941 = vmatmul.bf16.vlgmr.msrb.gmra.mxu3 %v2733_v35  ;;  %v2593_v8 = vunpack.c.h.b16 %v7228_v58  ;;  %v911_v10 = vand.u32 15, %v815_v53  ;;  %v918_v13 = vand.u32 15, %v816_v21  ;;  %v1449_v17 = vpack.c.b16 %v7027_v0, %v1421_v59 }
  0xf4   : > { %9580 = vst [vmem:[#allocation24_spill] sm:$0xff] %v7195_v32  ;;  %v670_v45 = vpack.c.bf16 %v7195_v32, %v7195_v32  ;;  %v2396_v19 = vunpack.c.l.b16 %v2364_v63  ;;  %v3101_v47 = vor.u32 %v3100_v52, %v3097_v1  ;;  %vm7314_vm5 = vcmp.ne.s32.totalorder %v1619_v62, %v7080_v9 }
  0xf5   : > { %vm7281_vm0 = vcmp.ge.s32.totalorder %v911_v10, 1  ;;  %v1501_v63 = vshll.u32 %v1449_v17, 16  ;;  %vm7291_vm1 = vcmp.le.s32.totalorder %v918_v13, 14  ;;  %vm1624_vm7 = vcmp.ne.s32.totalorder %v1620_v3, %v7084_v12 }
  0xf6   : > { %v734_v56 = vunpack.c.l.b16 %v670_v45  ;;  %vm1359_vm2 = vmpackc.low %vm7281_vm0, %vm7281_vm0  ;;  %vm7330_vm13 = vcmp.ne.s32.totalorder %v2592_v7, %v7080_v9  ;;  %v676_v53 = vpack.c.bf16 %v7232_v60, %v7232_v60 }
  0xf7   : > { %vm2334_vm6 = vmpackc.low %vm7291_vm1, %vm7291_vm1  ;;  %vm2597_vm1 = vcmp.ne.s32.totalorder %v2593_v8, %v7084_v12 }
  0xf8   : > { %v7244_v31 = vpack.c.b16 %v734_v56, %v733_v54  ;;  %v1498_v56 = vshrl.u32 %v1449_v17, 16  ;;  %v7311_v17 = vadd.f32 %v7168_v11, %v7077_v4  ;;  %v2366_v7 = vsel %vm2334_vm6, 65537, %v9372_v55  ;;  %vm7359_vm0 = vmpackc.low %vm2597_vm1, %vm7330_vm13 }
  0xf9   : > { %v595_v5 = vpop.f32.mrf.mxu0  ;;  %vm9610_vm13 = vsmask.f32 4352 }
  0xfa   : > { %v1771_v14 = vrot.slane %v7244_v31, 4  ;;  %v3062_v15 = vsel %vm7118_vm9, %v7244_v31, 0  ;;  %v1718_v26 = vsel %vm7238_vm3, %v7244_v31, 0  ;;  %v2691_v27 = vsel %vm7250_vm4, %v7244_v31, 0  ;;  %9597 = vst [vmem:[#allocation29_spill] sm:$0xff] %v7311_v17 }
  0xfb   : > { %v3103_v22 = vshrl.u32 %v3062_v15, 16  ;;  %v3106_v24 = vshll.u32 %v3062_v15, 16  ;;  %v7271_v28 = vadd.f32 %v595_v5, %v7077_v4  ;;  %v1972_v33 = vshrl.u32 %v1718_v26, 16 }
  0xfc   : > { %v7278_v29 = vsel %vm9374_vm8, %v1769_v57, %v1771_v14  ;;  %v1975_v35 = vshll.u32 %v1718_v26, 16  ;;  %v2735_v45 = vshrl.u32 %v2691_v27, 16  ;;  %v2738_v46 = vshll.u32 %v2691_v27, 16 }
  0xfd   : > { %9591 = vst [vmem:[#allocation27_spill] sm:$0xff] %v7271_v28  ;;  %v3105_v36 = vrot.slane %v3103_v22, 3  ;;  %v3108_v40 = vrot.slane %v3106_v24, 4  ;;  %v1974_v48 = vrot.slane %v1972_v33, 3  ;;  %v671_v58 = vpack.c.bf16 %v7271_v28, %v7271_v28 }
  0xfe   : > { %1878 = vmatmul.bf16.gmra.mxu1 %v7278_v29  ;;  %v1977_v50 = vrot.slane %v1975_v35, 4  ;;  %v2737_v54 = vrot.slane %v2735_v45, 4  ;;  %v2740_v57 = vrot.slane %v2738_v46, 5  ;;  %v1500_v15 = vrot.slane %v1498_v56, 4 }
  0xff   : > { %v7285_v21 = vor.u32 %v3108_v40, %v3105_v36  ;;  %v2423_v22 = vpack.c.b16 %v2396_v19, %v7027_v0  ;;  %v7318_v19 = vpop.f32.mrf.mxu1  ;;  %v1503_v33 = vrot.slane %v1501_v63, 5  ;;  %v735_v62 = vunpack.c.l.b16 %v671_v58 }
 0x100   : > { %v7289_v59 = vor.u32 %v1977_v50, %v1974_v48  ;;  %v7297_v10 = vor.u32 %v2740_v57, %v2737_v54  ;;  %v9602_v48 = vmov 0  ;;  %v9605_v56 = vmov 0 }
 0x101   : > { %v598_v1 = vpop.f32.mrf.mxu0  ;;  %v3110_v52 = vsel %vm9370_vm15, %v3101_v47, %v7285_v21  ;;  %v2471_v35 = vshrl.u32 %v2423_v22, 16  ;;  %v2474_v36 = vshll.u32 %v2423_v22, 16  ;;  %v7341_v40 = vor.u32 %v1503_v33, %v1500_v15 }
 0x102   : > { %v7304_v24 = vadd.f32 %v598_v1, %v7077_v4  ;;  %3318 = vmatmul.bf16.vlgmr.msrb.gmra.mxu0 %v3110_v52  ;;  %v1979_v13 = vsel %vm9370_vm15, %v7172_v18, %v7289_v59  ;;  %v2742_v27 = vsel %vm9396_vm14, %v7174_v25, %v7297_v10  ;;  %v1391_v25 = vsel %vm1359_vm2, 65537, %v9372_v55  ;;  %vm7346_vm15 = vmpackc.low %vm1624_vm7, %vm7314_vm5 }
 0x103   : > { %2183 = vmatmul.bf16.gmra.mxu2 %v1979_v13  ;;  %2946 = vmatmul.bf16.gmra.mxu3 %v2742_v27  ;;  %v1423_v45 = vunpack.c.l.b16 %v1391_v25  ;;  %v2473_v3 = vrot.slane %v2471_v35, 3  ;;  %v2476_v47 = vrot.slane %v2474_v36, 4  ;;  %v9603_v48 = vsel %vm7346_vm15, 4294967295, %v9602_v48  ;;  %vm9611_vm2 = vmmov %vm9610_vm13 }
 0x104   : > { %9596 = vst [vmem:[#allocation28_spill] sm:$0xff] %v7304_v24  ;;  %v672_v11 = vpack.c.bf16 %v7304_v24, %v7304_v24  ;;  %v9606_v56 = vsel %vm7359_vm0, 4294967295, %v9605_v56  ;;  %v1505_v58 = vsel %vm9396_vm14, %v7170_v16, %v7341_v40  ;;  %v2398_v63 = vunpack.c.l.b16 %v2366_v7  ;;  %v6311_v7 = vld [vmem:[#allocation7 + $0x128] sm:$0xff]  ;;  %vm9612_vm5 = vmmov %vm9611_vm2 }
 0x105   : > { %9604 = vst [vmem:[#allocation30_spill] sm:$0xff] %v9603_v48  ;;  %v1450_v8 = vpack.c.b16 %v7027_v0, %v1423_v45  ;;  %v817_v5 = vadd.s32 96, %v6981_v38  ;;  %v7374_v22 = vor.u32 %v2476_v47, %v2473_v3  ;;  %v1627_v55 = vunpack.c.h.b16 %v1505_v58  ;;  %3501 = vmatpush.bf16.msra.mxu1 %v6311_v7  ;;  %v7430_v7 = vpop.f32.mrf.mxu2 }
 0x106   : > { %v736_v46 = vunpack.c.l.b16 %v672_v11  ;;  %9607 = vst [vmem:[#allocation31_spill] sm:$0xff] %v9606_v56 }
 0x107   : > { %v7389_v11 = vpop.f32.mrf.mxu1  ;;  %v1507_v18 = vshrl.u32 %v1450_v8, 16  ;;  %vm1631_vm1 = vcmp.ne.s32.totalorder %v1627_v55, %v7084_v12  ;;  %v9617_v55 = vmov 0 }
 0x108   : > { %v7350_v50 = vpack.c.b16 %v736_v46, %v735_v62 }
 0x109   : > { %v600_v54 = vpop.f32.mrf.mxu0 }
 0x10a   : > { %v9371_v1 = vrot.slane %v7350_v50, 4  ;;  %v3063_v52 = vsel %vm7238_vm3, %v7350_v50, 0  ;;  %v1719_v15 = vsel %vm7346_vm15, %v7350_v50, 0  ;;  %v7377_v16 = vadd.f32 %v600_v54, %v7077_v4 }
 0x10b   : > { %v3112_v13 = vshrl.u32 %v3063_v52, 16  ;;  %v3115_v26 = vshll.u32 %v3063_v52, 16  ;;  %v1981_v27 = vshrl.u32 %v1719_v15, 16  ;;  %v1984_v33 = vshll.u32 %v1719_v15, 16 }
 0x10c   : > { %9608 = vst [vmem:[#allocation32_spill] sm:$0xff] %v7377_v16  ;;  %v7384_v35 = vsel %vm9374_vm8, %v1771_v14, %v9371_v1  ;;  %v2692_v36 = vsel %vm7359_vm0, %v7350_v50, 0  ;;  %v2478_v14 = vsel %vm9610_vm13, %v7200_v34, %v7374_v22  ;;  %v925_v54 = vand.u32 15, %v817_v5 }
 0x10d   : > { %9609 = vst [vmem:[#allocation33_spill] sm:$0xff] %v7384_v35  ;;  %v3114_v25 = vrot.slane %v3112_v13, 3  ;;  %v3117_v62 = vrot.slane %v3115_v26, 4  ;;  %v1983_v45 = vrot.slane %v1981_v27, 3  ;;  %v1986_v46 = vrot.slane %v1984_v33, 4 }
 0x10e   : > { %1883 = vmatmul.bf16.gmra.mxu1 %v7384_v35  ;;  %v2744_v3 = vshrl.u32 %v2692_v36, 16  ;;  %v2747_v47 = vshll.u32 %v2692_v36, 16  ;;  %v1510_v1 = vshll.u32 %v1450_v8, 16  ;;  %v2424_v13 = vpack.c.b16 %v2398_v63, %v7027_v0 }
 0x10f   : > { %v7395_v52 = vor.u32 %v3117_v62, %v3114_v25  ;;  %v7397_v15 = vor.u32 %v1986_v46, %v1983_v45  ;;  %v1626_v33 = vunpack.c.l.b16 %v1505_v58  ;;  %v673_v36 = vpack.c.bf16 %v7377_v16, %v7377_v16 }
 0x110   : > { %v2746_v26 = vrot.slane %v2744_v3, 4  ;;  %v2749_v27 = vrot.slane %v2747_v47, 5  ;;  %v1509_v8 = vrot.slane %v1507_v18, 4  ;;  %v2599_v58 = vunpack.c.l.b16 %v2478_v14 }
 0x111   : > { %v603_v57 = vpop.f32.mrf.mxu0  ;;  %v3119_v34 = vsel %vm9611_vm2, %v7285_v21, %v7395_v52  ;;  %v1988_v5 = vsel %vm9612_vm5, %v7289_v59, %v7397_v15  ;;  %v2600_v62 = vunpack.c.h.b16 %v2478_v14  ;;  %v1512_v45 = vrot.slane %v1510_v1, 5 }
 0x112   : > { %v7409_v63 = vadd.f32 %v603_v57, %v7077_v4  ;;  %3323 = vmatmul.bf16.gmra.mxu0 %v3119_v34  ;;  %v7411_v25 = vor.u32 %v2749_v27, %v2746_v26  ;;  %v2480_v46 = vshrl.u32 %v2424_v13, 16  ;;  %v2483_v3 = vshll.u32 %v2424_v13, 16 }
 0x113   : > { %2188 = vmatmul.bf16.gmra.mxu2 %v1988_v5  ;;  %vm7413_vm6 = vcmp.ge.s32.totalorder %v925_v54, 1  ;;  %vm1630_vm7 = vcmp.ne.s32.totalorder %v1626_v33, %v7080_v9  ;;  %v7426_v57 = vadd.f32 %v7254_v2, %v7077_v4  ;;  %v7428_v1 = vor.u32 %v1512_v45, %v1509_v8 }
 0x114   : > { %9613 = vst [vmem:[#allocation34_spill] sm:$0xff] %v7409_v63  ;;  %v674_v21 = vpack.c.bf16 %v7409_v63, %v7409_v63  ;;  %v2751_v59 = vsel %vm9396_vm14, %v7297_v10, %v7411_v25  ;;  %v2482_v18 = vrot.slane %v2480_v46, 3  ;;  %v2485_v14 = vrot.slane %v2483_v3, 4  ;;  %v620_v10 = vpop.f32.mrf.mxu1  ;;  %vm1361_vm5 = vmpackc.low %vm7413_vm6, %vm7413_vm6 }
 0x115   : > { %9616 = vst [vmem:[#allocation35_spill] sm:$0xff] %v7426_v57  ;;  %2951 = vmatmul.bf16.gmra.mxu3 %v2751_v59  ;;  %v737_v54 = vunpack.c.l.b16 %v673_v36  ;;  %vm2603_vm13 = vcmp.ne.s32.totalorder %v2599_v58, %v7080_v9  ;;  %vm2604_vm2 = vcmp.ne.s32.totalorder %v2600_v62, %v7084_v12  ;;  %vm7437_vm8 = vmpackc.low %vm1631_vm1, %vm1630_vm7  ;;  %v1514_v2 = vsel %vm9396_vm14, %v7341_v40, %v7428_v1 }
 0x116   : > { %v738_v13 = vunpack.c.l.b16 %v674_v21  ;;  %v9618_v55 = vsel %vm7437_vm8, 4294967295, %v9617_v55  ;;  %v740_v26 = vunpack.c.l.b16 %v676_v53  ;;  %v9620_v27 = vpack.c.bf16 %v7311_v17, %v7311_v17  ;;  %vm7458_vm6 = vmpackc.low %vm2604_vm2, %vm2603_vm13 }
 0x117   : > { %9619 = vst [vmem:[#allocation36_spill] sm:$0xff] %v9618_v55  ;;  %v7454_v34 = vor.u32 %v2485_v14, %v2482_v18  ;;  %v678_v5 = vpack.c.bf16 %v7426_v57, %v7426_v57  ;;  %v9621_v58 = vmov 0  ;;  %v1633_v40 = vunpack.c.l.b16 %v1514_v2 }
 0x118   : > { %v7450_v33 = vunpack.c.l.b16 %v9620_v27  ;;  %v7452_v36 = vpack.c.b16 %v738_v13, %v737_v54  ;;  %v9622_v58 = vsel %vm7458_vm6, 4294967295, %v9621_v58  ;;  %v1634_v62 = vunpack.c.h.b16 %v1514_v2 }
 0x119   : > { %v605_v8 = vpop.f32.mrf.mxu0  ;;  %9623 = vst [vmem:[#allocation37_spill] sm:$0xff] %v9622_v58  ;;  %v9624_v53 = vmov 0   ;;  %v9626_v2 = vrot.slane %v7350_v50, 4  ;;  %vm9627_vm7 = vcmask 1043456   ;;  %vm9629_vm1 = vsmask.f32 4352 }
 0x11a   : > { %v1393_v45 = vsel %vm1361_vm5, 65537, %v9624_v53  ;;  %v7464_v46 = vadd.f32 %v605_v8, %v7077_v4  ;;  %v9381_v3 = vrot.slane %v7452_v36, 4  ;;  %v3064_v47 = vsel %vm7346_vm15, %v7452_v36, 0 }
 0x11b   : > { %v1720_v21 = vsel %vm7437_vm8, %v7452_v36, 0  ;;  %v3121_v59 = vshrl.u32 %v3064_v47, 16  ;;  %v3124_v18 = vshll.u32 %v3064_v47, 16  ;;  %v2693_v8 = vsel %vm7458_vm6, %v7452_v36, 0 }
 0x11c   : > { %9625 = vst [vmem:[#allocation38_spill] sm:$0xff] %v7464_v46  ;;  %v1990_v14 = vshrl.u32 %v1720_v21, 16  ;;  %v1993_v54 = vshll.u32 %v1720_v21, 16  ;;  %v675_v13 = vpack.c.bf16 %v7464_v46, %v7464_v46  ;;  %v7480_v27 = vsel %vm9627_vm7, %v9626_v2, %v9381_v3  ;;  %v7488_v46 = vpop.f32.mrf.mxu2  ;;  %vm9635_vm7 = vmmov %vm9629_vm1 }
 0x11d   : > { %9628 = vst [vmem:[#allocation39_spill] sm:$0xff] %v7480_v27  ;;  %v2487_v47 = vsel %vm9629_vm1, %v7374_v22, %v7454_v34  ;;  %v3123_v57 = vrot.slane %v3121_v59, 3  ;;  %v3126_v21 = vrot.slane %v3124_v18, 4  ;;  %v2753_v16 = vshrl.u32 %v2693_v8, 16 }
 0x11e   : > { %v1992_v17 = vrot.slane %v1990_v14, 3  ;;  %v1995_v60 = vrot.slane %v1993_v54, 4  ;;  %v739_v63 = vunpack.c.l.b16 %v675_v13  ;;  %1888 = vmatmul.bf16.gmra.mxu1 %v7480_v27  ;;  %v2756_v2 = vshll.u32 %v2693_v8, 16  ;;  %v623_v14 = vpop.f32.mrf.mxu1 }
 0x11f   : > { %v1425_v3 = vunpack.c.l.b16 %v1393_v45  ;;  %v7491_v24 = vor.u32 %v3126_v21, %v3123_v57  ;;  %vm1637_vm13 = vcmp.ne.s32.totalorder %v1633_v40, %v7080_v9  ;;  %vm1638_vm2 = vcmp.ne.s32.totalorder %v1634_v62, %v7084_v12 }
 0x120   : > { %v7493_v28 = vor.u32 %v1995_v60, %v1992_v17  ;;  %v7497_v22 = vpack.c.b16 %v740_v26, %v739_v63  ;;  %v2755_v59 = vrot.slane %v2753_v16, 4  ;;  %v2758_v18 = vrot.slane %v2756_v2, 5  ;;  %vm7499_vm5 = vmpackc.low %vm1638_vm2, %vm1637_vm13  ;;  %v648_v2 = vpop.f32.mrf.mxu3 }
 0x121   : > { %v9631_v54 = vmov 0  ;;  %v2606_v13 = vunpack.c.l.b16 %v2487_v47  ;;  %v7505_v57 = vadd.f32 %v7318_v19, %v7077_v4  ;;  %v3128_v60 = vsel %vm9635_vm7, %v7395_v52, %v7491_v24 }
 0x122   : > { %9630 = vst [vmem:[#allocation40_spill] sm:$0xff] %v7497_v22  ;;  %v9632_v54 = vsel %vm7499_vm5, 4294967295, %v9631_v54  ;;  %v1997_v17 = vsel %vm9629_vm1, %v7397_v15, %v7493_v28  ;;  %v2607_v16 = vunpack.c.h.b16 %v2487_v47  ;;  %v742_v63 = vunpack.c.l.b16 %v678_v5  ;;  %3328 = vmatmul.bf16.gmra.mxu0 %v3128_v60 }
 0x123   : > { %9633 = vst [vmem:[#allocation41_spill] sm:$0xff] %v9632_v54  ;;  %v7515_v26 = vadd.f32 %v7389_v11, %v7077_v4  ;;  %v7517_v40 = vor.u32 %v2758_v18, %v2755_v59  ;;  %v3065_v19 = vsel %vm7437_vm8, %v7497_v22, 0  ;;  %2193 = vmatmul.bf16.gmra.mxu2 %v1997_v17  ;;  %v7523_v52 = vadd.f32 %v620_v10, %v7077_v4 }
 0x124   : > { %9634 = vst [vmem:[#allocation42_spill] sm:$0xff] %v7505_v57  ;;  %v7526_v62 = vadd.f32 %v623_v14, %v7077_v4  ;;  %v1721_v15 = vsel %vm7499_vm5, %v7497_v22, 0  ;;  %v818_v11 = vadd.s32 104, %v6981_v38  ;;  %vm2610_vm13 = vcmp.ne.s32.totalorder %v2606_v13, %v7080_v9  ;;  %v7549_v14 = vpop.f32.mrf.mxu2 }
 0x125   : > { %9636 = vst [vmem:[#allocation43_spill] sm:$0xff] %v7515_v26  ;;  %v2760_v5 = vsel %vm9396_vm14, %v7411_v25, %v7517_v40  ;;  %vm2611_vm2 = vcmp.ne.s32.totalorder %v2607_v16, %v7084_v12  ;;  %v1451_v10 = vpack.c.b16 %v7027_v0, %v1425_v3  ;;  %v679_v45 = vpack.c.bf16 %v7505_v57, %v7505_v57 }
 0x126   : > { %9637 = vst [vmem:[#allocation44_spill] sm:$0xff] %v7523_v52  ;;  %2956 = vmatmul.bf16.gmra.mxu3 %v2760_v5  ;;  %v3130_v8 = vshrl.u32 %v3065_v19, 16  ;;  %v3133_v47 = vshll.u32 %v3065_v19, 16  ;;  %vm7540_vm7 = vmpackc.low %vm2611_vm2, %vm2610_vm13  ;;  %v9639_v21 = vmov 0  ;;  %v680_v25 = vpack.c.bf16 %v7515_v26, %v7515_v26 }
 0x127   : > { %9638 = vst [vmem:[#allocation45_spill] sm:$0xff] %v7526_v62  ;;  %v9640_v21 = vsel %vm7540_vm7, 4294967295, %v9639_v21  ;;  %v1999_v59 = vshrl.u32 %v1721_v15, 16  ;;  %v2002_v18 = vshll.u32 %v1721_v15, 16  ;;  %v2694_v3 = vsel %vm7540_vm7, %v7497_v22, 0 }
 0x128   : > { %9641 = vst [vmem:[#allocation46_spill] sm:$0xff] %v9640_v21  ;;  %v681_v13 = vpack.c.bf16 %v7523_v52, %v7523_v52  ;;  %v682_v60 = vpack.c.bf16 %v7526_v62, %v7526_v62  ;;  %v2762_v17 = vshrl.u32 %v2694_v3, 16  ;;  %v7557_v16 = vadd.f32 %v7430_v7, %v7077_v4 }
 0x129   : > { %v7560_v19 = vpack.c.b16 %v742_v63, %v7450_v33  ;;  %v2765_v15 = vshll.u32 %v2694_v3, 16  ;;  %v1516_v5 = vshrl.u32 %v1451_v10, 16  ;;  %v932_v26 = vand.u32 15, %v818_v11 }
 0x12a   : > { %9642 = vst [vmem:[#allocation47_spill] sm:$0xff] %v7557_v16  ;;  %v1777_v57 = vrot.slane %v7497_v22, 4  ;;  %v3132_v32 = vrot.slane %v3130_v8, 3  ;;  %v3135_v6 = vrot.slane %v3133_v47, 4  ;;  %v7564_v52 = vadd.f32 %v648_v2, %v7077_v4 }
 0x12b   : > { %9643 = vst [vmem:[#allocation48_spill] sm:$0xff] %v7560_v19  ;;  %v743_v20 = vunpack.c.l.b16 %v679_v45  ;;  %v744_v62 = vunpack.c.l.b16 %v680_v25  ;;  %v2001_v43 = vrot.slane %v1999_v59, 3  ;;  %v2004_v23 = vrot.slane %v2002_v18, 4 }
 0x12c   : > { %9644 = vst [vmem:[#allocation49_spill] sm:$0xff] %v7564_v52  ;;  %v745_v41 = vunpack.c.l.b16 %v681_v13  ;;  %v746_v7 = vunpack.c.l.b16 %v682_v60  ;;  %v2764_v21 = vrot.slane %v2762_v17, 4  ;;  %v684_v33 = vpack.c.bf16 %v7557_v16, %v7557_v16  ;;  %v7586_v60 = vpop.f32.mrf.mxu2 }
 0x12d   : > { %v2767_v63 = vrot.slane %v2765_v15, 5  ;;  %v1518_v3 = vrot.slane %v1516_v5, 4  ;;  %v1519_v11 = vshll.u32 %v1451_v10, 16  ;;  %vm1266_vm1 = vcmp.le.s32.totalorder %v932_v26, 14  ;;  %v625_v10 = vpop.f32.mrf.mxu1  ;;  %v650_v15 = vpop.f32.mrf.mxu3 }
 0x12e   : > { %v9645_v8 = vrot.slane %v7452_v36, 4  ;;  %vm9646_vm13 = vcmask 1043456   ;;  %v7575_v45 = vor.u32 %v3135_v6, %v3132_v32  ;;  %v692_v2 = vpack.c.bf16 %v7564_v52, %v7564_v52  ;;  %vm2336_vm2 = vmpackc.low %vm1266_vm1, %vm1266_vm1  ;;  %v6310_v6 = vld [vmem:[#allocation7 + $0x120] sm:$0xff] }
 0x12f   : > { %v9397_v25 = vrot.slane %v7560_v19, 4  ;;  %v7580_v59 = vpack.c.b16 %v744_v62, %v743_v20  ;;  %v7583_v26 = vor.u32 %v2004_v23, %v2001_v43  ;;  %v1521_v18 = vrot.slane %v1519_v11, 5  ;;  %3502 = vmatpush.bf16.msra.mxu1 %v6310_v6 }
 0x130   : > { %v7573_v47 = vsel %vm9646_vm13, %v9645_v8, %v1777_v57  ;;  %v2368_v13 = vsel %vm2336_vm2, 65537, %v9624_v53  ;;  %v7588_v32 = vpack.c.b16 %v746_v7, %v745_v41  ;;  %v7590_v17 = vunpack.c.l.b16 %v684_v33 }
 0x131   : > { %9647 = vst [vmem:[#allocation50_spill] sm:$0xff] %v7573_v47  ;;  %1893 = vmatmul.bf16.gmra.mxu1 %v7573_v47  ;;  %v3066_v20 = vsel %vm7499_vm5, %v7560_v19, 0  ;;  %v2400_v62 = vunpack.c.l.b16 %v2368_v13  ;;  %v7595_v5 = vor.u32 %v2767_v63, %v2764_v21  ;;  %v7599_v23 = vadd.f32 %v7488_v46, %v7077_v4 }
 0x132   : > { %9648 = vst [vmem:[#allocation51_spill] sm:$0xff] %v7580_v59  ;;  %v7602_v43 = vadd.f32 %v650_v15, %v7077_v4  ;;  %v7604_v11 = vor.u32 %v1521_v18, %v1518_v3  ;;  %vm9652_vm1 = vsmask.f32 4352  ;;  %v7609_v7 = vunpack.c.l.b16 %v692_v2 }
 0x133   : > { %9649 = vst [vmem:[#allocation52_spill] sm:$0xff] %v7588_v32  ;;  %v3137_v41 = vsel %vm9652_vm1, %v7491_v24, %v7575_v45  ;;  %v7612_v33 = vadd.f32 %v625_v10, %v7077_v4  ;;  %v2425_v21 = vpack.c.b16 %v2400_v62, %v7027_v0  ;;  %vm9654_vm13 = vmmov %vm9652_vm1  ;;  %v3139_v63 = vshrl.u32 %v3066_v20, 16 }
 0x134   : > { %9650 = vst [vmem:[#allocation53_spill] sm:$0xff] %v7599_v23  ;;  %3333 = vmatmul.bf16.gmra.mxu0 %v3137_v41  ;;  %v2006_v46 = vsel %vm9654_vm13, %v7493_v28, %v7583_v26  ;;  %v3142_v3 = vshll.u32 %v3066_v20, 16  ;;  %v1523_v8 = vsel %vm9396_vm14, %v7428_v1, %v7604_v11  ;;  %v2769_v10 = vsel %vm9396_vm14, %v7517_v40, %v7595_v5 }
 0x135   : > { %9651 = vst [vmem:[#allocation54_spill] sm:$0xff] %v7602_v43  ;;  %2198 = vmatmul.bf16.gmra.mxu2 %v2006_v46  ;;  %v1640_v24 = vunpack.c.l.b16 %v1523_v8  ;;  %v1641_v2 = vunpack.c.h.b16 %v1523_v8  ;;  %v2489_v18 = vshrl.u32 %v2425_v21, 16  ;;  %v2492_v13 = vshll.u32 %v2425_v21, 16  ;;  %v653_v16 = vpop.f32.mrf.mxu3 }
 0x136   : > { %9653 = vst [vmem:[#allocation55_spill] sm:$0xff] %v7612_v33  ;;  %v685_v6 = vpack.c.bf16 %v7599_v23, %v7599_v23  ;;  %v693_v28 = vpack.c.bf16 %v7602_v43, %v7602_v43  ;;  %v819_v15 = vadd.s32 112, %v6981_v38  ;;  %2961 = vmatmul.bf16.gmra.mxu3 %v2769_v10  ;;  %vm9655_vm13 = vcmask 1043456  }
 0x137   : > { %vm1644_vm2 = vcmp.ne.s32.totalorder %v1640_v24, %v7080_v9  ;;  %vm1645_vm1 = vcmp.ne.s32.totalorder %v1641_v2, %v7084_v12  ;;  %v2491_v1 = vrot.slane %v2489_v18, 3  ;;  %v2494_v20 = vrot.slane %v2492_v13, 4 }
 0x138   : > { %v7636_v40 = vsel %vm9655_vm13, %v1777_v57, %v9397_v25  ;;  %v683_v62 = vpack.c.bf16 %v7612_v33, %v7612_v33  ;;  %vm7640_vm14 = vmpackc.low %vm1645_vm1, %vm1644_vm2  ;;  %v9657_v41 = vmov 0  ;;  %v939_v21 = vand.u32 15, %v819_v15  ;;  %v7650_v57 = vpop.f32.mrf.mxu2 }
 0x139   : > { %9656 = vst [vmem:[#allocation56_spill] sm:$0xff] %v7636_v40  ;;  %v9658_v41 = vsel %vm7640_vm14, 4294967295, %v9657_v41  ;;  %v820_v46 = vadd.s32 120, %v6981_v38  ;;  %v3141_v8 = vrot.slane %v3139_v63, 3  ;;  %v3144_v24 = vrot.slane %v3142_v3, 4 }
 0x13a   : > { %9659 = vst [vmem:[#allocation57_spill] sm:$0xff] %v9658_v41  ;;  %v1722_v2 = vsel %vm7640_vm14, %v7560_v19, 0  ;;  %v7648_v18 = vor.u32 %v2494_v20, %v2491_v1  ;;  %v7652_v13 = vunpack.c.l.b16 %v685_v6  ;;  %v7654_v10 = vunpack.c.l.b16 %v693_v28 }
 0x13b   : > { %v2008_v25 = vshrl.u32 %v1722_v2, 16  ;;  %v2011_v43 = vshll.u32 %v1722_v2, 16  ;;  %vm9660_vm2 = vsmask.f32 4352  ;;  %v7661_v63 = vadd.f32 %v7549_v14, %v7077_v4 }
 0x13c   : > { %v2496_v15 = vsel %vm9660_vm2, %v7454_v34, %v7648_v18  ;;  %vm1235_vm1 = vcmp.ge.s32.totalorder %v939_v21, 1  ;;  %v946_v3 = vand.u32 15, %v820_v46  ;;  %v747_v6 = vunpack.c.l.b16 %v683_v62 }
 0x13d   : > { %9661 = vst [vmem:[#allocation58_spill] sm:$0xff] %v7661_v63  ;;  %v2010_v1 = vrot.slane %v2008_v25, 3  ;;  %v2013_v20 = vrot.slane %v2011_v43, 4  ;;  %v2613_v52 = vunpack.c.l.b16 %v2496_v15  ;;  %v2614_v23 = vunpack.c.h.b16 %v2496_v15  ;;  %vm1363_vm13 = vmpackc.low %vm1235_vm1, %vm1235_vm1 }
 0x13e   : > { %v7663_v28 = vor.u32 %v3144_v24, %v3141_v8  ;;  %v1395_v2 = vsel %vm1363_vm13, 65537, %v9624_v53  ;;  %vm1268_vm5 = vcmp.le.s32.totalorder %v946_v3, 14  ;;  %v3067_v34 = vsel %vm7640_vm14, %v7580_v59, 0 }
 0x13f   : > { %vm2617_vm2 = vcmp.ne.s32.totalorder %v2613_v52, %v7080_v9  ;;  %vm2618_vm7 = vcmp.ne.s32.totalorder %v2614_v23, %v7084_v12  ;;  %v1427_v14 = vunpack.c.l.b16 %v1395_v2  ;;  %vm2338_vm8 = vmpackc.low %vm1268_vm5, %vm1268_vm5  ;;  %v7671_v25 = vor.u32 %v2013_v20, %v2010_v1 }
 0x140   : > { %vm7673_vm1 = vmpackc.low %vm2618_vm7, %vm2617_vm2  ;;  %v9662_v43 = vmov 0  ;;  %v686_v62 = vpack.c.bf16 %v7661_v63, %v7661_v63  ;;  %v7680_v21 = vadd.f32 %v653_v16, %v7077_v4  ;;  %v2370_v52 = vsel %vm2338_vm8, 65537, %v9624_v53 }
 0x141   : > { %v9663_v43 = vsel %vm7673_vm1, 4294967295, %v9662_v43  ;;  %1898 = vmatmul.bf16.gmra.mxu1 %v7636_v40  ;;  %v2695_v23 = vsel %vm7673_vm1, %v7560_v19, 0  ;;  %v7689_v46 = vadd.f32 %v7586_v60, %v7077_v4  ;;  %v1452_v8 = vpack.c.b16 %v7027_v0, %v1427_v14  ;;  %v640_v14 = vpop.f32.mrf.mxu2 }
 0x142   : > { %9664 = vst [vmem:[#allocation59_spill] sm:$0xff] %v9663_v43  ;;  %v2402_v24 = vunpack.c.l.b16 %v2370_v52  ;;  %vm9667_vm5 = vsmask.f32 4352  ;;  %v2771_v15 = vshrl.u32 %v2695_v23, 16  ;;  %v2774_v3 = vshll.u32 %v2695_v23, 16 }
 0x143   : > { %9665 = vst [vmem:[#allocation60_spill] sm:$0xff] %v7680_v21  ;;  %v3146_v16 = vsel %vm9667_vm5, %v7575_v45, %v7663_v28  ;;  %v3148_v1 = vshrl.u32 %v3067_v34, 16  ;;  %v3151_v20 = vshll.u32 %v3067_v34, 16  ;;  %v1525_v2 = vshrl.u32 %v1452_v8, 16  ;;  %vm9668_vm8 = vmmov %vm9667_vm5 }
 0x144   : > { %9666 = vst [vmem:[#allocation61_spill] sm:$0xff] %v7689_v46  ;;  %v1528_v63 = vshll.u32 %v1452_v8, 16  ;;  %v2426_v33 = vpack.c.b16 %v2402_v24, %v7027_v0  ;;  %v2015_v60 = vsel %vm9668_vm8, %v7583_v26, %v7671_v25  ;;  %v2773_v41 = vrot.slane %v2771_v15, 4  ;;  %3338 = vmatmul.bf16.gmra.mxu0 %v3146_v16 }
 0x145   : > { %v2776_v43 = vrot.slane %v2774_v3, 5  ;;  %v821_v52 = vadd.s32 128, %v6981_v38  ;;  %v1527_v40 = vrot.slane %v1525_v2, 4  ;;  %2203 = vmatmul.bf16.gmra.mxu2 %v2015_v60  ;;  %v687_v8 = vpack.c.bf16 %v7689_v46, %v7689_v46 }
 0x146   : > { %v1530_v45 = vrot.slane %v1528_v63, 5  ;;  %v2498_v54 = vshrl.u32 %v2426_v33, 16  ;;  %v2501_v23 = vshll.u32 %v2426_v33, 16  ;;  %v9420_v24 = vrot.slane %v7580_v59, 4  ;;  %v7715_v63 = vpop.f32.mrf.mxu3 }
 0x147   : > { %v7700_v34 = vor.u32 %v2776_v43, %v2773_v41  ;;  %v3150_v47 = vrot.slane %v3148_v1, 3  ;;  %v3153_v26 = vrot.slane %v3151_v20, 4  ;;  %v7708_v16 = vpack.c.b16 %v7590_v17, %v747_v6 }
 0x148   : > { %v7705_v15 = vor.u32 %v1530_v45, %v1527_v40  ;;  %v2500_v3 = vrot.slane %v2498_v54, 3  ;;  %v2503_v55 = vrot.slane %v2501_v23, 4  ;;  %vm9670_vm7 = vsmask.f32 3328 }
 0x149   : > { %9669 = vst [vmem:[#allocation62_spill] sm:$0xff] %v7708_v16  ;;  %v2778_v33 = vsel %vm9670_vm7, %v7595_v5, %v7700_v34  ;;  %v7713_v41 = vunpack.c.l.b16 %v686_v62  ;;  %v7719_v43 = vadd.f32 %v7650_v57, %v7077_v4  ;;  %vm9672_vm13 = vmmov %vm9670_vm7  ;;  %v953_v17 = vand.u32 15, %v821_v52 }
 0x14a   : > { %2966 = vmatmul.bf16.gmra.mxu3 %v2778_v33  ;;  %v1532_v54 = vsel %vm9672_vm13, %v7604_v11, %v7705_v15  ;;  %v7724_v40 = vor.u32 %v2503_v55, %v2500_v3  ;;  %v822_v6 = vadd.s32 136, %v6981_v38  ;;  %v7727_v1 = vunpack.c.l.b16 %v687_v8 }
 0x14b   : > { %9671 = vst [vmem:[#allocation63_spill] sm:$0xff] %v7719_v43  ;;  %v9673_v5 = vrot.slane %v7560_v19, 4  ;;  %vm9674_vm2 = vcmask 1043456   ;;  %v1647_v57 = vunpack.c.l.b16 %v1532_v54  ;;  %v1648_v20 = vunpack.c.h.b16 %v1532_v54 }
 0x14c   : > { %v7736_v2 = vor.u32 %v3153_v26, %v3150_v47  ;;  %v2505_v55 = vsel %vm9667_vm5, %v7648_v18, %v7724_v40  ;;  %vm1237_vm8 = vcmp.ge.s32.totalorder %v953_v17, 1  ;;  %v960_v11 = vand.u32 15, %v822_v6 }
 0x14d   : > { %v7734_v62 = vsel %vm9674_vm2, %v9673_v5, %v9420_v24  ;;  %vm1651_vm7 = vcmp.ne.s32.totalorder %v1647_v57, %v7080_v9  ;;  %vm1652_vm13 = vcmp.ne.s32.totalorder %v1648_v20, %v7084_v12  ;;  %v2620_v60 = vunpack.c.l.b16 %v2505_v55  ;;  %vm1365_vm14 = vmpackc.low %vm1237_vm8, %vm1237_vm8 }
 0x14e   : > { %9675 = vst [vmem:[#allocation64_spill] sm:$0xff] %v7734_v62  ;;  %v2621_v52 = vunpack.c.h.b16 %v2505_v55  ;;  %vm7743_vm1 = vmpackc.low %vm1652_vm13, %vm1651_vm7  ;;  %v9676_v45 = vmov 0  ;;  %v688_v47 = vpack.c.bf16 %v7719_v43, %v7719_v43  ;;  %v7750_v23 = vadd.f32 %v640_v14, %v7077_v4  ;;  %v643_v14 = vpop.f32.mrf.mxu2  ;;  %v7783_v24 = vpop.f32.mrf.mxu3 }
 0x14f   : > { %v9677_v45 = vsel %vm7743_vm1, 4294967295, %v9676_v45  ;;  %v1397_v18 = vsel %vm1365_vm14, 65537, %v9624_v53  ;;  %vm7753_vm2 = vcmp.le.s32.totalorder %v960_v11, 14  ;;  %v1723_v26 = vsel %vm7743_vm1, %v7580_v59, 0 }
 0x150   : > { %9678 = vst [vmem:[#allocation65_spill] sm:$0xff] %v9677_v45  ;;  %vm2624_vm5 = vcmp.ne.s32.totalorder %v2620_v60, %v7080_v9  ;;  %vm2625_vm8 = vcmp.ne.s32.totalorder %v2621_v52, %v7084_v12  ;;  %v3068_v3 = vsel %vm7743_vm1, %v7588_v32, 0  ;;  %vm2340_vm14 = vmpackc.low %vm7753_vm2, %vm7753_vm2  ;;  %vm9682_vm7 = vsmask.f32 4352 }
 0x151   : > { %9679 = vst [vmem:[#allocation66_spill] sm:$0xff] %v7750_v23  ;;  %v3155_v33 = vsel %vm9682_vm7, %v7663_v28, %v7736_v2  ;;  %v2017_v54 = vshrl.u32 %v1723_v26, 16  ;;  %v2020_v17 = vshll.u32 %v1723_v26, 16  ;;  %vm7771_vm13 = vmpackc.low %vm2625_vm8, %vm2624_vm5  ;;  %v9683_v6 = vmov 0  ;;  %1903 = vmatmul.bf16.gmra.mxu1 %v7734_v62  ;;  %v6309_v26 = vld [vmem:[#allocation7 + $0x118] sm:$0xff] }
 0x152   : > { %v9684_v6 = vsel %vm7771_vm13, 4294967295, %v9683_v6  ;;  %v7776_v5 = vadd.f32 %v643_v14, %v7077_v4  ;;  %v2696_v57 = vsel %vm7771_vm13, %v7580_v59, 0  ;;  %v3157_v20 = vshrl.u32 %v3068_v3, 16  ;;  %3503 = vmatpush.bf16.msra.mxu1 %v6309_v26  ;;  %vm9687_vm2 = vmmov %vm9682_vm7 }
 0x153   : > { %9685 = vst [vmem:[#allocation67_spill] sm:$0xff] %v9684_v6  ;;  %v1429_v55 = vunpack.c.l.b16 %v1397_v18  ;;  %v2372_v11 = vsel %vm2340_vm14, 65537, %v9624_v53  ;;  %v2019_v28 = vrot.slane %v2017_v54, 3  ;;  %v2022_v60 = vrot.slane %v2020_v17, 4 }
 0x154   : > { %9686 = vst [vmem:[#allocation68_spill] sm:$0xff] %v7776_v5  ;;  %v2780_v52 = vshrl.u32 %v2696_v57, 16  ;;  %v2783_v8 = vshll.u32 %v2696_v57, 16  ;;  %v689_v14 = vpack.c.bf16 %v7750_v23, %v7750_v23  ;;  %v3160_v43 = vshll.u32 %v3068_v3, 16  ;;  %3343 = vmatmul.bf16.gmra.mxu0 %v3155_v33 }
 0x155   : > { %v1453_v46 = vpack.c.b16 %v7027_v0, %v1429_v55  ;;  %v2404_v45 = vunpack.c.l.b16 %v2372_v11  ;;  %v7788_v6 = vor.u32 %v2022_v60, %v2019_v28  ;;  %v823_v54 = vadd.s32 144, %v6981_v38 }
 0x156   : > { %v2782_v18 = vrot.slane %v2780_v52, 4  ;;  %v2785_v19 = vrot.slane %v2783_v8, 5  ;;  %v690_v58 = vpack.c.bf16 %v7776_v5, %v7776_v5  ;;  %v3159_v11 = vrot.slane %v3157_v20, 3 }
 0x157   : > { %v1534_v17 = vshrl.u32 %v1453_v46, 16  ;;  %v1537_v62 = vshll.u32 %v1453_v46, 16  ;;  %v2427_v57 = vpack.c.b16 %v2404_v45, %v7027_v0  ;;  %v2024_v3 = vsel %vm9687_vm2, %v7671_v25, %v7788_v6 }
 0x158   : > { %v7797_v55 = vor.u32 %v2785_v19, %v2782_v18  ;;  %v824_v28 = vadd.s32 152, %v6981_v38  ;;  %2208 = vmatmul.bf16.gmra.mxu2 %v2024_v3  ;;  %v3162_v60 = vrot.slane %v3160_v43, 4  ;;  %v752_v26 = vunpack.c.l.b16 %v688_v47 }
 0x159   : > { %v1536_v52 = vrot.slane %v1534_v17, 4  ;;  %v1539_v8 = vrot.slane %v1537_v62, 5  ;;  %v2507_v46 = vshrl.u32 %v2427_v57, 16  ;;  %v753_v45 = vunpack.c.l.b16 %v689_v14 }
 0x15a   : > { %v9439_v23 = vrot.slane %v7588_v32, 4  ;;  %v2510_v5 = vshll.u32 %v2427_v57, 16  ;;  %vm9688_vm5 = vsmask.f32 3328  ;;  %v754_v20 = vunpack.c.l.b16 %v690_v58 }
 0x15b   : > { %v2787_v33 = vsel %vm9688_vm5, %v7700_v34, %v7797_v55  ;;  %v7804_v25 = vor.u32 %v1539_v8, %v1536_v52  ;;  %v2509_v19 = vrot.slane %v2507_v46, 3  ;;  %v7810_v43 = vadd.f32 %v7715_v63, %v7077_v4  ;;  %vm9691_vm8 = vmmov %vm9688_vm5 }
 0x15c   : > { %2971 = vmatmul.bf16.gmra.mxu3 %v2787_v33  ;;  %v2512_v62 = vrot.slane %v2510_v5, 4  ;;  %v967_v47 = vand.u32 15, %v823_v54  ;;  %v7814_v14 = vpack.c.b16 %v7713_v41, %v7652_v13  ;;  %v7816_v17 = vor.u32 %v3162_v60, %v3159_v11  ;;  %v7826_v5 = vpop.f32.mrf.mxu3  ;;  %v6321_v33 = vld [vmem:[#allocation7 + $0x178] sm:$0xff] }
 0x15d   : > { %9689 = vst [vmem:[#allocation69_spill] sm:$0xff] %v7810_v43  ;;  %v1541_v58 = vsel %vm9691_vm8, %v7705_v15, %v7804_v25  ;;  %v974_v34 = vand.u32 15, %v824_v28  ;;  %v7822_v57 = vpack.c.b16 %v752_v26, %v7727_v1  ;;  %v9693_v13 = vrot.slane %v7580_v59, 4  ;;  %v645_v15 = vpop.f32.mrf.mxu2  ;;  %3876 = vmatpush.bf16.msra.mxu2 %v6321_v33 }
 0x15e   : > { %9690 = vst [vmem:[#allocation70_spill] sm:$0xff] %v7814_v14  ;;  %v1654_v3 = vunpack.c.l.b16 %v1541_v58  ;;  %v1655_v63 = vunpack.c.h.b16 %v1541_v58  ;;  %v7824_v52 = vor.u32 %v2512_v62, %v2509_v19  ;;  %vm9694_vm14 = vcmask 1043456  }
 0x15f   : > { %9692 = vst [vmem:[#allocation71_spill] sm:$0xff] %v7822_v57  ;;  %v7833_v41 = vsel %vm9694_vm14, %v9693_v13, %v9439_v23  ;;  %v7835_v54 = vpack.c.b16 %v754_v20, %v753_v45  ;;  %vm1239_vm7 = vcmp.ge.s32.totalorder %v967_v47, 1  ;;  %vm7837_vm2 = vcmp.le.s32.totalorder %v974_v34, 14 }
 0x160   : > { %9695 = vst [vmem:[#allocation72_spill] sm:$0xff] %v7833_v41  ;;  %vm1658_vm5 = vcmp.ne.s32.totalorder %v1654_v3, %v7080_v9  ;;  %vm1659_vm8 = vcmp.ne.s32.totalorder %v1655_v63, %v7084_v12  ;;  %vm9698_vm1 = vsmask.f32 4352  ;;  %v7847_v28 = vadd.f32 %v645_v15, %v7077_v4  ;;  %vm1367_vm14 = vmpackc.low %vm1239_vm7, %vm1239_vm7 }
 0x161   : > { %v2514_v11 = vsel %vm9698_vm1, %v7724_v40, %v7824_v52  ;;  %vm9700_vm13 = vmmov %vm9698_vm1  ;;  %v9701_v8 = vmov 0  ;;  %v1399_v45 = vsel %vm1367_vm14, 65537, %v9624_v53  ;;  %1908 = vmatmul.bf16.gmra.mxu1 %v7833_v41  ;;  %v9704_v58 = vmov 0 }
 0x162   : > { %9699 = vst [vmem:[#allocation73_spill] sm:$0xff] %v7847_v28  ;;  %v3164_v60 = vsel %vm9700_vm13, %v7736_v2, %v7816_v17  ;;  %vm7852_vm6 = vmpackc.low %vm1659_vm8, %vm1658_vm5  ;;  %v2627_v46 = vunpack.c.l.b16 %v2514_v11  ;;  %v2628_v26 = vunpack.c.h.b16 %v2514_v11  ;;  %v1431_v20 = vunpack.c.l.b16 %v1399_v45 }
 0x163   : > { %v9702_v8 = vsel %vm7852_vm6, 4294967295, %v9701_v8  ;;  %v1724_v40 = vsel %vm7852_vm6, %v7588_v32, 0  ;;  %v3069_v19 = vsel %vm7852_vm6, %v7708_v16, 0  ;;  %vm2342_vm1 = vmpackc.low %vm7837_vm2, %vm7837_vm2  ;;  %v825_v2 = vadd.s32 160, %v6981_v38 }
 0x164   : > { %9703 = vst [vmem:[#allocation74_spill] sm:$0xff] %v9702_v8  ;;  %v2026_v62 = vshrl.u32 %v1724_v40, 16  ;;  %v2029_v47 = vshll.u32 %v1724_v40, 16  ;;  %vm2631_vm13 = vcmp.ne.s32.totalorder %v2627_v46, %v7080_v9  ;;  %vm2632_vm7 = vcmp.ne.s32.totalorder %v2628_v26, %v7084_v12  ;;  %3348 = vmatmul.bf16.gmra.mxu0 %v3164_v60 }
 0x165   : > { %vm7870_vm5 = vmpackc.low %vm2632_vm7, %vm2631_vm13  ;;  %v3166_v34 = vshrl.u32 %v3069_v19, 16  ;;  %v3169_v3 = vshll.u32 %v3069_v19, 16  ;;  %v1454_v63 = vpack.c.b16 %v7027_v0, %v1431_v20  ;;  %v826_v13 = vadd.s32 168, %v6981_v38 }
 0x166   : > { %v9705_v58 = vsel %vm7870_vm5, 4294967295, %v9704_v58  ;;  %v2028_v15 = vrot.slane %v2026_v62, 3  ;;  %v2031_v11 = vrot.slane %v2029_v47, 4  ;;  %v2697_v46 = vsel %vm7870_vm5, %v7588_v32, 0 }
 0x167   : > { %9706 = vst [vmem:[#allocation75_spill] sm:$0xff] %v9705_v58  ;;  %v2374_v26 = vsel %vm2342_vm1, 65537, %v9624_v53  ;;  %v2789_v45 = vshrl.u32 %v2697_v46, 16  ;;  %v2792_v33 = vshll.u32 %v2697_v46, 16  ;;  %v3168_v40 = vrot.slane %v3166_v34, 3  ;;  %v7893_v46 = vpop.f32.mrf.mxu3 }
 0x168   : > { %v3171_v19 = vrot.slane %v3169_v3, 4  ;;  %v7885_v20 = vor.u32 %v2031_v11, %v2028_v15  ;;  %v1543_v18 = vshrl.u32 %v1454_v63, 16  ;;  %v1546_v62 = vshll.u32 %v1454_v63, 16 }
 0x169   : > { %v2406_v47 = vunpack.c.l.b16 %v2374_v26  ;;  %v2791_v23 = vrot.slane %v2789_v45, 4  ;;  %v2794_v8 = vrot.slane %v2792_v33, 5  ;;  %v691_v58 = vpack.c.bf16 %v7847_v28, %v7847_v28 }
 0x16a   : > { %vm9707_vm2 = vsmask.f32 4352  ;;  %v1545_v34 = vrot.slane %v1543_v18, 4  ;;  %v1548_v3 = vrot.slane %v1546_v62, 5  ;;  %v7898_v60 = vor.u32 %v3171_v19, %v3168_v40 }
 0x16b   : > { %v2033_v1 = vsel %vm9707_vm2, %v7788_v6, %v7885_v20  ;;  %v2428_v15 = vpack.c.b16 %v2406_v47, %v7027_v0  ;;  %v7896_v63 = vor.u32 %v2794_v8, %v2791_v23  ;;  %v981_v11 = vand.u32 15, %v825_v2 }
 0x16c   : > { %2213 = vmatmul.bf16.gmra.mxu2 %v2033_v1  ;;  %v988_v26 = vand.u32 15, %v826_v13  ;;  %v7900_v45 = vor.u32 %v1548_v3, %v1545_v34  ;;  %v827_v28 = vadd.s32 176, %v6981_v38  ;;  %vm9708_vm8 = vsmask.f32 3328 }
 0x16d   : > { %v2516_v33 = vshrl.u32 %v2428_v15, 16  ;;  %v2519_v41 = vshll.u32 %v2428_v15, 16  ;;  %v2796_v6 = vsel %vm9708_vm8, %v7797_v55, %v7896_v63  ;;  %vm1241_vm14 = vcmp.ge.s32.totalorder %v981_v11, 1  ;;  %vm9711_vm13 = vmmov %vm9708_vm8  ;;  %v7939_v11 = vpop.f32.mrf.mxu1 }
 0x16e   : > { %vm7906_vm1 = vcmp.le.s32.totalorder %v988_v26, 14  ;;  %v828_v23 = vadd.s32 184, %v6981_v38  ;;  %2976 = vmatmul.bf16.gmra.mxu3 %v2796_v6  ;;  %v1550_v8 = vsel %vm9711_vm13, %v7804_v25, %v7900_v45  ;;  %vm1369_vm7 = vmpackc.low %vm1241_vm14, %vm1241_vm14  ;;  %v995_v40 = vand.u32 15, %v827_v28 }
 0x16f   : > { %v2518_v2 = vrot.slane %v2516_v33, 3  ;;  %v2521_v13 = vrot.slane %v2519_v41, 4  ;;  %v7914_v19 = vunpack.c.l.b16 %v691_v58  ;;  %v1661_v62 = vunpack.c.l.b16 %v1550_v8  ;;  %vm2344_vm2 = vmpackc.low %vm7906_vm1, %vm7906_vm1 }
 0x170   : > { %v1662_v55 = vunpack.c.h.b16 %v1550_v8  ;;  %v1401_v47 = vsel %vm1369_vm7, 65537, %v9624_v53  ;;  %v2376_v3 = vsel %vm2344_vm2, 65537, %v9624_v53  ;;  %vm7923_vm8 = vcmp.ge.s32.totalorder %v995_v40, 1 }
 0x171   : > { %v7920_v1 = vor.u32 %v2521_v13, %v2518_v2  ;;  %v1433_v34 = vunpack.c.l.b16 %v1401_v47  ;;  %v9714_v41 = vrot.slane %v7708_v16, 4  ;;  %v9715_v28 = vrot.slane %v7588_v32, 4  ;;  %v6308_v32 = vld [vmem:[#allocation7 + $0x110] sm:$0xff] }
 0x172   : > { %vm9716_vm14 = vcmask 1043456   ;;  %vm9718_vm13 = vsmask.f32 4352  ;;  %vm1665_vm1 = vcmp.ne.s32.totalorder %v1661_v62, %v7080_v9  ;;  %vm1666_vm7 = vcmp.ne.s32.totalorder %v1662_v55, %v7084_v12  ;;  %v7958_v62 = vpop.f32.mrf.mxu3  ;;  %3504 = vmatpush.bf16.msra.mxu1 %v6308_v32 }
 0x173   : > { %v7932_v58 = vsel %vm9716_vm14, %v9715_v28, %v9714_v41  ;;  %v3173_v15 = vsel %vm9718_vm13, %v7816_v17, %v7898_v60  ;;  %vm7941_vm2 = vmpackc.low %vm1666_vm7, %vm1665_vm1  ;;  %v9719_v26 = vmov 0  ;;  %v1455_v6 = vpack.c.b16 %v7027_v0, %v1433_v34 }
 0x174   : > { %9717 = vst [vmem:[#allocation76_spill] sm:$0xff] %v7932_v58  ;;  %v9720_v26 = vsel %vm7941_vm2, 4294967295, %v9719_v26  ;;  %vm9722_vm6 = vmmov %vm9718_vm13  ;;  %v2408_v18 = vunpack.c.l.b16 %v2376_v3  ;;  %v1002_v8 = vand.u32 15, %v828_v23  ;;  %v1725_v17 = vsel %vm7941_vm2, %v7708_v16, 0  ;;  %1913 = vmatmul.bf16.gmra.mxu1 %v7932_v58  ;;  %3353 = vmatmul.bf16.gmra.mxu0 %v3173_v15 }
 0x175   : > { %9721 = vst [vmem:[#allocation77_spill] sm:$0xff] %v9720_v26  ;;  %v2523_v33 = vsel %vm9722_vm6, %v7824_v52, %v7920_v1  ;;  %v3070_v40 = vsel %vm7941_vm2, %v7814_v14, 0  ;;  %vm1371_vm14 = vmpackc.low %vm7923_vm8, %vm7923_vm8  ;;  %v2035_v52 = vshrl.u32 %v1725_v17, 16  ;;  %v2038_v55 = vshll.u32 %v1725_v17, 16 }
 0x176   : > { %v2634_v2 = vunpack.c.l.b16 %v2523_v33  ;;  %v2635_v13 = vunpack.c.h.b16 %v2523_v33  ;;  %v3175_v47 = vshrl.u32 %v3070_v40, 16  ;;  %v3178_v23 = vshll.u32 %v3070_v40, 16 }
 0x177   : > { %v1552_v34 = vshrl.u32 %v1455_v6, 16  ;;  %v1555_v3 = vshll.u32 %v1455_v6, 16  ;;  %v2037_v41 = vrot.slane %v2035_v52, 3  ;;  %v2040_v28 = vrot.slane %v2038_v55, 4 }
 0x178   : > { %vm2638_vm6 = vcmp.ne.s32.totalorder %v2634_v2, %v7080_v9  ;;  %vm2639_vm13 = vcmp.ne.s32.totalorder %v2635_v13, %v7084_v12  ;;  %v9723_v25 = vmov 0  ;;  %v1403_v33 = vsel %vm1371_vm14, 65537, %v9624_v53 }
 0x179   : > { %vm7963_vm1 = vmpackc.low %vm2639_vm13, %vm2638_vm6  ;;  %vm7968_vm8 = vcmp.le.s32.totalorder %v1002_v8, 14  ;;  %v1554_v40 = vrot.slane %v1552_v34, 4  ;;  %v1557_v13 = vrot.slane %v1555_v3, 5  ;;  %v2429_v6 = vpack.c.b16 %v2408_v18, %v7027_v0  ;;  %v1876_v34 = vpop.f32.mrf.mxu1 }
 0x17a   : > { %v9724_v25 = vsel %vm7963_vm1, 4294967295, %v9723_v25  ;;  %v2698_v2 = vsel %vm7963_vm1, %v7708_v16, 0  ;;  %v7976_v52 = vor.u32 %v2040_v28, %v2037_v41  ;;  %v3177_v58 = vrot.slane %v3175_v47, 3  ;;  %vm2346_vm7 = vmpackc.low %vm7968_vm8, %vm7968_vm8 }
 0x17b   : > { %9725 = vst [vmem:[#allocation78_spill] sm:$0xff] %v9724_v25  ;;  %v2798_v55 = vshrl.u32 %v2698_v2, 16  ;;  %v2801_v26 = vshll.u32 %v2698_v2, 16  ;;  %v3180_v59 = vrot.slane %v3178_v23, 4  ;;  %v7978_v8 = vor.u32 %v1557_v13, %v1554_v40 }
 0x17c   : > { %v2525_v27 = vshrl.u32 %v2429_v6, 16  ;;  %v2528_v48 = vshll.u32 %v2429_v6, 16  ;;  %vm9728_vm14 = vsmask.f32 4352  ;;  %v9458_v47 = vrot.slane %v7814_v14, 4 }
 0x17d   : > { %v2042_v18 = vsel %vm9728_vm14, %v7885_v20, %v7976_v52  ;;  %v2800_v3 = vrot.slane %v2798_v55, 4  ;;  %v2803_v41 = vrot.slane %v2801_v26, 5  ;;  %vm9729_vm6 = vsmask.f32 3328  ;;  %v2179_v20 = vpop.f32.mrf.mxu2 }
 0x17e   : > { %2218 = vmatmul.bf16.gmra.mxu2 %v2042_v18  ;;  %v1559_v15 = vsel %vm9729_vm6, %v7900_v45, %v7978_v8  ;;  %v2527_v23 = vrot.slane %v2525_v27, 3  ;;  %v2530_v28 = vrot.slane %v2528_v48, 4  ;;  %v1435_v17 = vunpack.c.l.b16 %v1403_v33  ;;  %vm9730_vm13 = vmmov %vm9729_vm6  ;;  %v2942_v45 = vpop.f32.mrf.mxu3 }
 0x17f   : > { %v7990_v2 = vor.u32 %v2803_v41, %v2800_v3  ;;  %v1668_v40 = vunpack.c.l.b16 %v1559_v15  ;;  %v1669_v13 = vunpack.c.h.b16 %v1559_v15  ;;  %v2378_v6 = vsel %vm2346_vm7, 65537, %v9624_v53  ;;  %v3319_v22 = vpop.f32.mrf.mxu0 }
 0x180   : > { %v7993_v55 = vor.u32 %v3180_v59, %v3177_v58  ;;  %v7995_v26 = vor.u32 %v2530_v28, %v2527_v23  ;;  %v1456_v32 = vpack.c.b16 %v7027_v0, %v1435_v17  ;;  %v2410_v18 = vunpack.c.l.b16 %v2378_v6 }
 0x181   : > { %v2805_v27 = vsel %vm9730_vm13, %v7896_v63, %v7990_v2  ;;  %v2180_v48 = vadd.f32 %v2179_v20, %v7939_v11  ;;  %vm1672_vm8 = vcmp.ne.s32.totalorder %v1668_v40, %v7080_v9  ;;  %vm1673_vm14 = vcmp.ne.s32.totalorder %v1669_v13, %v7084_v12  ;;  %v1879_v6 = vpop.f32.mrf.mxu1 }
 0x182   : > { %2981 = vmatmul.bf16.gmra.mxu3 %v2805_v27  ;;  %vm8004_vm7 = vmpackc.low %vm1673_vm14, %vm1672_vm8  ;;  %v9731_v59 = vmov 0  ;;  %vm9734_vm6 = vsmask.f32 4352  ;;  %v1561_v33 = vshrl.u32 %v1456_v32, 16  ;;  %v1564_v3 = vshll.u32 %v1456_v32, 16 }
 0x183   : > { %v9732_v59 = vsel %vm8004_vm7, 4294967295, %v9731_v59  ;;  %v2532_v58 = vsel %vm9734_vm6, %v7920_v1, %v7995_v26  ;;  %v2430_v63 = vpack.c.b16 %v2410_v18, %v7027_v0  ;;  %v3022_v41 = vadd.f32 %v2942_v45, %v2180_v48  ;;  %v6320_v18 = vld [vmem:[#allocation7 + $0x170] sm:$0xff] }
 0x184   : > { %9733 = vst [vmem:[#allocation79_spill] sm:$0xff] %v9732_v59  ;;  %v1726_v11 = vsel %vm8004_vm7, %v7814_v14, 0  ;;  %v2641_v15 = vunpack.c.l.b16 %v2532_v58  ;;  %v2642_v23 = vunpack.c.h.b16 %v2532_v58  ;;  %v3071_v40 = vsel %vm8004_vm7, %v7822_v57, 0  ;;  %3877 = vmatpush.bf16.msra.mxu2 %v6320_v18 }
 0x185   : > { %v2044_v28 = vshrl.u32 %v1726_v11, 16  ;;  %v2047_v17 = vshll.u32 %v1726_v11, 16  ;;  %v1563_v13 = vrot.slane %v1561_v33, 4  ;;  %v9735_v1 = vrot.slane %v7708_v16, 4 }
 0x186   : > { %vm9736_vm13 = vcmask 1043456   ;;  %vm2645_vm8 = vcmp.ne.s32.totalorder %v2641_v15, %v7080_v9  ;;  %vm2646_vm14 = vcmp.ne.s32.totalorder %v2642_v23, %v7084_v12  ;;  %v3184_v32 = vshrl.u32 %v3071_v40, 16  ;;  %v2944_v16 = vpop.f32.mrf.mxu3 }
 0x187   : > { %v8023_v20 = vsel %vm9736_vm13, %v9735_v1, %v9458_v47  ;;  %v2046_v27 = vrot.slane %v2044_v28, 3  ;;  %v2049_v48 = vrot.slane %v2047_v17, 4  ;;  %vm8027_vm6 = vmpackc.low %vm2646_vm14, %vm2645_vm8  ;;  %v9738_v45 = vmov 0  ;;  %v2181_v28 = vpop.f32.mrf.mxu2 }
 0x188   : > { %9737 = vst [vmem:[#allocation80_spill] sm:$0xff] %v8023_v20  ;;  %v9739_v45 = vsel %vm8027_vm6, 4294967295, %v9738_v45  ;;  %v1566_v58 = vrot.slane %v1564_v3, 5  ;;  %v2534_v33 = vshrl.u32 %v2430_v63, 16  ;;  %vm9741_vm7 = vsmask.f32 4352  ;;  %1918 = vmatmul.bf16.gmra.mxu1 %v8023_v20 }
 0x189   : > { %9740 = vst [vmem:[#allocation81_spill] sm:$0xff] %v9739_v45  ;;  %v3182_v11 = vsel %vm9741_vm7, %v7898_v60, %v7993_v55  ;;  %v2699_v15 = vsel %vm8027_vm6, %v7814_v14, 0  ;;  %v3187_v1 = vshll.u32 %v3071_v40, 16  ;;  %v2537_v23 = vshll.u32 %v2430_v63, 16 }
 0x18a   : > { %v2807_v17 = vshrl.u32 %v2699_v15, 16  ;;  %v2810_v47 = vshll.u32 %v2699_v15, 16  ;;  %v8038_v59 = vor.u32 %v1566_v58, %v1563_v13  ;;  %v829_v3 = vadd.s32 192, %v6981_v38  ;;  %3358 = vmatmul.bf16.gmra.mxu0 %v3182_v11 }
 0x18b   : > { %v2182_v25 = vadd.f32 %v2181_v28, %v1876_v34  ;;  %v8041_v60 = vor.u32 %v2049_v48, %v2046_v27  ;;  %v2536_v56 = vrot.slane %v2534_v33, 3  ;;  %v2539_v45 = vrot.slane %v2537_v23, 4 }
 0x18c   : > { %v8043_v35 = vadd.f32 %v3319_v22, %v3022_v41  ;;  %v2809_v63 = vrot.slane %v2807_v17, 4  ;;  %v2812_v40 = vrot.slane %v2810_v47, 5  ;;  %v3186_v18 = vrot.slane %v3184_v32, 3  ;;  %v1881_v22 = vpop.f32.mrf.mxu1  ;;  %v3321_v17 = vpop.f32.mrf.mxu0 }
 0x18d   : > { %v3023_v20 = vadd.f32 %v2944_v16, %v2182_v25  ;;  %v3189_v61 = vrot.slane %v3187_v1, 4  ;;  %vm9742_vm7 = vsmask.f32 3328  ;;  %v8048_v58 = vor.u32 %v2539_v45, %v2536_v56 }
 0x18e   : > { %v1568_v13 = vsel %vm9742_vm7, %v7978_v8, %v8038_v59  ;;  %v8050_v34 = vor.u32 %v2812_v40, %v2809_v63  ;;  %v1789_v27 = vrot.slane %v7822_v57, 4  ;;  %vm9743_vm13 = vsmask.f32 4352  ;;  %v2947_v28 = vpop.f32.mrf.mxu3 }
 0x18f   : > { %v1675_v48 = vunpack.c.l.b16 %v1568_v13  ;;  %v1676_v33 = vunpack.c.h.b16 %v1568_v13  ;;  %v2051_v47 = vsel %vm9743_vm13, %v7976_v52, %v8041_v60  ;;  %vm9744_vm8 = vmmov %vm9743_vm13  ;;  %v1009_v25 = vand.u32 15, %v829_v3  ;;  %v2184_v15 = vpop.f32.mrf.mxu2 }
 0x190   : > { %v2541_v16 = vsel %vm9744_vm8, %v7995_v26, %v8048_v58  ;;  %v830_v56 = vadd.s32 200, %v6981_v38  ;;  %2223 = vmatmul.bf16.gmra.mxu2 %v2051_v47  ;;  %v831_v41 = vadd.s32 208, %v6981_v38  ;;  %vm9745_vm6 = vsmask.f32 3328 }
 0x191   : > { %vm1679_vm14 = vcmp.ne.s32.totalorder %v1675_v48, %v7080_v9  ;;  %vm1680_vm7 = vcmp.ne.s32.totalorder %v1676_v33, %v7084_v12  ;;  %v2648_v8 = vunpack.c.l.b16 %v2541_v16  ;;  %v2814_v32 = vsel %vm9745_vm6, %v7990_v2, %v8050_v34 }
 0x192   : > { %v8066_v52 = vor.u32 %v3189_v61, %v3186_v18  ;;  %vm8068_vm13 = vmpackc.low %vm1680_vm7, %vm1679_vm14  ;;  %v9746_v45 = vmov 0  ;;  %v2649_v26 = vunpack.c.h.b16 %v2541_v16  ;;  %vm8072_vm8 = vcmp.ge.s32.totalorder %v1009_v25, 1  ;;  %2986 = vmatmul.bf16.gmra.mxu3 %v2814_v32 }
 0x193   : > { %v9747_v45 = vsel %vm8068_vm13, 4294967295, %v9746_v45  ;;  %v1727_v1 = vsel %vm8068_vm13, %v7822_v57, 0  ;;  %vm2652_vm2 = vcmp.ne.s32.totalorder %v2648_v8, %v7080_v9  ;;  %v3072_v61 = vsel %vm8068_vm13, %v7835_v54, 0  ;;  %vm1373_vm6 = vmpackc.low %vm8072_vm8, %vm8072_vm8 }
 0x194   : > { %9748 = vst [vmem:[#allocation82_spill] sm:$0xff] %v9747_v45  ;;  %v1016_v2 = vand.u32 15, %v830_v56  ;;  %v2185_v23 = vadd.f32 %v2184_v15, %v1879_v6  ;;  %v2053_v3 = vshrl.u32 %v1727_v1, 16  ;;  %v2056_v63 = vshll.u32 %v1727_v1, 16  ;;  %v1884_v11 = vpop.f32.mrf.mxu1 }
 0x195   : > { %vm2653_vm14 = vcmp.ne.s32.totalorder %v2649_v26, %v7084_v12  ;;  %v8087_v40 = vadd.f32 %v3321_v17, %v3023_v20  ;;  %v9752_v18 = vmov 0  ;;  %v9481_v13 = vrot.slane %v7835_v54, 4 }
 0x196   : > { %vm8089_vm7 = vmpackc.low %vm2653_vm14, %vm2652_vm2  ;;  %v1405_v48 = vsel %vm1373_vm6, 65537, %v9624_v53  ;;  %v1023_v33 = vand.u32 15, %v831_v41  ;;  %v3024_v47 = vadd.f32 %v2947_v28, %v2185_v23  ;;  %v3193_v16 = vshrl.u32 %v3072_v61, 16 }
 0x197   : > { %9751 = vst [vmem:[#allocation83_spill] sm:$0xff] %v8087_v40  ;;  %v9753_v18 = vsel %vm8089_vm7, 4294967295, %v9752_v18  ;;  %v2700_v6 = vsel %vm8089_vm7, %v7822_v57, 0  ;;  %v3196_v25 = vshll.u32 %v3072_v61, 16  ;;  %v2055_v56 = vrot.slane %v2053_v3, 3 }
 0x198   : > { %9754 = vst [vmem:[#allocation84_spill] sm:$0xff] %v9753_v18  ;;  %v2058_v8 = vrot.slane %v2056_v63, 4  ;;  %v2816_v20 = vshrl.u32 %v2700_v6, 16  ;;  %v2819_v32 = vshll.u32 %v2700_v6, 16  ;;  %v8100_v26 = vpack.c.b16 %v7609_v7, %v7914_v19 }
 0x199   : > { %v9755_v15 = vrot.slane %v7814_v14, 4  ;;  %vm9756_vm2 = vcmask 1043456   ;;  %v1437_v1 = vunpack.c.l.b16 %v1405_v48  ;;  %vm1278_vm8 = vcmp.le.s32.totalorder %v1016_v2, 14  ;;  %v2186_v2 = vpop.f32.mrf.mxu2 }
 0x19a   : > { %vm9758_vm6 = vsmask.f32 4352  ;;  %v2818_v23 = vrot.slane %v2816_v20, 4  ;;  %v2821_v28 = vrot.slane %v2819_v32, 5  ;;  %vm2348_vm14 = vmpackc.low %vm1278_vm8, %vm1278_vm8  ;;  %vm1247_vm13 = vcmp.ge.s32.totalorder %v1023_v33, 1  ;;  %v2949_v20 = vpop.f32.mrf.mxu3  ;;  %v3324_v32 = vpop.f32.mrf.mxu0 }
 0x19b   : > { %v8105_v41 = vsel %vm9756_vm2, %v9755_v15, %v1789_v27  ;;  %v3191_v61 = vsel %vm9758_vm6, %v7993_v55, %v8066_v52  ;;  %vm9759_vm7 = vmmov %vm9756_vm2  ;;  %v3195_v19 = vrot.slane %v3193_v16, 3  ;;  %v1457_v17 = vpack.c.b16 %v7027_v0, %v1437_v1 }
 0x19c   : > { %9757 = vst [vmem:[#allocation85_spill] sm:$0xff] %v8105_v41  ;;  %v8113_v7 = vsel %vm9759_vm7, %v1789_v27, %v9481_v13  ;;  %v2380_v3 = vsel %vm2348_vm14, 65537, %v9624_v53  ;;  %vm1375_vm2 = vmpackc.low %vm1247_vm13, %vm1247_vm13  ;;  %1923 = vmatmul.bf16.gmra.mxu1 %v8105_v41  ;;  %v8118_v63 = vor.u32 %v2058_v8, %v2055_v56  ;;  %v3198_v55 = vrot.slane %v3196_v25, 4  ;;  %3363 = vmatmul.bf16.gmra.mxu0 %v3191_v61 }
 0x19d   : > { %9760 = vst [vmem:[#allocation86_spill] sm:$0xff] %v8113_v7  ;;  %v2412_v48 = vunpack.c.l.b16 %v2380_v3  ;;  %v1407_v33 = vsel %vm1375_vm2, 65537, %v9624_v53  ;;  %v2187_v6 = vadd.f32 %v2186_v2, %v1881_v22  ;;  %v1570_v27 = vshrl.u32 %v1457_v17, 16  ;;  %v6307_v3 = vld [vmem:[#allocation7 + $0x108] sm:$0xff]  ;;  %vm9762_vm13 = vmmov %vm9758_vm6 }
 0x19e   : > { %v1573_v15 = vshll.u32 %v1457_v17, 16  ;;  %v1439_v16 = vunpack.c.l.b16 %v1407_v33  ;;  %v8121_v13 = vadd.f32 %v3324_v32, %v3024_v47  ;;  %v8123_v1 = vor.u32 %v2821_v28, %v2818_v23  ;;  %v8131_v23 = vpop.f32.mrf.mxu1  ;;  %3505 = vmatpush.bf16.msra.mxu1 %v6307_v3 }
 0x19f   : > { %v2431_v45 = vpack.c.b16 %v2412_v48, %v7027_v0  ;;  %v832_v18 = vadd.s32 216, %v6981_v38  ;;  %v3025_v56 = vadd.f32 %v2949_v20, %v2187_v6  ;;  %v1572_v8 = vrot.slane %v1570_v27, 4 }
 0x1a0   : > { %9761 = vst [vmem:[#allocation87_spill] sm:$0xff] %v8121_v13  ;;  %v1575_v25 = vrot.slane %v1573_v15, 5  ;;  %v1458_v41 = vpack.c.b16 %v7027_v0, %v1439_v16  ;;  %v2060_v22 = vsel %vm9762_vm13, %v8041_v60, %v8118_v63  ;;  %v833_v6 = vadd.s32 224, %v6981_v38 }
 0x1a1   : > { %v2543_v17 = vshrl.u32 %v2431_v45, 16  ;;  %v2546_v47 = vshll.u32 %v2431_v45, 16  ;;  %v1030_v2 = vand.u32 15, %v832_v18  ;;  %2228 = vmatmul.bf16.gmra.mxu2 %v2060_v22  ;;  %v8134_v20 = vor.u32 %v3198_v55, %v3195_v19  ;;  %v2189_v15 = vpop.f32.mrf.mxu2 }
 0x1a2   : > { %v1576_v28 = vor.u32 %v1575_v25, %v1572_v8  ;;  %v1579_v48 = vshrl.u32 %v1458_v41, 16  ;;  %v1582_v33 = vshll.u32 %v1458_v41, 16  ;;  %vm9763_vm8 = vsmask.f32 3328  ;;  %v3326_v25 = vpop.f32.mrf.mxu0 }
 0x1a3   : > { %v2545_v32 = vrot.slane %v2543_v17, 3  ;;  %v2548_v61 = vrot.slane %v2546_v47, 4  ;;  %vm1280_vm7 = vcmp.le.s32.totalorder %v1030_v2, 14  ;;  %v2823_v60 = vsel %vm9763_vm8, %v8050_v34, %v8123_v1  ;;  %vm9764_vm6 = vmmov %vm9763_vm8  ;;  %v2952_v34 = vpop.f32.mrf.mxu3 }
 0x1a4   : > { %v1577_v45 = vsel %vm9764_vm6, %v8038_v59, %v1576_v28  ;;  %v1581_v18 = vrot.slane %v1579_v48, 4  ;;  %v1584_v27 = vrot.slane %v1582_v33, 5  ;;  %vm2350_vm14 = vmpackc.low %vm1280_vm7, %vm1280_vm7  ;;  %v2190_v55 = vadd.f32 %v2189_v15, %v1884_v11  ;;  %2991 = vmatmul.bf16.gmra.mxu3 %v2823_v60 }
 0x1a5   : > { %v1682_v41 = vunpack.c.l.b16 %v1577_v45  ;;  %v1683_v16 = vunpack.c.h.b16 %v1577_v45  ;;  %v8141_v8 = vor.u32 %v2548_v61, %v2545_v32  ;;  %v2382_v19 = vsel %vm2350_vm14, 65537, %v9624_v53 }
 0x1a6   : > { %v8144_v3 = vor.u32 %v1584_v27, %v1581_v18  ;;  %v2414_v22 = vunpack.c.l.b16 %v2382_v19  ;;  %v1037_v17 = vand.u32 15, %v833_v6  ;;  %v8146_v47 = vadd.f32 %v3326_v25, %v3025_v56  ;;  %v8165_v60 = vpop.f32.mrf.mxu1  ;;  %v6319_v27 = vld [vmem:[#allocation7 + $0x168] sm:$0xff] }
 0x1a7   : > { %vm1686_vm2 = vcmp.ne.s32.totalorder %v1682_v41, %v7080_v9  ;;  %vm1687_vm13 = vcmp.ne.s32.totalorder %v1683_v16, %v7084_v12  ;;  %vm9766_vm7 = vsmask.f32 4352  ;;  %v3026_v2 = vadd.f32 %v2952_v34, %v2190_v55  ;;  %3878 = vmatpush.bf16.msra.mxu2 %v6319_v27 }
 0x1a8   : > { %9765 = vst [vmem:[#allocation88_spill] sm:$0xff] %v8146_v47  ;;  %v2550_v59 = vsel %vm9766_vm7, %v8048_v58, %v8141_v8  ;;  %vm8153_vm8 = vmpackc.low %vm1687_vm13, %vm1686_vm2  ;;  %v9767_v11 = vmov 0  ;;  %v1586_v6 = vsel %vm9764_vm6, %v1576_v28, %v8144_v3  ;;  %v9770_v28 = vmov 0 }
 0x1a9   : > { %v9768_v11 = vsel %vm8153_vm8, 4294967295, %v9767_v11  ;;  %v2655_v48 = vunpack.c.l.b16 %v2550_v59  ;;  %v2656_v33 = vunpack.c.h.b16 %v2550_v59  ;;  %v1728_v56 = vsel %vm8153_vm8, %v7835_v54, 0  ;;  %v2191_v59 = vpop.f32.mrf.mxu2 }
 0x1aa   : > { %9769 = vst [vmem:[#allocation89_spill] sm:$0xff] %v9768_v11  ;;  %v3073_v32 = vsel %vm8153_vm8, %v8100_v26, 0  ;;  %v1689_v61 = vunpack.c.l.b16 %v1586_v6  ;;  %v1690_v58 = vunpack.c.h.b16 %v1586_v6  ;;  %v2062_v45 = vshrl.u32 %v1728_v56, 16 }
 0x1ab   : > { %v2065_v18 = vshll.u32 %v1728_v56, 16  ;;  %vm2659_vm14 = vcmp.ne.s32.totalorder %v2655_v48, %v7080_v9  ;;  %vm2660_vm2 = vcmp.ne.s32.totalorder %v2656_v33, %v7084_v12  ;;  %v3202_v15 = vshrl.u32 %v3073_v32, 16 }
 0x1ac   : > { %vm8169_vm13 = vmpackc.low %vm2660_vm2, %vm2659_vm14  ;;  %vm1693_vm7 = vcmp.ne.s32.totalorder %v1689_v61, %v7080_v9  ;;  %vm1694_vm6 = vcmp.ne.s32.totalorder %v1690_v58, %v7084_v12  ;;  %v834_v41 = vadd.s32 232, %v6981_v38  ;;  %v2064_v16 = vrot.slane %v2062_v45, 3  ;;  %1928 = vmatmul.bf16.gmra.mxu1 %v8113_v7  ;;  %v3329_v58 = vpop.f32.mrf.mxu0 }
 0x1ad   : > { %v9771_v28 = vsel %vm8169_vm13, 4294967295, %v9770_v28  ;;  %v2067_v19 = vrot.slane %v2065_v18, 4  ;;  %v2701_v55 = vsel %vm8169_vm13, %v7835_v54, 0  ;;  %vm8179_vm8 = vmpackc.low %vm1694_vm6, %vm1693_vm7  ;;  %v9773_v25 = vmov 0 }
 0x1ae   : > { %9772 = vst [vmem:[#allocation90_spill] sm:$0xff] %v9771_v28  ;;  %v9774_v25 = vsel %vm8179_vm8, 4294967295, %v9773_v25  ;;  %v2432_v34 = vpack.c.b16 %v2414_v22, %v7027_v0  ;;  %v2825_v48 = vshrl.u32 %v2701_v55, 16  ;;  %v2828_v33 = vshll.u32 %v2701_v55, 16  ;;  %v2954_v55 = vpop.f32.mrf.mxu3 }
 0x1af   : > { %9775 = vst [vmem:[#allocation91_spill] sm:$0xff] %v9774_v25  ;;  %v3205_v6 = vshll.u32 %v3073_v32, 16  ;;  %vm8185_vm14 = vcmp.ge.s32.totalorder %v1037_v17, 1  ;;  %v2192_v61 = vadd.f32 %v2191_v59, %v8131_v23  ;;  %v8190_v45 = vor.u32 %v2067_v19, %v2064_v16 }
 0x1b0   : > { %v1729_v22 = vsel %vm8179_vm8, %v8100_v26, 0  ;;  %v2552_v18 = vshrl.u32 %v2432_v34, 16  ;;  %v9778_v27 = vpack.c.bf16 %v7680_v21, %v7680_v21  ;;  %v8198_v32 = vadd.f32 %v3329_v58, %v3026_v2  ;;  %vm1377_vm7 = vmpackc.low %vm8185_vm14, %vm8185_vm14  ;;  %v1891_v2 = vpop.f32.mrf.mxu1 }
 0x1b1   : > { %v2827_v17 = vrot.slane %v2825_v48, 4  ;;  %v2830_v28 = vrot.slane %v2828_v33, 5  ;;  %v3027_v7 = vadd.f32 %v2954_v55, %v2192_v61  ;;  %vm9779_vm2 = vsmask.f32 4352 }
 0x1b2   : > { %v758_v11 = vunpack.c.l.b16 %v9778_v27  ;;  %v3200_v23 = vsel %vm9779_vm2, %v8066_v52, %v8134_v20  ;;  %v3204_v16 = vrot.slane %v3202_v15, 3  ;;  %v1044_v19 = vand.u32 15, %v834_v41  ;;  %vm9780_vm6 = vmmov %vm9779_vm2 }
 0x1b3   : > { %3368 = vmatmul.bf16.gmra.mxu0 %v3200_v23  ;;  %v3207_v59 = vrot.slane %v3205_v6, 4  ;;  %v2071_v47 = vshrl.u32 %v1729_v22, 16  ;;  %v2554_v13 = vrot.slane %v2552_v18, 3  ;;  %v2555_v40 = vshll.u32 %v2432_v34, 16 }
 0x1b4   : > { %v2069_v48 = vsel %vm9780_vm6, %v8118_v63, %v8190_v45  ;;  %v8209_v33 = vor.u32 %v2830_v28, %v2827_v17  ;;  %v8212_v52 = vpack.c.b16 %v758_v11, %v7654_v10  ;;  %v2074_v41 = vshll.u32 %v1729_v22, 16  ;;  %v2194_v63 = vpop.f32.mrf.mxu2  ;;  %v3331_v22 = vpop.f32.mrf.mxu0 }
 0x1b5   : > { %2233 = vmatmul.bf16.gmra.mxu2 %v2069_v48  ;;  %v2557_v34 = vrot.slane %v2555_v40, 4  ;;  %v8218_v6 = vadd.f32 %v7783_v24, %v7077_v4  ;;  %v9495_v56 = vrot.slane %v8100_v26, 4  ;;  %v1409_v61 = vsel %vm1377_vm7, 65537, %v9624_v53 }
 0x1b6   : > { %vm1282_vm14 = vcmp.le.s32.totalorder %v1044_v19, 14  ;;  %v8222_v28 = vor.u32 %v3207_v59, %v3204_v16  ;;  %v2073_v10 = vrot.slane %v2071_v47, 3  ;;  %v1441_v58 = vunpack.c.l.b16 %v1409_v61  ;;  %v2957_v55 = vpop.f32.mrf.mxu3 }
 0x1b7   : > { %9781 = vst [vmem:[#allocation92_spill] sm:$0xff] %v8218_v6  ;;  %v8224_v11 = vor.u32 %v2557_v34, %v2554_v13  ;;  %vm2352_vm2 = vmpackc.low %vm1282_vm14, %vm1282_vm14  ;;  %vm9782_vm6 = vsmask.f32 3328  ;;  %v2195_v24 = vadd.f32 %v2194_v63, %v8165_v60  ;;  %v835_v27 = vadd.s32 240, %v6981_v38 }
 0x1b8   : > { %v2832_v40 = vsel %vm9782_vm6, %v8123_v1, %v8209_v33  ;;  %v2384_v18 = vsel %vm2352_vm2, 65537, %v9624_v53  ;;  %v8232_v17 = vadd.f32 %v3331_v22, %v3027_v7  ;;  %v2076_v47 = vrot.slane %v2074_v41, 4  ;;  %v8245_v61 = vpop.f32.mrf.mxu1 }
 0x1b9   : > { %2996 = vmatmul.bf16.gmra.mxu3 %v2832_v40  ;;  %vm9783_vm7 = vsmask.f32 4352  ;;  %v1459_v23 = vpack.c.b16 %v7027_v0, %v1441_v58  ;;  %v3028_v16 = vadd.f32 %v2957_v55, %v2195_v24  ;;  %v2416_v60 = vunpack.c.l.b16 %v2384_v18 }
 0x1ba   : > { %v2559_v13 = vsel %vm9783_vm7, %v8141_v8, %v8224_v11  ;;  %v9784_v59 = vrot.slane %v7835_v54, 4  ;;  %vm9785_vm14 = vcmask 1043456   ;;  %v1051_v41 = vand.u32 15, %v835_v27  ;;  %vm9786_vm2 = vmmov %vm9783_vm7 }
 0x1bb   : > { %v2662_v1 = vunpack.c.l.b16 %v2559_v13  ;;  %v2663_v19 = vunpack.c.h.b16 %v2559_v13  ;;  %v1588_v7 = vshrl.u32 %v1459_v23, 16  ;;  %v1591_v34 = vshll.u32 %v1459_v23, 16 }
 0x1bc   : > { %v8243_v48 = vsel %vm9785_vm14, %v9784_v59, %v9495_v56  ;;  %v3209_v8 = vsel %vm9786_vm2, %v8134_v20, %v8222_v28  ;;  %v2433_v63 = vpack.c.b16 %v2416_v60, %v7027_v0  ;;  %v8253_v58 = vor.u32 %v2076_v47, %v2073_v10  ;;  %v2196_v10 = vpop.f32.mrf.mxu2  ;;  %v3334_v60 = vpop.f32.mrf.mxu0 }
 0x1bd   : > { %vm2666_vm6 = vcmp.ne.s32.totalorder %v2662_v1, %v7080_v9  ;;  %vm2667_vm7 = vcmp.ne.s32.totalorder %v2663_v19, %v7084_v12  ;;  %v9787_v40 = vmov 0  ;;  %v1590_v24 = vrot.slane %v1588_v7, 4  ;;  %1933 = vmatmul.bf16.gmra.mxu1 %v8243_v48 }
 0x1be   : > { %vm8255_vm13 = vmpackc.low %vm2667_vm7, %vm2666_vm6  ;;  %v1593_v22 = vrot.slane %v1591_v34, 5  ;;  %vm1251_vm14 = vcmp.ge.s32.totalorder %v1051_v41, 1  ;;  %v2561_v20 = vshrl.u32 %v2433_v63, 16  ;;  %v2564_v27 = vshll.u32 %v2433_v63, 16  ;;  %v2959_v41 = vpop.f32.mrf.mxu3 }
 0x1bf   : > { %v9788_v40 = vsel %vm8255_vm13, 4294967295, %v9787_v40  ;;  %v2702_v18 = vsel %vm8255_vm13, %v8100_v26, 0  ;;  %vm1379_vm2 = vmpackc.low %vm1251_vm14, %vm1251_vm14  ;;  %v836_v55 = vadd.s32 248, %v6981_v38  ;;  %v2197_v19 = vadd.f32 %v2196_v10, %v1891_v2 }
 0x1c0   : > { %v2834_v47 = vshrl.u32 %v2702_v18, 16  ;;  %v2837_v13 = vshll.u32 %v2702_v18, 16  ;;  %v8264_v23 = vor.u32 %v1593_v22, %v1590_v24  ;;  %v1411_v1 = vsel %vm1379_vm2, 65537, %v9624_v53 }
 0x1c1   : > { %v2563_v59 = vrot.slane %v2561_v20, 3  ;;  %v2566_v7 = vrot.slane %v2564_v27, 4  ;;  %v1443_v34 = vunpack.c.l.b16 %v1411_v1  ;;  %v8267_v56 = vadd.f32 %v3334_v60, %v3028_v16  ;;  %v6306_v20 = vld [vmem:[#allocation7 + $0x100] sm:$0xff] }
 0x1c2   : > { %v2836_v63 = vrot.slane %v2834_v47, 4  ;;  %v2839_v15 = vrot.slane %v2837_v13, 5  ;;  %vm9789_vm6 = vsmask.f32 3328  ;;  %v3029_v21 = vadd.f32 %v2959_v41, %v2197_v19  ;;  %v8281_v47 = vpop.f32.mrf.mxu1  ;;  %3506 = vmatpush.bf16.msra.mxu1 %v6306_v20 }
 0x1c3   : > { %v1595_v38 = vsel %vm9789_vm6, %v8144_v3, %v8264_v23  ;;  %v8272_v22 = vor.u32 %v2566_v7, %v2563_v59  ;;  %3373 = vmatmul.bf16.gmra.mxu0 %v3209_v8  ;;  %vm9790_vm7 = vsmask.f32 4352  ;;  %v3074_v16 = vsel %vm8179_vm8, %v8212_v52, 0 }
 0x1c4   : > { %v1696_v18 = vunpack.c.l.b16 %v1595_v38  ;;  %v1697_v24 = vunpack.c.h.b16 %v1595_v38  ;;  %v2078_v2 = vsel %vm9790_vm7, %v8190_v45, %v8253_v58  ;;  %v1460_v27 = vpack.c.b16 %v7027_v0, %v1443_v34  ;;  %vm9791_vm6 = vmmov %vm9790_vm7  ;;  %v2199_v41 = vpop.f32.mrf.mxu2 }
 0x1c5   : > { %v1058_v10 = vand.u32 15, %v836_v55  ;;  %v8283_v3 = vor.u32 %v2839_v15, %v2836_v63  ;;  %v2568_v45 = vsel %vm9791_vm6, %v8224_v11, %v8272_v22  ;;  %v696_v8 = vpack.c.bf16 %v8218_v6, %v8218_v6  ;;  %2238 = vmatmul.bf16.gmra.mxu2 %v2078_v2 }
 0x1c6   : > { %vm1700_vm14 = vcmp.ne.s32.totalorder %v1696_v18, %v7080_v9  ;;  %vm1701_vm2 = vcmp.ne.s32.totalorder %v1697_v24, %v7084_v12  ;;  %v9792_v13 = vmov 0  ;;  %v2669_v55 = vunpack.c.l.b16 %v2568_v45  ;;  %v3336_v24 = vpop.f32.mrf.mxu0 }
 0x1c7   : > { %vm8292_vm7 = vmpackc.low %vm1701_vm2, %vm1700_vm14  ;;  %v2670_v1 = vunpack.c.h.b16 %v2568_v45  ;;  %v1597_v15 = vshrl.u32 %v1460_v27, 16  ;;  %v3211_v19 = vshrl.u32 %v3074_v16, 16  ;;  %v3214_v60 = vshll.u32 %v3074_v16, 16 }
 0x1c8   : > { %v9793_v13 = vsel %vm8292_vm7, 4294967295, %v9792_v13  ;;  %v1730_v59 = vsel %vm8292_vm7, %v8212_v52, 0  ;;  %vm8299_vm8 = vcmp.le.s32.totalorder %v1058_v10, 14  ;;  %v9797_v7 = vpack.c.bf16 %v7810_v43, %v7810_v43 }
 0x1c9   : > { %9794 = vst [vmem:[#allocation93_spill] sm:$0xff] %v9793_v13  ;;  %vm2673_vm14 = vcmp.ne.s32.totalorder %v2669_v55, %v7080_v9  ;;  %vm2674_vm2 = vcmp.ne.s32.totalorder %v2670_v1, %v7084_v12  ;;  %v1600_v63 = vshll.u32 %v1460_v27, 16  ;;  %vm2354_vm6 = vmpackc.low %vm8299_vm8, %vm8299_vm8  ;;  %vm9798_vm13 = vsmask.f32 3328  ;;  %v2962_v27 = vpop.f32.mrf.mxu3 }
 0x1ca   : > { %v759_v34 = vunpack.c.l.b16 %v9797_v7  ;;  %v2841_v38 = vsel %vm9798_vm13, %v8209_v33, %v8283_v3  ;;  %v2200_v18 = vadd.f32 %v2199_v41, %v8245_v61  ;;  %v2080_v2 = vshrl.u32 %v1730_v59, 16  ;;  %vm8315_vm1 = vmpackc.low %vm2674_vm2, %vm2673_vm14  ;;  %v6329_v33 = vld [vmem:[#allocation7 + $0x1b8] sm:$0xff] }
 0x1cb   : > { %v2083_v16 = vshll.u32 %v1730_v59, 16  ;;  %v9799_v20 = vmov 0  ;;  %v760_v10 = vunpack.c.l.b16 %v696_v8  ;;  %3001 = vmatmul.bf16.gmra.mxu3 %v2841_v38  ;;  %v8319_v45 = vadd.f32 %v3336_v24, %v3029_v21  ;;  %v6328_v8 = vld [vmem:[#allocation7 + $0x1b0] sm:$0xff]  ;;  %v1899_v38 = vpop.f32.mrf.mxu1 }
 0x1cc   : > { %v9800_v20 = vsel %vm8315_vm1, 4294967295, %v9799_v20  ;;  %v2703_v55 = vsel %vm8315_vm1, %v8212_v52, 0  ;;  %v1599_v1 = vrot.slane %v1597_v15, 4  ;;  %v3030_v7 = vadd.f32 %v2962_v27, %v2200_v18  ;;  %4237 = vmatpush.bf16.msra.mxu3 %v6329_v33  ;;  %v6318_v27 = vld [vmem:[#allocation7 + $0x160] sm:$0xff]  ;;  %v6327_v33 = vld [vmem:[#allocation7 + $0x1a8] sm:$0xff] }
 0x1cd   : > { %9801 = vst [vmem:[#allocation94_spill] sm:$0xff] %v9800_v20  ;;  %v3213_v41 = vrot.slane %v3211_v19, 3  ;;  %v3216_v59 = vrot.slane %v3214_v60, 4  ;;  %v2843_v6 = vshrl.u32 %v2703_v55, 16  ;;  %v2846_v43 = vshll.u32 %v2703_v55, 16  ;;  %3879 = vmatpush.bf16.msra.mxu2 %v6318_v27 }
 0x1ce   : > { %v1602_v25 = vrot.slane %v1600_v63, 5  ;;  %v2386_v21 = vsel %vm2354_vm6, 65537, %v9624_v53  ;;  %v2082_v15 = vrot.slane %v2080_v2, 3  ;;  %v2085_v24 = vrot.slane %v2083_v16, 4 }
 0x1cf   : > { %v2418_v18 = vunpack.c.l.b16 %v2386_v21  ;;  %v8335_v19 = vadd.f32 %v7826_v5, %v7077_v4  ;;  %v9803_v60 = vrot.slane %v8212_v52, 4  ;;  %v9804_v63 = vrot.slane %v8100_v26, 4 }
 0x1d0   : > { %v8331_v61 = vor.u32 %v1602_v25, %v1599_v1  ;;  %vm9805_vm13 = vcmask 1043456   ;;  %v8344_v53 = vor.u32 %v3216_v59, %v3213_v41  ;;  %v8347_v16 = vpack.c.b16 %v760_v10, %v759_v34  ;;  %v2201_v25 = vpop.f32.mrf.mxu2  ;;  %4238 = vmatpush.bf16.msra.mxu3 %v6328_v8  ;;  %v3339_v41 = vpop.f32.mrf.mxu0 }
 0x1d1   : > { %9802 = vst [vmem:[#allocation95_spill] sm:$0xff] %v8335_v19  ;;  %v8342_v11 = vsel %vm9805_vm13, %v9804_v63, %v9803_v60  ;;  %v2434_v2 = vpack.c.b16 %v2418_v18, %v7027_v0  ;;  %v2845_v55 = vrot.slane %v2843_v6, 4  ;;  %v2848_v5 = vrot.slane %v2846_v43, 5  ;;  %v2964_v10 = vpop.f32.mrf.mxu3 }
 0x1d2   : > { %9806 = vst [vmem:[#allocation96_spill] sm:$0xff] %v8342_v11  ;;  %1938 = vmatmul.bf16.gmra.mxu1 %v8342_v11  ;;  %vm9807_vm8 = vsmask.f32 3328  ;;  %v2202_v21 = vadd.f32 %v2201_v25, %v8281_v47  ;;  %v8354_v59 = vor.u32 %v2085_v24, %v2082_v15  ;;  %v8358_v34 = vadd.f32 %v7893_v46, %v7077_v4  ;;  %v6326_v24 = vld [vmem:[#allocation7 + $0x1a0] sm:$0xff] }
 0x1d3   : > { %v1604_v1 = vsel %vm9807_vm8, %v8264_v23, %v8331_v61  ;;  %v8360_v6 = vadd.f32 %v3339_v41, %v3030_v7  ;;  %v2570_v43 = vshrl.u32 %v2434_v2, 16  ;;  %v2573_v27 = vshll.u32 %v2434_v2, 16 }
 0x1d4   : > { %v1703_v0 = vunpack.c.l.b16 %v1604_v1  ;;  %v1704_v18 = vunpack.c.h.b16 %v1604_v1  ;;  %9808 = vst [vmem:[#allocation97_spill] sm:$0xff] %v8358_v34  ;;  %v3031_v60 = vadd.f32 %v2964_v10, %v2202_v21  ;;  %vm9809_vm14 = vsmask.f32 4352  ;;  %4239 = vmatpush.bf16.msra.mxu3 %v6327_v33 }
 0x1d5   : > { %v3218_v23 = vsel %vm9809_vm14, %v8222_v28, %v8344_v53  ;;  %v8367_v47 = vor.u32 %v2848_v5, %v2845_v55  ;;  %v3075_v46 = vsel %vm8292_vm7, %v8347_v16, 0  ;;  %v9810_v7 = vmov 0  ;;  %v1901_v28 = vpop.f32.mrf.mxu1  ;;  %vm9812_vm8 = vmmov %vm9809_vm14 }
 0x1d6   : > { %vm1707_vm2 = vcmp.ne.s32.totalorder %v1703_v0, %v7080_v9  ;;  %vm1708_vm6 = vcmp.ne.s32.totalorder %v1704_v18, %v7084_v12  ;;  %3378 = vmatmul.bf16.gmra.mxu0 %v3218_v23  ;;  %v2572_v8 = vrot.slane %v2570_v43, 3  ;;  %v2575_v15 = vrot.slane %v2573_v27, 4 }
 0x1d7   : > { %vm8372_vm13 = vmpackc.low %vm1708_vm6, %vm1707_vm2  ;;  %v2087_v63 = vsel %vm9812_vm8, %v8253_v58, %v8354_v59  ;;  %v697_v25 = vpack.c.bf16 %v8335_v19, %v8335_v19  ;;  %v698_v55 = vpack.c.bf16 %v8358_v34, %v8358_v34  ;;  %v3220_v1 = vshrl.u32 %v3075_v46, 16  ;;  %v6317_v34 = vld [vmem:[#allocation7 + $0x158] sm:$0xff] }
 0x1d8   : > { %v9811_v7 = vsel %vm8372_vm13, 4294967295, %v9810_v7  ;;  %v1731_v2 = vsel %vm8372_vm13, %v8347_v16, 0  ;;  %2243 = vmatmul.bf16.gmra.mxu2 %v2087_v63  ;;  %v8386_v5 = vor.u32 %v2575_v15, %v2572_v8  ;;  %v3223_v33 = vshll.u32 %v3075_v46, 16  ;;  %v2204_v58 = vpop.f32.mrf.mxu2  ;;  %vm9814_vm2 = vmmov %vm9812_vm8  ;;  %4240 = vmatpush.bf16.msra.mxu3 %v6326_v24  ;;  %v3341_v10 = vpop.f32.mrf.mxu0  ;;  %v6325_v19 = vld [vmem:[#allocation7 + $0x198] sm:$0xff] }
 0x1d9   : > { %vm9813_vm14 = vsmask.f32 3328  ;;  %v2089_v41 = vshrl.u32 %v1731_v2, 16  ;;  %v2205_v18 = vadd.f32 %v2204_v58, %v1899_v38  ;;  %v2092_v43 = vshll.u32 %v1731_v2, 16  ;;  %v2967_v13 = vpop.f32.mrf.mxu3  ;;  %3880 = vmatpush.bf16.msra.mxu2 %v6317_v34 }
 0x1da   : > { %v2850_v21 = vsel %vm9813_vm14, %v8283_v3, %v8367_v47  ;;  %v2577_v0 = vsel %vm9814_vm2, %v8272_v22, %v8386_v5  ;;  %v761_v8 = vunpack.c.l.b16 %v697_v25  ;;  %v762_v15 = vunpack.c.l.b16 %v698_v55  ;;  %v6337_v3 = vld [vmem:[#allocation7 + $0x1f8] sm:$0xff] }
 0x1db   : > { %v2676_v27 = vunpack.c.l.b16 %v2577_v0  ;;  %v2677_v23 = vunpack.c.h.b16 %v2577_v0  ;;  %3006 = vmatmul.bf16.gmra.mxu3 %v2850_v21  ;;  %v8394_v46 = vadd.f32 %v3341_v10, %v3031_v60  ;;  %v9512_v63 = vrot.slane %v8347_v16, 4  ;;  %4424 = vmatpush.bf16.msra.mxu0 %v6337_v3  ;;  %v6324_v21 = vld [vmem:[#allocation7 + $0x190] sm:$0xff]  ;;  %v6335_v3 = vld [vmem:[#allocation7 + $0x1e8] sm:$0xff] }
 0x1dc   : > { %v3222_v20 = vrot.slane %v3220_v1, 3  ;;  %v3225_v11 = vrot.slane %v3223_v33, 4  ;;  %v3032_v22 = vadd.f32 %v2967_v13, %v2205_v18  ;;  %v9815_v38 = vmov 0  ;;  %4241 = vmatpush.bf16.msra.mxu3 %v6325_v19  ;;  %v6336_v33 = vld [vmem:[#allocation7 + $0x1f0] sm:$0xff] }
 0x1dd   : > { %vm2680_vm6 = vcmp.ne.s32.totalorder %v2676_v27, %v7080_v9  ;;  %vm2681_vm8 = vcmp.ne.s32.totalorder %v2677_v23, %v7084_v12  ;;  %v1710_v60 = vunpack.c.l.b16 %v8331_v61  ;;  %v1711_v24 = vunpack.c.h.b16 %v8331_v61  ;;  %v1904_v2 = vpop.f32.mrf.mxu1  ;;  %v6316_v13 = vld [vmem:[#allocation7 + $0x150] sm:$0xff] }
 0x1de   : > { %vm8399_vm14 = vmpackc.low %vm2681_vm8, %vm2680_vm6  ;;  %v2091_v25 = vrot.slane %v2089_v41, 3  ;;  %v2094_v55 = vrot.slane %v2092_v43, 4  ;;  %v8408_v18 = vpack.c.b16 %v762_v15, %v761_v8  ;;  %v8412_v61 = vadd.f32 %v7958_v62, %v7077_v4  ;;  %3881 = vmatpush.bf16.msra.mxu2 %v6316_v13  ;;  %v6345_v13 = vld [vmem:[#allocation7 + $0x238] sm:$0xff] }
 0x1df   : > { %v9816_v38 = vsel %vm8399_vm14, 4294967295, %v9815_v38  ;;  %v2704_v1 = vsel %vm8399_vm14, %v8347_v16, 0  ;;  %v9818_v34 = vrot.slane %v8212_v52, 4  ;;  %vm9819_vm2 = vcmask 1043456   ;;  %4425 = vmatpush.bf16.msra.mxu0 %v6336_v33  ;;  %4785 = vmatpush.bf16.msrb.mxu1 %v6345_v13 }
 0x1e0   : > { %v2852_v58 = vshrl.u32 %v2704_v1, 16  ;;  %v2855_v0 = vshll.u32 %v2704_v1, 16  ;;  %9817 = vst [vmem:[#allocation98_spill] sm:$0xff] %v8412_v61  ;;  %v8421_v10 = vor.u32 %v3225_v11, %v3222_v20  ;;  %v2206_v19 = vpop.f32.mrf.mxu2  ;;  %vm8425_vm6 = vcmp.ne.s32.totalorder %v1710_v60, %v7080_v9  ;;  %v3344_v11 = vpop.f32.mrf.mxu0  ;;  %4242 = vmatpush.bf16.msra.mxu3 %v6324_v21  ;;  %v6315_v60 = vld [vmem:[#allocation7 + $0x148] sm:$0xff]  ;;  %v6334_v21 = vld [vmem:[#allocation7 + $0x1e0] sm:$0xff] }
 0x1e1   : > { %v8419_v41 = vsel %vm9819_vm2, %v9818_v34, %v9512_v63  ;;  %vm8430_vm8 = vcmp.ne.s32.totalorder %v1711_v24, %v7084_v12  ;;  %v2683_v62 = vunpack.c.l.b16 %v8386_v5  ;;  %v2684_v27 = vunpack.c.h.b16 %v8386_v5  ;;  %v6323_v24 = vld [vmem:[#allocation7 + $0x188] sm:$0xff]  ;;  %v2969_v63 = vpop.f32.mrf.mxu3 }
 0x1e2   : > { %1943 = vmatmul.bf16.gmra.mxu1 %v8419_v41  ;;  %v2207_v20 = vadd.f32 %v2206_v19, %v1901_v28  ;;  %v8436_v23 = vor.u32 %v2094_v55, %v2091_v25  ;;  %v2854_v8 = vrot.slane %v2852_v58, 4  ;;  %v2857_v15 = vrot.slane %v2855_v0, 5  ;;  %vm9523_vm14 = vmpackc.low %vm8430_vm8, %vm8425_vm6  ;;  %3882 = vmatpush.bf16.msra.mxu2 %v6315_v60  ;;  %v6314_v58 = vld [vmem:[#allocation7 + $0x140] sm:$0xff] }
 0x1e3   : > { %v8438_v1 = vadd.f32 %v3344_v11, %v3032_v22  ;;  %v699_v34 = vpack.c.bf16 %v8412_v61, %v8412_v61  ;;  %vm9824_vm2 = vsmask.f32 4352  ;;  %v3076_v22 = vsel %vm8372_vm13, %v8408_v18, 0  ;;  %4426 = vmatpush.bf16.msra.mxu0 %v6335_v3 }
 0x1e4   : > { %v3227_v28 = vsel %vm9824_vm2, %v8344_v53, %v8421_v10  ;;  %v3033_v5 = vadd.f32 %v2969_v63, %v2207_v20  ;;  %vm8453_vm7 = vcmp.ne.s32.totalorder %v2683_v62, %v7080_v9  ;;  %v9825_v25 = vmov 0  ;;  %4243 = vmatpush.bf16.msra.mxu3 %v6323_v24 }
 0x1e5   : > { %v9826_v25 = vsel %vm8453_vm7, 4294967295, %v9825_v25  ;;  %vm8458_vm1 = vcmp.ne.s32.totalorder %v2684_v27, %v7084_v12  ;;  %v9828_v55 = vmov 0  ;;  %v1906_v53 = vpop.f32.mrf.mxu1  ;;  %v2096_v63 = vsel %vm9824_vm2, %v8354_v59, %v8436_v23  ;;  %v6322_v59 = vld [vmem:[#allocation7 + $0x180] sm:$0xff] }
 0x1e6   : > { %3383 = vmatmul.bf16.gmra.mxu0 %v3227_v28  ;;  %9827 = vst [vmem:[#allocation99_spill] sm:$0xff] %v9826_v25  ;;  %v9829_v55 = vsel %vm8458_vm1, 4294967295, %v9828_v55  ;;  %v8465_v33 = vor.u32 %v2857_v15, %v2854_v8  ;;  %v1732_v0 = vsel %vm9523_vm14, %v8408_v18, 0  ;;  %v3229_v19 = vshrl.u32 %v3076_v22, 16  ;;  %vm9522_vm2 = vmpackc.low %vm8458_vm1, %vm8453_vm7  ;;  %3883 = vmatpush.bf16.msra.mxu2 %v6314_v58  ;;  %v6333_v28 = vld [vmem:[#allocation7 + $0x1d8] sm:$0xff]  ;;  %v6332_v25 = vld [vmem:[#allocation7 + $0x1d0] sm:$0xff] }
 0x1e7   : > { %9830 = vst [vmem:[#allocation100_spill] sm:$0xff] %v9829_v55  ;;  %v3232_v62 = vshll.u32 %v3076_v22, 16  ;;  %v763_v27 = vunpack.c.l.b16 %v699_v34  ;;  %vm9831_vm13 = vsmask.f32 3328  ;;  %v2098_v3 = vshrl.u32 %v1732_v0, 16  ;;  %4427 = vmatpush.bf16.msra.mxu0 %v6334_v21  ;;  %vm9840_vm1 = vmpackc.low %vm8430_vm8, %vm8425_vm6 }
 0x1e8   : > { %2248 = vmatmul.bf16.gmra.mxu2 %v2096_v63  ;;  %v2209_v20 = vpop.f32.mrf.mxu2  ;;  %v2859_v11 = vsel %vm9831_vm13, %v8367_v47, %v8465_v33  ;;  %v3346_v15 = vpop.f32.mrf.mxu0  ;;  %v2101_v60 = vshll.u32 %v1732_v0, 16  ;;  %v2705_v34 = vsel %vm9522_vm2, %v8408_v18, 0  ;;  %v9528_v47 = vrot.slane %v8408_v18, 4  ;;  %4244 = vmatpush.bf16.msra.mxu3 %v6322_v59 }
 0x1e9   : > { %v2210_v8 = vadd.f32 %v2209_v20, %v1904_v2  ;;  %v8480_v24 = vadd.f32 %v3346_v15, %v3033_v5  ;;  %v2972_v22 = vpop.f32.mrf.mxu3  ;;  %v3231_v2 = vrot.slane %v3229_v19, 3  ;;  %v3234_v63 = vrot.slane %v3232_v62, 4 }
 0x1ea   : > { %v3620_v13 = vunpack.c.l.b16 %v7054_v49  ;;  %v3621_v21 = vunpack.c.h.b16 %v7054_v49  ;;  %v780_v5 = vpack.c.b16 %v763_v27, %v763_v27  ;;  %v2100_v20 = vrot.slane %v2098_v3, 3 }
 0x1eb   : > { %3011 = vmatmul.bf16.gmra.mxu3 %v2859_v11  ;;  %v3034_v58 = vadd.f32 %v2972_v22, %v2210_v8  ;;  %v2103_v11 = vrot.slane %v2101_v60, 4  ;;  %v2861_v15 = vshrl.u32 %v2705_v34, 16  ;;  %v2864_v61 = vshll.u32 %v2705_v34, 16  ;;  %4428 = vmatpush.bf16.msra.mxu0 %v6333_v28 }
 0x1ec   : > { %v9832_v55 = vrot.slane %v8347_v16, 4  ;;  %vm9833_vm13 = vcmask 1043456   ;;  %v8498_v62 = vor.u32 %v3234_v63, %v3231_v2  ;;  %vm8501_vm2 = vcmp.ne.s32.totalorder %v3620_v13, %v7080_v9  ;;  %v6331_v9 = vld [vmem:[#allocation7 + $0x1c8] sm:$0xff] }
 0x1ed   : > { %v1909_v0 = vpop.f32.mrf.mxu1  ;;  %vm8506_vm14 = vcmp.ne.s32.totalorder %v3621_v21, %v7084_v12  ;;  %vm9838_vm7 = vmmov %vm9833_vm13  ;;  %v2104_v60 = vor.u32 %v2103_v11, %v2100_v20  ;;  %v2863_v34 = vrot.slane %v2861_v15, 4  ;;  %v2866_v28 = vrot.slane %v2864_v61, 5  ;;  %v6330_v21 = vld [vmem:[#allocation7 + $0x1c0] sm:$0xff] }
 0x1ee   : > { %v8496_v19 = vsel %vm9833_vm13, %v9832_v55, %v9528_v47  ;;  %v8511_v27 = vsel %vm9838_vm7, %v780_v5, 0  ;;  %vm9839_vm13 = vsmask.f32 4352  ;;  %vm9534_vm7 = vmpackc.low %vm8506_vm14, %vm8501_vm2 }
 0x1ef   : > { %4429 = vmatpush.bf16.msra.mxu0 %v6332_v25  ;;  %v3236_v12 = vsel %vm9839_vm13, %v8421_v10, %v8498_v62  ;;  %v3077_v61 = vsel %vm9840_vm1, %v8511_v27, 0  ;;  %vm9841_vm5 = vmmov %vm9839_vm13  ;;  %v2867_v13 = vor.u32 %v2866_v28, %v2863_v34  ;;  %v3628_v10 = vsel %vm7130_vm11, %v7244_v31, 0 }
 0x1f0   : > { %v2211_v8 = vpop.f32.mrf.mxu2  ;;  %v3349_v3 = vpop.f32.mrf.mxu0  ;;  %v3627_v43 = vsel %vm9534_vm7, %v7143_v51, 0  ;;  %v3238_v4 = vshrl.u32 %v3077_v61, 16  ;;  %v3241_v5 = vshll.u32 %v3077_v61, 16  ;;  %v3672_v15 = vshll.u32 %v3628_v10, 16  ;;  %vm9843_vm1 = vmpackc.low %vm7138_vm12, %vm7123_vm10 }
 0x1f1   : > { %v2212_v55 = vadd.f32 %v2211_v8, %v1906_v53  ;;  %v8514_v22 = vadd.f32 %v3349_v3, %v3034_v58  ;;  %v2974_v2 = vpop.f32.mrf.mxu3  ;;  %v2105_v53 = vsel %vm9841_vm5, %v8436_v23, %v2104_v60  ;;  %v3669_v58 = vshrl.u32 %v3628_v10, 16 }
 0x1f2   : > { %1948 = vmatmul.bf16.gmra.mxu1 %v8496_v19  ;;  %vm9842_vm5 = vsmask.f32 3328  ;;  %v3661_v3 = vshrl.u32 %v3627_v43, 16  ;;  %v3998_v60 = vsel %vm7118_vm9, %v7350_v50, 0  ;;  %v3240_v51 = vrot.slane %v3238_v4, 3  ;;  %vm9844_vm9 = vmmov %vm9839_vm13 }
 0x1f3   : > { %v3035_v63 = vadd.f32 %v2974_v2, %v2212_v55  ;;  %4430 = vmatpush.bf16.msra.mxu0 %v6331_v9  ;;  %v2868_v23 = vsel %vm9842_vm5, %v8465_v33, %v2867_v13  ;;  %v3243_v34 = vrot.slane %v3241_v5, 4  ;;  %v3664_v28 = vshll.u32 %v3627_v43, 16  ;;  %vm9845_vm10 = vmmov %vm9842_vm5 }
 0x1f4   : > { %v3997_v33 = vsel %vm9843_vm1, %v7244_v31, 0  ;;  %v3671_v2 = vrot.slane %v3669_v58, 4  ;;  %v4038_v61 = vshrl.u32 %v3998_v60, 16  ;;  %v3663_v13 = vrot.slane %v3661_v3, 4  ;;  %vm9846_vm12 = vmmov %vm9844_vm9 }
 0x1f5   : > { %v1911_v25 = vpop.f32.mrf.mxu1  ;;  %v3244_v37 = vor.u32 %v3243_v34, %v3240_v51  ;;  %v3666_v10 = vrot.slane %v3664_v28, 5  ;;  %v4033_v4 = vshll.u32 %v3997_v33, 16  ;;  %vm9851_vm6 = vmmov %vm9844_vm9  ;;  %vm9928_vm7 = vsmask.f32 4352 }
 0x1f6   : > { %3388 = vmatmul.bf16.gmra.mxu0 %v3236_v12  ;;  %v4040_v39 = vrot.slane %v4038_v61, 3  ;;  %vm9858_vm13 = vmmov %vm9851_vm6 }
 0x1f7   : > { %4431 = vmatpush.bf16.msra.mxu0 %v6330_v21  ;;  %v4030_v21 = vshrl.u32 %v3997_v33, 16  ;;  %v3245_v58 = vsel %vm9844_vm9, %v8498_v62, %v3244_v37  ;;  %v4035_v3 = vrot.slane %v4033_v4, 4  ;;  %v6344_v33 = vld [vmem:[#allocation7 + $0x230] sm:$0xff] }
 0x1f8   : > { %2253 = vmatmul.bf16.gmra.mxu2 %v2105_v53  ;;  %v2214_v20 = vpop.f32.mrf.mxu2  ;;  %v3351_v11 = vpop.f32.mrf.mxu0  ;;  %v4041_v53 = vshll.u32 %v3998_v60, 16  ;;  %4786 = vmatpush.bf16.msrb.mxu1 %v6344_v33 }
 0x1f9   : > { %v2215_v8 = vadd.f32 %v2214_v20, %v1909_v0  ;;  %v8542_v55 = vadd.f32 %v3351_v11, %v3035_v63  ;;  %v2977_v9 = vpop.f32.mrf.mxu3  ;;  %v3674_v63 = vrot.slane %v3672_v15, 5  ;;  %v3667_v15 = vor.u32 %v3666_v10, %v3663_v13 }
 0x1fa   : > { %v3999_v10 = vsel %vm7238_vm3, %v7452_v36, 0  ;;  %vm9849_vm3 = vmmov %vm9842_vm5 }
 0x1fb   : > { %3016 = vmatmul.bf16.gmra.mxu3 %v2868_v23  ;;  %v3036_v0 = vadd.f32 %v2977_v9, %v2215_v8  ;;  %v3675_v5 = vor.u32 %v3674_v63, %v3671_v2  ;;  %v4043_v23 = vrot.slane %v4041_v53, 4  ;;  %v4032_v8 = vrot.slane %v4030_v21, 3  ;;  %vm9865_vm1 = vmmov %vm9849_vm3 }
 0x1fd   : > { %v1914_v12 = vpop.f32.mrf.mxu1  ;;  %v4044_v28 = vor.u32 %v4043_v23, %v4040_v39  ;;  %v4036_v9 = vor.u32 %v4035_v3, %v4032_v8  ;;  %v4047_v39 = vshrl.u32 %v3999_v10, 16  ;;  %v4050_v23 = vshll.u32 %v3999_v10, 16 }
 0x1ff   : > { %v4045_v62 = vsel %vm9846_vm12, %v4036_v9, %v4044_v28 }
 0x200   : > { %v2216_v43 = vpop.f32.mrf.mxu2  ;;  %v3354_v44 = vpop.f32.mrf.mxu0 }
 0x201   : > { %v2217_v20 = vadd.f32 %v2216_v43, %v1911_v25  ;;  %v8554_v11 = vadd.f32 %v3354_v44, %v3036_v0  ;;  %v2979_v60 = vpop.f32.mrf.mxu3  ;;  %v3629_v25 = vsel %vm7250_vm4, %v7350_v50, 0 }
 0x202   : > { %3507 = vmatmul.bf16.vlgmr.msra.gmra.mxu1 %v7278_v29  ;;  %v3676_v29 = vsel %vm9845_vm10, %v3667_v15, %v3675_v5  ;;  %v3678_v63 = vshrl.u32 %v3629_v25, 16  ;;  %v3681_v61 = vshll.u32 %v3629_v25, 16  ;;  %vm9868_vm10 = vmmov %vm9851_vm6 }
 0x203   : > { %v3037_v51 = vadd.f32 %v2979_v60, %v2217_v20  ;;  %v4049_v60 = vrot.slane %v4047_v39, 3 }
 0x204   : > { %v3680_v43 = vrot.slane %v3678_v63, 4  ;;  %v3683_v44 = vrot.slane %v3681_v61, 5  ;;  %v3630_v63 = vsel %vm7359_vm0, %v7452_v36, 0 }
 0x205   : > { %v1916_v34 = vpop.f32.mrf.mxu1  ;;  %v3690_v10 = vshll.u32 %v3630_v63, 16 }
 0x206   : > { %3393 = vmatmul.bf16.gmra.mxu0 %v3245_v58  ;;  %v9848_v58 = vld [vmem:[#allocation33_spill] sm:$0xff]  ;;  %v3684_v3 = vor.u32 %v3683_v44, %v3680_v43  ;;  %v9852_v44 = vld [vmem:[#allocation40_spill] sm:$0xff] }
 0x208   : > { %3884 = vmatmul.bf16.vlgmr.msra.gmra.mxu2 %v3676_v29  ;;  %v2219_v2 = vpop.f32.mrf.mxu2  ;;  %v3356_v0 = vpop.f32.mrf.mxu0  ;;  %v3685_v9 = vsel %vm9849_vm3, %v3675_v5, %v3684_v3  ;;  %v4000_v5 = vsel %vm7346_vm15, %v9852_v44, 0  ;;  %vm9855_vm15 = vmmov %vm9849_vm3 }
 0x209   : > { %v2220_v53 = vadd.f32 %v2219_v2, %v1914_v12  ;;  %v8563_v13 = vadd.f32 %v3356_v0, %v3037_v51  ;;  %v2982_v21 = vpop.f32.mrf.mxu3  ;;  %v4052_v12 = vrot.slane %v4050_v23, 4  ;;  %vm9875_vm3 = vmmov %vm9865_vm1 }
 0x20b   : > { %4245 = vmatmul.bf16.vlgmr.msra.gmra.mxu3 %v4045_v62  ;;  %v3038_v20 = vadd.f32 %v2982_v21, %v2220_v53  ;;  %v4053_v62 = vor.u32 %v4052_v12, %v4049_v60  ;;  %v4059_v60 = vshll.u32 %v4000_v5, 16 }
 0x20d   : > { %v1919_v4 = vpop.f32.mrf.mxu1  ;;  %v4054_v61 = vsel %vm9851_vm6, %v4044_v28, %v4053_v62  ;;  %v9854_v28 = vld [vmem:[#allocation39_spill] sm:$0xff] }
 0x210   : > { %v2221_v15 = vpop.f32.mrf.mxu2  ;;  %v3359_v8 = vpop.f32.mrf.mxu0 }
 0x211   : > { %v2222_v51 = vadd.f32 %v2221_v15, %v1916_v34  ;;  %v8569_v29 = vadd.f32 %v3359_v8, %v3038_v20  ;;  %v2984_v25 = vpop.f32.mrf.mxu3  ;;  %v3687_v34 = vshrl.u32 %v3630_v63, 16  ;;  %v3692_v15 = vrot.slane %v3690_v10, 5 }
 0x212   : > { %3512 = vmatmul.bf16.gmra.mxu1 %v9848_v58  ;;  %v4056_v8 = vshrl.u32 %v4000_v5, 16 }
 0x213   : > { %v3039_v2 = vadd.f32 %v2984_v25, %v2222_v51 }
 0x214   : > { %v4058_v63 = vrot.slane %v4056_v8, 3 }
 0x215   : > { %v1921_v33 = vpop.f32.mrf.mxu1 }
 0x216   : > { %4432 = vmatmul.bf16.vlgmr.msra.gmra.mxu0 %v9848_v58  ;;  %v3689_v58 = vrot.slane %v3687_v34, 4 }
 0x218   : > { %3889 = vmatmul.bf16.gmra.mxu2 %v3685_v9  ;;  %v2224_v53 = vpop.f32.mrf.mxu2  ;;  %v3361_v37 = vpop.f32.mrf.mxu0  ;;  %v3693_v9 = vor.u32 %v3692_v15, %v3689_v58 }
 0x219   : > { %v2225_v21 = vadd.f32 %v2224_v53, %v1919_v4  ;;  %v8577_v43 = vadd.f32 %v3361_v37, %v3039_v2  ;;  %v2987_v23 = vpop.f32.mrf.mxu3  ;;  %v4061_v4 = vrot.slane %v4059_v60, 4 }
 0x21a   : > { %v3694_v34 = vsel %vm9855_vm15, %v3684_v3, %v3693_v9  ;;  %v9860_v3 = vld [vmem:[#allocation48_spill] sm:$0xff]  ;;  %vm9878_vm15 = vmmov %vm9868_vm10 }
 0x21b   : > { %4250 = vmatmul.bf16.gmra.mxu3 %v4054_v61  ;;  %v3040_v12 = vadd.f32 %v2987_v23, %v2225_v21  ;;  %v4062_v10 = vor.u32 %v4061_v4, %v4058_v63  ;;  %v9856_v21 = vld [vmem:[#allocation37_spill] sm:$0xff]  ;;  %v6343_v23 = vld [vmem:[#allocation7 + $0x228] sm:$0xff] }
 0x21c   : > { %vm9857_vm8 = vnez %v9856_v21  ;;  %4787 = vmatpush.bf16.msrb.mxu1 %v6343_v23 }
 0x21d   : > { %v1924_v20 = vpop.f32.mrf.mxu1  ;;  %v3631_v5 = vsel %vm9857_vm8, %v9852_v44, 0  ;;  %v4063_v58 = vsel %vm9858_vm13, %v4053_v62, %v4062_v10  ;;  %v9863_v62 = vld [vmem:[#allocation50_spill] sm:$0xff] }
 0x21e   : > { %v3696_v8 = vshrl.u32 %v3631_v5, 16  ;;  %v3699_v60 = vshll.u32 %v3631_v5, 16 }
 0x220   : > { %v2226_v51 = vpop.f32.mrf.mxu2  ;;  %v3364_v25 = vpop.f32.mrf.mxu0 }
 0x221   : > { %v2227_v2 = vadd.f32 %v2226_v51, %v1921_v33  ;;  %v8583_v61 = vadd.f32 %v3364_v25, %v3040_v12  ;;  %v2989_v53 = vpop.f32.mrf.mxu3  ;;  %v9861_v51 = vld [vmem:[#allocation36_spill] sm:$0xff] }
 0x222   : > { %3517 = vmatmul.bf16.gmra.mxu1 %v9854_v28  ;;  %vm9862_vm5 = vnez %v9861_v51 }
 0x223   : > { %v3041_v39 = vadd.f32 %v2989_v53, %v2227_v2  ;;  %v4001_v25 = vsel %vm9862_vm5, %v9860_v3, 0  ;;  %v3698_v2 = vrot.slane %v3696_v8, 4  ;;  %v3701_v53 = vrot.slane %v3699_v60, 5  ;;  %vm9885_vm5 = vmmov %vm9865_vm1 }
 0x224   : > { %v4068_v23 = vshll.u32 %v4001_v25, 16 }
 0x225   : > { %v1926_v37 = vpop.f32.mrf.mxu1  ;;  %v3702_v5 = vor.u32 %v3701_v53, %v3698_v2 }
 0x226   : > { %4437 = vmatmul.bf16.gmra.mxu0 %v9854_v28 }
 0x227   : > { %v3703_v8 = vsel %vm9865_vm1, %v3693_v9, %v3702_v5 }
 0x228   : > { %3894 = vmatmul.bf16.gmra.mxu2 %v3694_v34  ;;  %v2229_v33 = vpop.f32.mrf.mxu2  ;;  %v3366_v15 = vpop.f32.mrf.mxu0  ;;  %v4065_v34 = vshrl.u32 %v4001_v25, 16 }
 0x229   : > { %v2230_v12 = vadd.f32 %v2229_v33, %v1924_v20  ;;  %v8591_v28 = vadd.f32 %v3366_v15, %v3041_v39  ;;  %v2992_v63 = vpop.f32.mrf.mxu3  ;;  %v4070_v20 = vrot.slane %v4068_v23, 4  ;;  %v9871_v23 = vld [vmem:[#allocation41_spill] sm:$0xff] }
 0x22a   : > { %vm9872_vm12 = vnez %v9871_v23 }
 0x22b   : > { %4255 = vmatmul.bf16.gmra.mxu3 %v4063_v58  ;;  %9859 = vst [vmem:[#allocation26_spill] sm:$0xff] %v8591_v28  ;;  %v3042_v47 = vadd.f32 %v2992_v63, %v2230_v12  ;;  %v4067_v58 = vrot.slane %v4065_v34, 3  ;;  %v9866_v12 = vld [vmem:[#allocation46_spill] sm:$0xff]  ;;  %v9870_v34 = vld [vmem:[#allocation51_spill] sm:$0xff] }
 0x22c   : > { %vm9867_vm9 = vnez %v9866_v12  ;;  %v4002_v9 = vsel %vm9872_vm12, %v9870_v34, 0 }
 0x22d   : > { %v1929_v4 = vpop.f32.mrf.mxu1  ;;  %v4071_v60 = vor.u32 %v4070_v20, %v4067_v58  ;;  %v3632_v25 = vsel %vm9867_vm9, %v9860_v3, 0 }
 0x22f   : > { %v4072_v63 = vsel %vm9868_vm10, %v4062_v10, %v4071_v60  ;;  %v9873_v10 = vld [vmem:[#allocation56_spill] sm:$0xff] }
 0x230   : > { %v2231_v21 = vpop.f32.mrf.mxu2  ;;  %v3369_v0 = vpop.f32.mrf.mxu0 }
 0x231   : > { %v2232_v39 = vadd.f32 %v2231_v21, %v1926_v37  ;;  %v8597_v33 = vadd.f32 %v3369_v0, %v3042_v47  ;;  %v2994_v15 = vpop.f32.mrf.mxu3  ;;  %v3705_v37 = vshrl.u32 %v3632_v25, 16  ;;  %v3708_v47 = vshll.u32 %v3632_v25, 16 }
 0x232   : > { %3522 = vmatmul.bf16.gmra.mxu1 %v9863_v62 }
 0x233   : > { %9864 = vst [vmem:[#allocation33_spill] sm:$0xff] %v8597_v33  ;;  %v3043_v28 = vadd.f32 %v2994_v15, %v2232_v39  ;;  %v3707_v20 = vrot.slane %v3705_v37, 4  ;;  %v3710_v39 = vrot.slane %v3708_v47, 5  ;;  %v4074_v15 = vshrl.u32 %v4002_v9, 16 }
 0x235   : > { %v1931_v51 = vpop.f32.mrf.mxu1  ;;  %v3711_v25 = vor.u32 %v3710_v39, %v3707_v20 }
 0x236   : > { %4442 = vmatmul.bf16.gmra.mxu0 %v9863_v62 }
 0x237   : > { %v3712_v37 = vsel %vm9875_vm3, %v3702_v5, %v3711_v25  ;;  %v9880_v5 = vld [vmem:[#allocation52_spill] sm:$0xff] }
 0x238   : > { %3899 = vmatmul.bf16.gmra.mxu2 %v3703_v8  ;;  %v2234_v2 = vpop.f32.mrf.mxu2  ;;  %v3371_v53 = vpop.f32.mrf.mxu0  ;;  %v4077_v8 = vshll.u32 %v4002_v9, 16 }
 0x239   : > { %v2235_v0 = vadd.f32 %v2234_v2, %v1929_v4  ;;  %v8605_v21 = vadd.f32 %v3371_v53, %v3043_v28 }
 0x23a   : > { %v4079_v4 = vrot.slane %v4077_v8, 4  ;;  %v9881_v8 = vld [vmem:[#allocation57_spill] sm:$0xff] }
 0x23b   : > { %4260 = vmatmul.bf16.gmra.mxu3 %v4072_v63  ;;  %9869 = vst [vmem:[#allocation40_spill] sm:$0xff] %v8605_v21  ;;  %v4076_v63 = vrot.slane %v4074_v15, 3  ;;  %vm9882_vm13 = vnez %v9881_v8 }
 0x23c   : > { %v2997_v62 = vpop.f32.mrf.mxu3 }
 0x23d   : > { %v1934_v58 = vpop.f32.mrf.mxu1  ;;  %v3044_v12 = vadd.f32 %v2997_v62, %v2235_v0  ;;  %v4080_v47 = vor.u32 %v4079_v4, %v4076_v63  ;;  %v9876_v0 = vld [vmem:[#allocation59_spill] sm:$0xff] }
 0x23e   : > { %vm9877_vm6 = vnez %v9876_v0  ;;  %v6342_v62 = vld [vmem:[#allocation7 + $0x220] sm:$0xff] }
 0x23f   : > { %v3633_v9 = vsel %vm9877_vm6, %v9870_v34, 0  ;;  %4788 = vmatpush.bf16.msrb.mxu1 %v6342_v62  ;;  %v4081_v20 = vsel %vm9878_vm15, %v4071_v60, %v4080_v47  ;;  %v9883_v60 = vld [vmem:[#allocation64_spill] sm:$0xff] }
 0x240   : > { %v2236_v3 = vpop.f32.mrf.mxu2  ;;  %v3374_v33 = vpop.f32.mrf.mxu0 }
 0x241   : > { %v2237_v28 = vadd.f32 %v2236_v3, %v1931_v51  ;;  %v8611_v2 = vadd.f32 %v3374_v33, %v3044_v12  ;;  %v3714_v51 = vshrl.u32 %v3633_v9, 16  ;;  %v3717_v12 = vshll.u32 %v3633_v9, 16 }
 0x242   : > { %3527 = vmatmul.bf16.gmra.mxu1 %v9873_v10 }
 0x243   : > { %9874 = vst [vmem:[#allocation30_spill] sm:$0xff] %v8611_v2 }
 0x244   : > { %v2999_v53 = vpop.f32.mrf.mxu3 }
 0x245   : > { %v1936_v23 = vpop.f32.mrf.mxu1  ;;  %v3045_v21 = vadd.f32 %v2999_v53, %v2237_v28  ;;  %v3716_v28 = vrot.slane %v3714_v51, 4  ;;  %v3719_v53 = vrot.slane %v3717_v12, 5 }
 0x246   : > { %4447 = vmatmul.bf16.gmra.mxu0 %v9873_v10  ;;  %v4003_v10 = vsel %vm9882_vm13, %v9880_v5, 0  ;;  %vm9895_vm13 = vmmov %vm9868_vm10 }
 0x247   : > { %v4086_v62 = vshll.u32 %v4003_v10, 16  ;;  %v3720_v9 = vor.u32 %v3719_v53, %v3716_v28 }
 0x248   : > { %3904 = vmatmul.bf16.gmra.mxu2 %v3712_v37  ;;  %v2239_v3 = vpop.f32.mrf.mxu2  ;;  %v3376_v33 = vpop.f32.mrf.mxu0  ;;  %v4083_v37 = vshrl.u32 %v4003_v10, 16 }
 0x249   : > { %v2240_v39 = vadd.f32 %v2239_v3, %v1934_v58  ;;  %v8619_v15 = vadd.f32 %v3376_v33, %v3045_v21  ;;  %v4088_v58 = vrot.slane %v4086_v62, 4  ;;  %v3721_v51 = vsel %vm9885_vm5, %v3711_v25, %v3720_v9  ;;  %v9890_v62 = vld [vmem:[#allocation65_spill] sm:$0xff] }
 0x24a   : > { %vm9891_vm12 = vnez %v9890_v62 }
 0x24b   : > { %4265 = vmatmul.bf16.gmra.mxu3 %v4081_v20  ;;  %9879 = vst [vmem:[#allocation39_spill] sm:$0xff] %v8619_v15  ;;  %v4085_v20 = vrot.slane %v4083_v37, 3  ;;  %v9889_v37 = vld [vmem:[#allocation62_spill] sm:$0xff] }
 0x24c   : > { %v4004_v25 = vsel %vm9891_vm12, %v9889_v37, 0 }
 0x24d   : > { %v4089_v12 = vor.u32 %v4088_v58, %v4085_v20 }
 0x24e   : > { %v3002_v63 = vpop.f32.mrf.mxu3 }
 0x24f   : > { %v1939_v4 = vpop.f32.mrf.mxu1  ;;  %v3046_v0 = vadd.f32 %v3002_v63, %v2240_v39  ;;  %v9886_v39 = vld [vmem:[#allocation67_spill] sm:$0xff]  ;;  %v4090_v63 = vsel %vm9868_vm10, %v4080_v47, %v4089_v12  ;;  %v9892_v47 = vld [vmem:[#allocation72_spill] sm:$0xff]  ;;  %vm9900_vm10 = vmmov %vm9875_vm3 }
 0x250   : > { %v2241_v34 = vpop.f32.mrf.mxu2  ;;  %vm9887_vm1 = vnez %v9886_v39 }
 0x251   : > { %v2242_v21 = vadd.f32 %v2241_v34, %v1936_v23  ;;  %v3634_v10 = vsel %vm9887_vm1, %v9880_v5, 0 }
 0x252   : > { %3532 = vmatmul.bf16.gmra.mxu1 %v9883_v60  ;;  %v3723_v34 = vshrl.u32 %v3634_v10, 16 }
 0x253   : > { %v3379_v2 = vpop.f32.mrf.mxu0 }
 0x254   : > { %v8625_v3 = vadd.f32 %v3379_v2, %v3046_v0  ;;  %v3726_v2 = vshll.u32 %v3634_v10, 16  ;;  %v3725_v58 = vrot.slane %v3723_v34, 4 }
 0x256   : > { %9884 = vst [vmem:[#allocation36_spill] sm:$0xff] %v8625_v3  ;;  %4452 = vmatmul.bf16.gmra.mxu0 %v9883_v60  ;;  %v3004_v33 = vpop.f32.mrf.mxu3 }
 0x257   : > { %v1941_v8 = vpop.f32.mrf.mxu1  ;;  %v3047_v15 = vadd.f32 %v3004_v33, %v2242_v21  ;;  %v3728_v21 = vrot.slane %v3726_v2, 5  ;;  %v4092_v33 = vshrl.u32 %v4004_v25, 16 }
 0x258   : > { %3909 = vmatmul.bf16.gmra.mxu2 %v3721_v51  ;;  %v4095_v51 = vshll.u32 %v4004_v25, 16 }
 0x259   : > { %v3729_v10 = vor.u32 %v3728_v21, %v3725_v58 }
 0x25b   : > { %v2244_v28 = vpop.f32.mrf.mxu2  ;;  %v3381_v53 = vpop.f32.mrf.mxu0  ;;  %4270 = vmatmul.bf16.gmra.mxu3 %v4090_v63  ;;  %v4094_v63 = vrot.slane %v4092_v33, 3  ;;  %v3730_v34 = vsel %vm9875_vm3, %v3720_v9, %v3729_v10  ;;  %v9897_v9 = vld [vmem:[#allocation74_spill] sm:$0xff]  ;;  %vm9903_vm3 = vmmov %vm9895_vm13 }
 0x25c   : > { %v2245_v23 = vadd.f32 %v2244_v28, %v1939_v4  ;;  %v8633_v0 = vadd.f32 %v3381_v53, %v3047_v15  ;;  %v4097_v4 = vrot.slane %v4095_v51, 4  ;;  %vm9898_vm5 = vnez %v9897_v9 }
 0x25d   : > { %v4005_v51 = vsel %vm9898_vm5, %v7814_v14, 0  ;;  %vm9909_vm5 = vmmov %vm9900_vm10 }
 0x25e   : > { %9888 = vst [vmem:[#allocation50_spill] sm:$0xff] %v8633_v0  ;;  %v3007_v60 = vpop.f32.mrf.mxu3  ;;  %v4098_v2 = vor.u32 %v4097_v4, %v4094_v63 }
 0x25f   : > { %v1944_v20 = vpop.f32.mrf.mxu1  ;;  %v3048_v39 = vadd.f32 %v3007_v60, %v2245_v23  ;;  %v9893_v23 = vld [vmem:[#allocation75_spill] sm:$0xff]  ;;  %v6341_v60 = vld [vmem:[#allocation7 + $0x218] sm:$0xff] }
 0x260   : > { %vm9894_vm15 = vnez %v9893_v23  ;;  %4789 = vmatpush.bf16.msrb.mxu1 %v6341_v60  ;;  %v4099_v58 = vsel %vm9895_vm13, %v4089_v12, %v4098_v2  ;;  %v6353_v12 = vld [vmem:[#allocation8 + $0x38] sm:$0xff]  ;;  %v9899_v23 = vld [vmem:[#allocation76_spill] sm:$0xff] }
 0x261   : > { %v3635_v25 = vsel %vm9894_vm15, %v9889_v37, 0  ;;  %5051 = vmatpush.bf16.msrb.mxu2 %v6353_v12 }
 0x262   : > { %3537 = vmatmul.bf16.gmra.mxu1 %v9892_v47 }
 0x263   : > { %v2246_v5 = vpop.f32.mrf.mxu2  ;;  %v3384_v3 = vpop.f32.mrf.mxu0 }
 0x264   : > { %v2247_v15 = vadd.f32 %v2246_v5, %v1941_v8  ;;  %v8639_v28 = vadd.f32 %v3384_v3, %v3048_v39  ;;  %v3732_v8 = vshrl.u32 %v3635_v25, 16  ;;  %v3735_v39 = vshll.u32 %v3635_v25, 16 }
 0x266   : > { %4457 = vmatmul.bf16.gmra.mxu0 %v9892_v47  ;;  %v3009_v53 = vpop.f32.mrf.mxu3  ;;  %v3734_v4 = vrot.slane %v3732_v8, 4 }
 0x267   : > { %v1946_v62 = vpop.f32.mrf.mxu1  ;;  %v3049_v0 = vadd.f32 %v3009_v53, %v2247_v15  ;;  %v3737_v15 = vrot.slane %v3735_v39, 5  ;;  %v4101_v53 = vshrl.u32 %v4005_v51, 16 }
 0x268   : > { %3914 = vmatmul.bf16.gmra.mxu2 %v3730_v34  ;;  %v4104_v34 = vshll.u32 %v4005_v51, 16 }
 0x26b   : > { %v2249_v5 = vpop.f32.mrf.mxu2  ;;  %v3386_v3 = vpop.f32.mrf.mxu0  ;;  %4275 = vmatmul.bf16.gmra.mxu3 %v4099_v58 }
 0x26c   : > { %v2250_v21 = vadd.f32 %v2249_v5, %v1944_v20  ;;  %v8647_v33 = vadd.f32 %v3386_v3, %v3049_v0  ;;  %v3738_v20 = vor.u32 %v3737_v15, %v3734_v4  ;;  %v4103_v0 = vrot.slane %v4101_v53, 3 }
 0x26d   : > { %v4106_v5 = vrot.slane %v4104_v34, 4 }
 0x26e   : > { %9896 = vst [vmem:[#allocation41_spill] sm:$0xff] %v8647_v33  ;;  %v3012_v47 = vpop.f32.mrf.mxu3  ;;  %v3739_v39 = vsel %vm9900_vm10, %v3729_v10, %v3738_v20 }
 0x26f   : > { %v1949_v63 = vpop.f32.mrf.mxu1  ;;  %v3050_v60 = vadd.f32 %v3012_v47, %v2250_v21  ;;  %v4107_v51 = vor.u32 %v4106_v5, %v4103_v0  ;;  %v9901_v47 = vld [vmem:[#allocation78_spill] sm:$0xff] }
 0x270   : > { %vm9902_vm12 = vnez %v9901_v47 }
 0x271   : > { %v3636_v12 = vsel %vm9902_vm12, %v7814_v14, 0  ;;  %v4108_v4 = vsel %vm9903_vm3, %v4098_v2, %v4107_v51  ;;  %v9907_v14 = vld [vmem:[#allocation80_spill] sm:$0xff] }
 0x272   : > { %3542 = vmatmul.bf16.gmra.mxu1 %v9899_v23  ;;  %v3744_v34 = vshll.u32 %v3636_v12, 16 }
 0x273   : > { %v2251_v25 = vpop.f32.mrf.mxu2  ;;  %v3389_v58 = vpop.f32.mrf.mxu0 }
 0x274   : > { %v2252_v3 = vadd.f32 %v2251_v25, %v1946_v62  ;;  %v8653_v33 = vadd.f32 %v3389_v58, %v3050_v60  ;;  %v3741_v62 = vshrl.u32 %v3636_v12, 16  ;;  %v9905_v25 = vld [vmem:[#allocation77_spill] sm:$0xff] }
 0x275   : > { %vm9906_vm13 = vnez %v9905_v25 }
 0x276   : > { %4462 = vmatmul.bf16.gmra.mxu0 %v9899_v23  ;;  %v3014_v9 = vpop.f32.mrf.mxu3  ;;  %v4006_v10 = vsel %vm9906_vm13, %v7822_v57, 0  ;;  %v3743_v5 = vrot.slane %v3741_v62, 4 }
 0x277   : > { %v1951_v8 = vpop.f32.mrf.mxu1  ;;  %v3051_v21 = vadd.f32 %v3014_v9, %v2252_v3  ;;  %v3746_v3 = vrot.slane %v3744_v34, 5  ;;  %v4110_v9 = vshrl.u32 %v4006_v10, 16 }
 0x278   : > { %3919 = vmatmul.bf16.gmra.mxu2 %v3739_v39  ;;  %v4113_v39 = vshll.u32 %v4006_v10, 16 }
 0x27b   : > { %v2254_v15 = vpop.f32.mrf.mxu2  ;;  %v3391_v53 = vpop.f32.mrf.mxu0  ;;  %4280 = vmatmul.bf16.gmra.mxu3 %v4108_v4 }
 0x27c   : > { %v2255_v60 = vadd.f32 %v2254_v15, %v1949_v63  ;;  %v8661_v23 = vadd.f32 %v3391_v53, %v3051_v21  ;;  %v3747_v63 = vor.u32 %v3746_v3, %v3743_v5  ;;  %v4112_v21 = vrot.slane %v4110_v9, 3  ;;  %v6340_v3 = vld [vmem:[#allocation7 + $0x210] sm:$0xff] }
 0x27d   : > { %v4115_v15 = vrot.slane %v4113_v39, 4  ;;  %4790 = vmatpush.bf16.msrb.mxu1 %v6340_v3 }
 0x27e   : > { %9904 = vst [vmem:[#allocation56_spill] sm:$0xff] %v8661_v23  ;;  %v3017_v58 = vpop.f32.mrf.mxu3  ;;  %v3748_v34 = vsel %vm9909_vm5, %v3738_v20, %v3747_v63 }
 0x27f   : > { %v3508_v0 = vpop.f32.mrf.mxu1  ;;  %v3052_v47 = vadd.f32 %v3017_v58, %v2255_v60  ;;  %v4116_v10 = vor.u32 %v4115_v15, %v4112_v21  ;;  %v9910_v58 = vld [vmem:[#allocation83_spill] sm:$0xff] }
 0x280   : > { %v3588_v2 = vadd.f32 %v3508_v0, %v8043_v35  ;;  %v9911_v0 = vld [vmem:[#allocation81_spill] sm:$0xff] }
 0x281   : > { %vm9912_vm10 = vnez %v9911_v0 }
 0x282   : > { %3547 = vmatmul.bf16.gmra.mxu1 %v9907_v14  ;;  %v3637_v5 = vsel %vm9912_vm10, %v7822_v57, 0  ;;  %v6352_v57 = vld [vmem:[#allocation8 + $0x30] sm:$0xff]  ;;  %vm9953_vm10 = vsmask.f32 4352 }
 0x283   : > { %v2256_v12 = vpop.f32.mrf.mxu2  ;;  %v3394_v4 = vpop.f32.mrf.mxu0  ;;  %v3753_v39 = vshll.u32 %v3637_v5, 16  ;;  %5052 = vmatpush.bf16.msrb.mxu2 %v6352_v57  ;;  %v9918_v57 = vld [vmem:[#allocation84_spill] sm:$0xff] }
 0x284   : > { %v2257_v53 = vadd.f32 %v2256_v12, %v1951_v8  ;;  %v8668_v23 = vadd.f32 %v3394_v4, %v3052_v47  ;;  %v4117_v8 = vsel %vm9903_vm3, %v4107_v51, %v4116_v10  ;;  %v9913_v4 = vld [vmem:[#allocation79_spill] sm:$0xff]  ;;  %vm9919_vm3 = vnez %v9918_v57  ;;  %v9924_v57 = vld [vmem:[#allocation86_spill] sm:$0xff] }
 0x285   : > { %vm9914_vm13 = vnez %v9913_v4  ;;  %v9915_v51 = vld [vmem:[#allocation87_spill] sm:$0xff] }
 0x286   : > { %9908 = vst [vmem:[#allocation57_spill] sm:$0xff] %v8668_v23  ;;  %4467 = vmatmul.bf16.gmra.mxu0 %v9907_v14  ;;  %v3019_v25 = vpop.f32.mrf.mxu3  ;;  %v3750_v14 = vshrl.u32 %v3637_v5, 16  ;;  %v4007_v21 = vsel %vm9914_vm13, %v7835_v54, 0  ;;  %v9916_v23 = vld [vmem:[#allocation85_spill] sm:$0xff]  ;;  %vm9920_vm13 = vsmask.f32 4352 }
 0x287   : > { %v3510_v62 = vpop.f32.mrf.mxu1  ;;  %v3053_v60 = vadd.f32 %v3019_v25, %v2257_v53 }
 0x288   : > { %v3589_v35 = vadd.f32 %v3510_v62, %v9910_v58  ;;  %3924 = vmatmul.bf16.gmra.mxu2 %v3748_v34  ;;  %v3752_v25 = vrot.slane %v3750_v14, 4  ;;  %v3755_v62 = vrot.slane %v3753_v39, 5  ;;  %v4119_v34 = vshrl.u32 %v4007_v21, 16 }
 0x289   : > { %v4122_v58 = vshll.u32 %v4007_v21, 16 }
 0x28a   : > { %v3756_v5 = vor.u32 %v3755_v62, %v3752_v25  ;;  %v3638_v25 = vsel %vm9919_vm3, %v7835_v54, 0 }
 0x28b   : > { %v3885_v47 = vpop.f32.mrf.mxu2  ;;  %v3396_v9 = vpop.f32.mrf.mxu0  ;;  %4285 = vmatmul.bf16.gmra.mxu3 %v4117_v8  ;;  %v4121_v8 = vrot.slane %v4119_v34, 3 }
 0x28c   : > { %v3965_v12 = vadd.f32 %v3885_v47, %v3588_v2  ;;  %v8677_v20 = vadd.f32 %v3396_v9, %v3053_v60  ;;  %v4124_v47 = vrot.slane %v4122_v58, 4  ;;  %v3759_v58 = vshrl.u32 %v3638_v25, 16 }
 0x28e   : > { %v4246_v15 = vpop.f32.mrf.mxu3  ;;  %v4125_v21 = vor.u32 %v4124_v47, %v4121_v8 }
 0x28f   : > { %v3513_v53 = vpop.f32.mrf.mxu1  ;;  %v4326_v3 = vadd.f32 %v4246_v15, %v3965_v12  ;;  %v3757_v12 = vsel %vm9909_vm5, %v3747_v63, %v3756_v5  ;;  %v9922_v63 = vld [vmem:[#allocation82_spill] sm:$0xff] }
 0x290   : > { %v3590_v0 = vadd.f32 %v3513_v53, %v9915_v51  ;;  %v9917_v53 = vld [vmem:[#allocation88_spill] sm:$0xff]  ;;  %v4126_v62 = vsel %vm9920_vm13, %v4116_v10, %v4125_v21  ;;  %vm9923_vm5 = vnez %v9922_v63  ;;  %vm9925_vm13 = vsmask.f32 3328 }
 0x292   : > { %3552 = vmatmul.bf16.gmra.mxu1 %v9916_v23 }
 0x293   : > { %v3887_v2 = vpop.f32.mrf.mxu2  ;;  %v4433_v60 = vpop.f32.mrf.mxu0 }
 0x294   : > { %v3966_v9 = vadd.f32 %v3887_v2, %v3589_v35  ;;  %v8684_v4 = vadd.f32 %v4433_v60, %v4326_v3  ;;  %v3762_v3 = vshll.u32 %v3638_v25, 16  ;;  %v4008_v60 = vsel %vm9923_vm5, %v8100_v26, 0 }
 0x296   : > { %4472 = vmatmul.bf16.gmra.mxu0 %v9916_v23  ;;  %v4248_v14 = vpop.f32.mrf.mxu3 }
 0x297   : > { %v3515_v39 = vpop.f32.mrf.mxu1  ;;  %v4327_v15 = vadd.f32 %v4248_v14, %v3966_v9  ;;  %v3761_v9 = vrot.slane %v3759_v58, 4  ;;  %v3764_v14 = vrot.slane %v3762_v3, 5 }
 0x298   : > { %v3591_v51 = vadd.f32 %v3515_v39, %v9917_v53  ;;  %3929 = vmatmul.bf16.gmra.mxu2 %v3757_v12  ;;  %v4128_v39 = vshrl.u32 %v4008_v60, 16  ;;  %v4131_v12 = vshll.u32 %v4008_v60, 16 }
 0x29b   : > { %v3890_v35 = vpop.f32.mrf.mxu2  ;;  %v4435_v34 = vpop.f32.mrf.mxu0  ;;  %4290 = vmatmul.bf16.gmra.mxu3 %v4126_v62 }
 0x29c   : > { %v3967_v23 = vadd.f32 %v3890_v35, %v3590_v0  ;;  %v8693_v2 = vadd.f32 %v4435_v34, %v4327_v15  ;;  %v3765_v0 = vor.u32 %v3764_v14, %v3761_v9  ;;  %v4130_v15 = vrot.slane %v4128_v39, 3  ;;  %v6339_v9 = vld [vmem:[#allocation7 + $0x208] sm:$0xff] }
 0x29d   : > { %v4133_v35 = vrot.slane %v4131_v12, 4  ;;  %4791 = vmatpush.bf16.msrb.mxu1 %v6339_v9  ;;  %v6351_v9 = vld [vmem:[#allocation8 + $0x28] sm:$0xff] }
 0x29e   : > { %9921 = vst [vmem:[#allocation64_spill] sm:$0xff] %v8693_v2  ;;  %v4251_v8 = vpop.f32.mrf.mxu3  ;;  %v3766_v3 = vsel %vm9925_vm13, %v3756_v5, %v3765_v0  ;;  %5053 = vmatpush.bf16.msrb.mxu2 %v6351_v9 }
 0x29f   : > { %v3518_v47 = vpop.f32.mrf.mxu1  ;;  %v4328_v53 = vadd.f32 %v4251_v8, %v3967_v23  ;;  %v4134_v60 = vor.u32 %v4133_v35, %v4130_v15  ;;  %v9926_v8 = vld [vmem:[#allocation90_spill] sm:$0xff] }
 0x2a0   : > { %v3592_v10 = vadd.f32 %v3518_v47, %v8198_v32  ;;  %vm9927_vm5 = vnez %v9926_v8 }
 0x2a1   : > { %v3639_v47 = vsel %vm9927_vm5, %v8100_v26, 0  ;;  %vm9933_vm5 = vsmask.f32 4352 }
 0x2a2   : > { %3557 = vmatmul.bf16.gmra.mxu1 %v9924_v57  ;;  %v3771_v12 = vshll.u32 %v3639_v47, 16 }
 0x2a3   : > { %v3892_v25 = vpop.f32.mrf.mxu2  ;;  %v4438_v62 = vpop.f32.mrf.mxu0 }
 0x2a4   : > { %v3968_v34 = vadd.f32 %v3892_v25, %v3591_v51  ;;  %v8700_v2 = vadd.f32 %v4438_v62, %v4328_v53  ;;  %v4135_v51 = vsel %vm9928_vm7, %v4125_v21, %v4134_v60  ;;  %v9929_v25 = vld [vmem:[#allocation89_spill] sm:$0xff]  ;;  %vm9931_vm7 = vsmask.f32 3328 }
 0x2a5   : > { %vm9930_vm13 = vnez %v9929_v25 }
 0x2a6   : > { %4477 = vmatmul.bf16.gmra.mxu0 %v9924_v57  ;;  %v4253_v63 = vpop.f32.mrf.mxu3  ;;  %v3768_v57 = vshrl.u32 %v3639_v47, 16 }
 0x2a7   : > { %v3520_v58 = vpop.f32.mrf.mxu1  ;;  %v4329_v23 = vadd.f32 %v4253_v63, %v3968_v34  ;;  %v3773_v34 = vrot.slane %v3771_v12, 5 }
 0x2a8   : > { %v3593_v32 = vadd.f32 %v3520_v58, %v8232_v17  ;;  %3934 = vmatmul.bf16.gmra.mxu2 %v3766_v3  ;;  %v4009_v17 = vsel %vm9930_vm13, %v8212_v52, 0  ;;  %v3770_v35 = vrot.slane %v3768_v57, 4  ;;  %vm9932_vm13 = vnez %v9788_v40 }
 0x2a9   : > { %v4137_v63 = vshrl.u32 %v4009_v17, 16  ;;  %v4140_v58 = vshll.u32 %v4009_v17, 16 }
 0x2aa   : > { %v3774_v47 = vor.u32 %v3773_v34, %v3770_v35 }
 0x2ab   : > { %v3895_v14 = vpop.f32.mrf.mxu2  ;;  %v4440_v39 = vpop.f32.mrf.mxu0  ;;  %4295 = vmatmul.bf16.gmra.mxu3 %v4135_v51  ;;  %v4139_v51 = vrot.slane %v4137_v63, 3 }
 0x2ac   : > { %v3969_v53 = vadd.f32 %v3895_v14, %v3592_v10  ;;  %v8709_v5 = vadd.f32 %v4440_v39, %v4329_v23  ;;  %v4142_v14 = vrot.slane %v4140_v58, 4 }
 0x2ae   : > { %v4256_v62 = vpop.f32.mrf.mxu3  ;;  %v4143_v17 = vor.u32 %v4142_v14, %v4139_v51 }
 0x2af   : > { %v3523_v15 = vpop.f32.mrf.mxu1  ;;  %v4330_v3 = vadd.f32 %v4256_v62, %v3969_v53  ;;  %v3775_v53 = vsel %vm9931_vm7, %v3765_v0, %v3774_v47  ;;  %v9934_v0 = vld [vmem:[#allocation91_spill] sm:$0xff] }
 0x2b0   : > { %v3594_v21 = vadd.f32 %v3523_v15, %v8267_v56  ;;  %v3640_v15 = vsel %vm9932_vm13, %v8212_v52, 0  ;;  %v4144_v35 = vsel %vm9933_vm5, %v4134_v60, %v4143_v17  ;;  %vm9935_vm7 = vnez %v9934_v0 }
 0x2b1   : > { %v3777_v63 = vshrl.u32 %v3640_v15, 16  ;;  %v3780_v58 = vshll.u32 %v3640_v15, 16  ;;  %v4010_v9 = vsel %vm9935_vm7, %v8347_v16, 0  ;;  %vm9937_vm5 = vsmask.f32 3328 }
 0x2b2   : > { %3562 = vmatmul.bf16.gmra.mxu1 %v8243_v48  ;;  %v4146_v14 = vshrl.u32 %v4010_v9, 16  ;;  %vm9940_vm13 = vsmask.f32 4352 }
 0x2b3   : > { %v3897_v10 = vpop.f32.mrf.mxu2  ;;  %v4443_v23 = vpop.f32.mrf.mxu0  ;;  %v3782_v51 = vrot.slane %v3780_v58, 5 }
 0x2b4   : > { %v3970_v39 = vadd.f32 %v3897_v10, %v3593_v32  ;;  %v8716_v25 = vadd.f32 %v4443_v23, %v4330_v3  ;;  %v3779_v23 = vrot.slane %v3777_v63, 4 }
 0x2b6   : > { %4482 = vmatmul.bf16.gmra.mxu0 %v8243_v48  ;;  %v4258_v57 = vpop.f32.mrf.mxu3 }
 0x2b7   : > { %v3525_v12 = vpop.f32.mrf.mxu1  ;;  %v4331_v56 = vadd.f32 %v4258_v57, %v3970_v39  ;;  %v4149_v39 = vshll.u32 %v4010_v9, 16 }
 0x2b8   : > { %v3595_v62 = vadd.f32 %v3525_v12, %v8319_v45  ;;  %3939 = vmatmul.bf16.gmra.mxu2 %v3775_v53  ;;  %v9936_v12 = vld [vmem:[#allocation96_spill] sm:$0xff] }
 0x2bb   : > { %v3900_v32 = vpop.f32.mrf.mxu2  ;;  %v4445_v34 = vpop.f32.mrf.mxu0  ;;  %4300 = vmatmul.bf16.gmra.mxu3 %v4144_v35  ;;  %v4151_v35 = vrot.slane %v4149_v39, 4 }
 0x2bc   : > { %v3971_v48 = vadd.f32 %v3900_v32, %v3594_v21  ;;  %v8725_v3 = vadd.f32 %v4445_v34, %v4331_v56  ;;  %v3783_v21 = vor.u32 %v3782_v51, %v3779_v23  ;;  %v4148_v56 = vrot.slane %v4146_v14, 3  ;;  %v6338_v23 = vld [vmem:[#allocation7 + $0x200] sm:$0xff] }
 0x2bd   : > { %4792 = vmatpush.bf16.msrb.mxu1 %v6338_v23 }
 0x2be   : > { %v4261_v45 = vpop.f32.mrf.mxu3  ;;  %v3784_v58 = vsel %vm9937_vm5, %v3774_v47, %v3783_v21  ;;  %v4152_v9 = vor.u32 %v4151_v35, %v4148_v56 }
 0x2bf   : > { %v3528_v10 = vpop.f32.mrf.mxu1  ;;  %v4332_v57 = vadd.f32 %v4261_v45, %v3971_v48  ;;  %v9938_v45 = vld [vmem:[#allocation94_spill] sm:$0xff] }
 0x2c0   : > { %v3596_v60 = vadd.f32 %v3528_v10, %v8360_v6  ;;  %vm9939_vm7 = vnez %v9938_v45 }
 0x2c1   : > { %v3641_v10 = vsel %vm9939_vm7, %v8347_v16, 0  ;;  %vm9945_vm7 = vsmask.f32 4352 }
 0x2c2   : > { %3567 = vmatmul.bf16.gmra.mxu1 %v9936_v12  ;;  %v3786_v39 = vshrl.u32 %v3641_v10, 16 }
 0x2c3   : > { %v3902_v53 = vpop.f32.mrf.mxu2  ;;  %v4448_v15 = vpop.f32.mrf.mxu0 }
 0x2c4   : > { %v3972_v32 = vadd.f32 %v3902_v53, %v3595_v62  ;;  %v8732_v34 = vadd.f32 %v4448_v15, %v4332_v57  ;;  %v4153_v62 = vsel %vm9940_vm13, %v4143_v17, %v4152_v9  ;;  %v3789_v57 = vshll.u32 %v3641_v10, 16 }
 0x2c5   : > { %v3788_v56 = vrot.slane %v3786_v39, 4  ;;  %vm9943_vm13 = vsmask.f32 3328 }
 0x2c6   : > { %4487 = vmatmul.bf16.gmra.mxu0 %v9936_v12  ;;  %v4263_v0 = vpop.f32.mrf.mxu3  ;;  %v3791_v35 = vrot.slane %v3789_v57, 5 }
 0x2c7   : > { %v3530_v63 = vpop.f32.mrf.mxu1  ;;  %v4333_v48 = vadd.f32 %v4263_v0, %v3972_v32 }
 0x2c8   : > { %v8737_v6 = vadd.f32 %v3530_v63, %v8394_v46  ;;  %3944 = vmatmul.bf16.gmra.mxu2 %v3784_v58  ;;  %v9941_v46 = vld [vmem:[#allocation93_spill] sm:$0xff]  ;;  %v6350_v63 = vld [vmem:[#allocation8 + $0x20] sm:$0xff] }
 0x2c9   : > { %vm9942_vm5 = vnez %v9941_v46  ;;  %5054 = vmatpush.bf16.msrb.mxu2 %v6350_v63 }
 0x2ca   : > { %v4011_v53 = vsel %vm9942_vm5, %v8408_v18, 0  ;;  %vm9944_vm5 = vnez %v9816_v38 }
 0x2cb   : > { %v3905_v51 = vpop.f32.mrf.mxu2  ;;  %v4450_v14 = vpop.f32.mrf.mxu0  ;;  %4305 = vmatmul.bf16.gmra.mxu3 %v4153_v62  ;;  %v4155_v32 = vshrl.u32 %v4011_v53, 16  ;;  %v4158_v0 = vshll.u32 %v4011_v53, 16 }
 0x2cc   : > { %v8743_v47 = vadd.f32 %v3905_v51, %v3596_v60  ;;  %v8745_v12 = vadd.f32 %v4450_v14, %v4333_v48  ;;  %v3792_v60 = vor.u32 %v3791_v35, %v3788_v56 }
 0x2cd   : > { %v4157_v48 = vrot.slane %v4155_v32, 3  ;;  %v4160_v10 = vrot.slane %v4158_v0, 4 }
 0x2ce   : > { %v3793_v62 = vsel %vm9943_vm13, %v3783_v21, %v3792_v60  ;;  %vm9946_vm13 = vnez %v9811_v7 }
 0x2cf   : > { %v3533_v15 = vpop.f32.mrf.mxu1  ;;  %v4161_v51 = vor.u32 %v4160_v10, %v4157_v48 }
 0x2d0   : > { %v3598_v17 = vadd.f32 %v3533_v15, %v8438_v1  ;;  %v3642_v1 = vsel %vm9944_vm5, %v8408_v18, 0 }
 0x2d1   : > { %v4162_v39 = vsel %vm9945_vm7, %v4152_v9, %v4161_v51  ;;  %v3795_v46 = vshrl.u32 %v3642_v1, 16  ;;  %v3798_v53 = vshll.u32 %v3642_v1, 16  ;;  %vm9947_vm7 = vsmask.f32 3328  ;;  %v9948_v1 = vld [vmem:[#allocation100_spill] sm:$0xff] }
 0x2d2   : > { %3572 = vmatmul.bf16.gmra.mxu1 %v8419_v41 }
 0x2d3   : > { %v8752_v58 = vpop.f32.mrf.mxu2  ;;  %v3800_v56 = vrot.slane %v3798_v53, 5 }
 0x2d6   : > { %4492 = vmatmul.bf16.gmra.mxu0 %v8419_v41  ;;  %v4012_v41 = vsel %vm9946_vm13, %v8511_v27, 0  ;;  %vm9949_vm13 = vnez %v9948_v1 }
 0x2d7   : > { %v3535_v23 = vpop.f32.mrf.mxu1  ;;  %v4164_v35 = vshrl.u32 %v4012_v41, 16  ;;  %v4167_v32 = vshll.u32 %v4012_v41, 16 }
 0x2d8   : > { %v8757_v14 = vadd.f32 %v3535_v23, %v8480_v24  ;;  %3949 = vmatmul.bf16.gmra.mxu2 %v3793_v62  ;;  %v3797_v24 = vrot.slane %v3795_v46, 4 }
 0x2d9   : > { %v4166_v48 = vrot.slane %v4164_v35, 3  ;;  %v4169_v10 = vrot.slane %v4167_v32, 4  ;;  %v6349_v35 = vld [vmem:[#allocation8 + $0x18] sm:$0xff]  ;;  %v9954_v32 = vrot.slane %v8408_v18, 4 }
 0x2da   : > { %v3801_v63 = vor.u32 %v3800_v56, %v3797_v24  ;;  %5055 = vmatpush.bf16.msrb.mxu2 %v6349_v35 }
 0x2db   : > { %v3910_v57 = vpop.f32.mrf.mxu2  ;;  %4310 = vmatmul.bf16.gmra.mxu3 %v4162_v39  ;;  %v4170_v23 = vor.u32 %v4169_v10, %v4166_v48 }
 0x2dc   : > { %v8763_v15 = vadd.f32 %v3910_v57, %v3598_v17  ;;  %v3802_v7 = vsel %vm9947_vm7, %v3792_v60, %v3801_v63  ;;  %v3448_v60 = vrot.slane %v8511_v27, 4 }
 0x2dd   : > { %v4171_v57 = vsel %vm9953_vm10, %v4161_v51, %v4170_v23  ;;  %v4546_v51 = vsel %vm7130_vm11, %v7350_v50, 0  ;;  %vm9956_vm10 = vmpackc.low %vm8506_vm14, %vm8501_vm2  ;;  %vm9959_vm11 = vsmask.f32 4352 }
 0x2df   : > { %v3538_v21 = vpop.f32.mrf.mxu1 }
 0x2e0   : > { %v3600_v0 = vadd.f32 %v3538_v21, %v8514_v22  ;;  %v9950_v22 = vld [vmem:[#allocation99_spill] sm:$0xff] }
 0x2e1   : > { %vm9951_vm5 = vnez %v9950_v22 }
 0x2e2   : > { %3577 = vmatmul.bf16.gmra.mxu1 %v8496_v19  ;;  %vm9952_vm3 = vmpackc.low %vm9949_vm13, %vm9951_vm5  ;;  %vm9955_vm5 = vcmask 1043456  }
 0x2e3   : > { %v8770_v9 = vpop.f32.mrf.mxu2  ;;  %v3643_v39 = vsel %vm9952_vm3, %v8511_v27, 0  ;;  %v3449_v48 = vsel %vm9955_vm5, %v9954_v32, %v3448_v60  ;;  %vm9957_vm3 = vmmov %vm9947_vm7  ;;  %v6361_v32 = vld [vmem:[#allocation10 + $0x38] sm:$0xff] }
 0x2e4   : > { %v3804_v53 = vshrl.u32 %v3643_v39, 16  ;;  %vm9960_vm14 = vmmov %vm9957_vm3  ;;  %5253 = vmatpush.bf16.msrb.mxu3 %v6361_v32 }
 0x2e5   : > { %vm9962_vm2 = vmmov %vm9955_vm5 }
 0x2e6   : > { %4497 = vmatmul.bf16.gmra.mxu0 %v8496_v19  ;;  %v3807_v19 = vshll.u32 %v3643_v39, 16  ;;  %v3806_v21 = vrot.slane %v3804_v53, 4  ;;  %v9958_v53 = vld [vmem:[#allocation21_spill] sm:$0xff] }
 0x2e7   : > { %v3540_v17 = vpop.f32.mrf.mxu1  ;;  %v4172_v59 = vsel %vm9959_vm11, %v4170_v23, %v9958_v53  ;;  %v4548_v53 = vsel %vm7359_vm0, %v9852_v44, 0  ;;  %vm9967_vm0 = vmmov %vm9957_vm3 }
 0x2e8   : > { %v8775_v62 = vadd.f32 %v3540_v17, %v8542_v55  ;;  %3954 = vmatmul.bf16.gmra.mxu2 %v3802_v7  ;;  %v3809_v24 = vrot.slane %v3807_v19, 5  ;;  %v4586_v17 = vshrl.u32 %v4546_v51, 16  ;;  %v4589_v7 = vshll.u32 %v4546_v51, 16  ;;  %v9961_v51 = vld [vmem:[#allocation20_spill] sm:$0xff]  ;;  %vm9987_vm7 = vmmov %vm9967_vm0 }
 0x2e9   : > { %vm10004_vm13 = vmmov %vm9967_vm0 }
 0x2ea   : > { %v3810_v10 = vor.u32 %v3809_v24, %v3806_v21  ;;  %vm10009_vm11 = vmmov %vm9967_vm0 }
 0x2eb   : > { %v3915_v46 = vpop.f32.mrf.mxu2  ;;  %4315 = vmatmul.bf16.gmra.mxu3 %v4171_v57  ;;  %v4588_v57 = vrot.slane %v4586_v17, 4 }
 0x2ec   : > { %v8784_v41 = vadd.f32 %v3915_v46, %v3600_v0  ;;  %v3811_v22 = vsel %vm9957_vm3, %v3801_v63, %v3810_v10  ;;  %v4591_v46 = vrot.slane %v4589_v7, 5 }
 0x2ee   : > { %v4592_v21 = vor.u32 %v4591_v46, %v4588_v57  ;;  %v6348_v57 = vld [vmem:[#allocation8 + $0x10] sm:$0xff] }
 0x2ef   : > { %v3543_v55 = vpop.f32.mrf.mxu1  ;;  %5056 = vmatpush.bf16.msrb.mxu2 %v6348_v57 }
 0x2f0   : > { %v3602_v56 = vadd.f32 %v3543_v55, %v8554_v11  ;;  %v4545_v11 = vsel %vm9956_vm10, %v7244_v31, 0  ;;  %vm10007_vm10 = vmmov %vm9967_vm0 }
 0x2f1   : > { %v4578_v39 = vshrl.u32 %v4545_v11, 16  ;;  %v4581_v42 = vshll.u32 %v4545_v11, 16 }
 0x2f2   : > { %3582 = vmatmul.bf16.gmra.mxu1 %v3449_v48 }
 0x2f3   : > { %v8794_v0 = vpop.f32.mrf.mxu2  ;;  %v4580_v19 = vrot.slane %v4578_v39, 4  ;;  %v4583_v31 = vrot.slane %v4581_v42, 5 }
 0x2f5   : > { %v4584_v63 = vor.u32 %v4583_v31, %v4580_v19  ;;  %v9965_v31 = vld [vmem:[#allocation26_spill] sm:$0xff] }
 0x2f6   : > { %4502 = vmatmul.bf16.gmra.mxu0 %v3449_v48  ;;  %v4547_v48 = vsel %vm7250_vm4, %v7452_v36, 0  ;;  %vm9963_vm4 = vmmov %vm9957_vm3  ;;  %vm10008_vm3 = vnez %v9926_v8 }
 0x2f7   : > { %v3545_v1 = vpop.f32.mrf.mxu1  ;;  %v4595_v10 = vshrl.u32 %v4547_v48, 16  ;;  %v4598_v11 = vshll.u32 %v4547_v48, 16  ;;  %v9966_v48 = vld [vmem:[#allocation33_spill] sm:$0xff] }
 0x2f8   : > { %v8804_v50 = vadd.f32 %v3545_v1, %v8563_v13  ;;  %3959 = vmatmul.bf16.gmra.mxu2 %v3811_v22  ;;  %v4593_v13 = vsel %vm9960_vm14, %v4584_v63, %v4592_v21  ;;  %vm10010_vm14 = vnez %v9788_v40 }
 0x2f9   : > { %v4597_v7 = vrot.slane %v4595_v10, 4  ;;  %v4600_v1 = vrot.slane %v4598_v11, 5  ;;  %v9968_v10 = vld [vmem:[#allocation48_spill] sm:$0xff] }
 0x2fb   : > { %v3920_v49 = vpop.f32.mrf.mxu2  ;;  %4320 = vmatmul.bf16.gmra.mxu3 %v4172_v59  ;;  %v4601_v30 = vor.u32 %v4600_v1, %v4597_v7  ;;  %v4604_v59 = vshrl.u32 %v4548_v53, 16 }
 0x2fc   : > { %v8808_v55 = vadd.f32 %v3920_v49, %v3602_v56  ;;  %v4374_v56 = vsel %vm9962_vm2, %v3448_v60, %v9961_v51  ;;  %v4607_v49 = vshll.u32 %v4548_v53, 16  ;;  %vm10011_vm2 = vmmov %vm9967_vm0 }
 0x2fd   : > { %v4602_v46 = vsel %vm9963_vm4, %v4592_v21, %v4601_v30  ;;  %v4606_v63 = vrot.slane %v4604_v59, 4  ;;  %vm10012_vm4 = vnez %v9938_v45 }
 0x2ff   : > { %v3548_v24 = vpop.f32.mrf.mxu1 }
 0x300   : > { %v3604_v35 = vadd.f32 %v3548_v24, %v8569_v29 }
 0x302   : > { %4793 = vmatmul.bf16.vlgmr.msrb.gmra.mxu1 %v4593_v13 }
 0x303   : > { %v8815_v23 = vpop.f32.mrf.mxu2 }
 0x306   : > { %4507 = vmatmul.bf16.gmra.mxu0 %v4374_v56  ;;  %v6360_v56 = vld [vmem:[#allocation10 + $0x30] sm:$0xff] }
 0x307   : > { %v3550_v17 = vpop.f32.mrf.mxu1  ;;  %5254 = vmatpush.bf16.msrb.mxu3 %v6360_v56 }
 0x308   : > { %v8820_v29 = vadd.f32 %v3550_v17, %v8577_v43  ;;  %v4549_v17 = vsel %vm9857_vm8, %v9968_v10, 0  ;;  %vm9972_vm8 = vmmov %vm9967_vm0 }
 0x309   : > { %v4613_v1 = vshrl.u32 %v4549_v17, 16 }
 0x30b   : > { %v3925_v22 = vpop.f32.mrf.mxu2 }
 0x30c   : > { %v8822_v39 = vadd.f32 %v3925_v22, %v3604_v35  ;;  %v4609_v35 = vrot.slane %v4607_v49, 5  ;;  %v4616_v22 = vshll.u32 %v4549_v17, 16 }
 0x30e   : > { %v4610_v21 = vor.u32 %v4609_v35, %v4606_v63  ;;  %v4618_v60 = vrot.slane %v4616_v22, 5  ;;  %v6347_v63 = vld [vmem:[#allocation8 + $0x8] sm:$0xff] }
 0x30f   : > { %v3553_v36 = vpop.f32.mrf.mxu1  ;;  %5057 = vmatpush.bf16.msrb.mxu2 %v6347_v63  ;;  %v9978_v63 = vld [vmem:[#allocation52_spill] sm:$0xff] }
 0x310   : > { %v3606_v42 = vadd.f32 %v3553_v36, %v8583_v61  ;;  %v4611_v44 = vsel %vm9967_vm0, %v4601_v30, %v4610_v21 }
 0x312   : > { %4798 = vmatmul.bf16.gmra.mxu1 %v4602_v46  ;;  %v4615_v46 = vrot.slane %v4613_v1, 4 }
 0x313   : > { %v8829_v43 = vpop.f32.mrf.mxu2 }
 0x314   : > { %v4619_v30 = vor.u32 %v4618_v60, %v4615_v46  ;;  %v9976_v60 = vld [vmem:[#allocation36_spill] sm:$0xff] }
 0x316   : > { %v4620_v35 = vsel %vm9972_vm8, %v4610_v21, %v4619_v30  ;;  %vm10013_vm8 = vnez %v9816_v38 }
 0x317   : > { %v3555_v19 = vpop.f32.mrf.mxu1 }
 0x318   : > { %v8832_v24 = vadd.f32 %v3555_v19, %v9965_v31  ;;  %v9971_v19 = vld [vmem:[#allocation30_spill] sm:$0xff] }
 0x31b   : > { %v3930_v61 = vpop.f32.mrf.mxu2 }
 0x31c   : > { %v8834_v32 = vadd.f32 %v3930_v61, %v3606_v42  ;;  %v9970_v42 = vld [vmem:[#allocation40_spill] sm:$0xff]  ;;  %v9973_v61 = vld [vmem:[#allocation51_spill] sm:$0xff] }
 0x31f   : > { %v3558_v13 = vpop.f32.mrf.mxu1 }
 0x320   : > { %v3608_v51 = vadd.f32 %v3558_v13, %v9966_v48  ;;  %v4550_v48 = vsel %vm9867_vm9, %v9973_v61, 0  ;;  %vm9977_vm9 = vmmov %vm9967_vm0  ;;  %v4551_v61 = vsel %vm9877_vm6, %v9978_v63, 0 }
 0x321   : > { %v4625_v10 = vshll.u32 %v4550_v48, 16  ;;  %vm9981_vm6 = vmmov %vm9967_vm0 }
 0x322   : > { %4803 = vmatmul.bf16.gmra.mxu1 %v4611_v44  ;;  %v4622_v44 = vshrl.u32 %v4550_v48, 16  ;;  %v4631_v48 = vshrl.u32 %v4551_v61, 16 }
 0x323   : > { %v8841_v7 = vpop.f32.mrf.mxu2  ;;  %v4627_v22 = vrot.slane %v4625_v10, 5 }
 0x324   : > { %v4624_v1 = vrot.slane %v4622_v44, 4  ;;  %v4634_v44 = vshll.u32 %v4551_v61, 16 }
 0x326   : > { %v4628_v21 = vor.u32 %v4627_v22, %v4624_v1  ;;  %v4636_v1 = vrot.slane %v4634_v44, 5 }
 0x327   : > { %v3560_v36 = vpop.f32.mrf.mxu1 }
 0x328   : > { %v8844_v57 = vadd.f32 %v3560_v36, %v9970_v42 }
 0x32b   : > { %v3935_v53 = vpop.f32.mrf.mxu2 }
 0x32c   : > { %v8846_v59 = vadd.f32 %v3935_v53, %v3608_v51  ;;  %v9975_v51 = vld [vmem:[#allocation39_spill] sm:$0xff] }
 0x32f   : > { %v3563_v49 = vpop.f32.mrf.mxu1 }
 0x330   : > { %v3610_v31 = vadd.f32 %v3563_v49, %v9971_v19  ;;  %v6359_v49 = vld [vmem:[#allocation10 + $0x28] sm:$0xff]  ;;  %v4629_v19 = vsel %vm9977_vm9, %v4619_v30, %v4628_v21  ;;  %vm10014_vm9 = vmmov %vm9967_vm0 }
 0x331   : > { %5255 = vmatpush.bf16.msrb.mxu3 %v6359_v49 }
 0x332   : > { %4808 = vmatmul.bf16.gmra.mxu1 %v4620_v35  ;;  %v4552_v35 = vsel %vm9887_vm1, %v9889_v37, 0  ;;  %vm9993_vm1 = vmmov %vm9967_vm0 }
 0x333   : > { %v8853_v56 = vpop.f32.mrf.mxu2  ;;  %v4643_v44 = vshll.u32 %v4552_v35, 16 }
 0x337   : > { %v3565_v11 = vpop.f32.mrf.mxu1 }
 0x338   : > { %v8856_v17 = vadd.f32 %v3565_v11, %v9975_v51  ;;  %v4633_v51 = vrot.slane %v4631_v48, 4  ;;  %v4640_v48 = vshrl.u32 %v4552_v35, 16 }
 0x33a   : > { %v4637_v30 = vor.u32 %v4636_v1, %v4633_v51  ;;  %v4642_v51 = vrot.slane %v4640_v48, 4  ;;  %v4645_v1 = vrot.slane %v4643_v44, 5 }
 0x33b   : > { %v3940_v36 = vpop.f32.mrf.mxu2 }
 0x33c   : > { %v8858_v42 = vadd.f32 %v3940_v36, %v3610_v31  ;;  %v9980_v31 = vld [vmem:[#allocation50_spill] sm:$0xff]  ;;  %v4638_v49 = vsel %vm9981_vm6, %v4628_v21, %v4637_v30  ;;  %v4646_v21 = vor.u32 %v4645_v1, %v4642_v51  ;;  %vm10016_vm6 = vmmov %vm9967_vm0 }
 0x33e   : > { %v4647_v37 = vsel %vm9987_vm7, %v4637_v30, %v4646_v21 }
 0x33f   : > { %v3568_v46 = vpop.f32.mrf.mxu1 }
 0x340   : > { %v3612_v53 = vadd.f32 %v3568_v46, %v9976_v60 }
 0x342   : > { %4813 = vmatmul.bf16.gmra.mxu1 %v4629_v19  ;;  %v6346_v19 = vld [vmem:[#allocation8] sm:$0xff] }
 0x343   : > { %v8865_v13 = vpop.f32.mrf.mxu2  ;;  %5058 = vmatpush.bf16.msrb.mxu2 %v6346_v19  ;;  %v9988_v19 = vld [vmem:[#allocation70_spill] sm:$0xff] }
 0x344   : > { %v4553_v35 = vsel %vm9894_vm15, %v9988_v19, 0  ;;  %vm9999_vm15 = vmmov %vm9967_vm0 }
 0x345   : > { %v4652_v48 = vshll.u32 %v4553_v35, 16 }
 0x347   : > { %v3570_v10 = vpop.f32.mrf.mxu1  ;;  %v4654_v1 = vrot.slane %v4652_v48, 5 }
 0x348   : > { %v8868_v11 = vadd.f32 %v3570_v10, %v9980_v31 }
 0x34b   : > { %v3945_v22 = vpop.f32.mrf.mxu2 }
 0x34c   : > { %v8870_v36 = vadd.f32 %v3945_v22, %v3612_v53  ;;  %v9984_v53 = vld [vmem:[#allocation41_spill] sm:$0xff] }
 0x34f   : > { %v3573_v46 = vpop.f32.mrf.mxu1 }
 0x350   : > { %v3614_v60 = vadd.f32 %v3573_v46, %v8639_v28 }
 0x352   : > { %4818 = vmatmul.bf16.gmra.mxu1 %v4638_v49 }
 0x353   : > { %v8877_v61 = vpop.f32.mrf.mxu2 }
 0x354   : > { %9983 = vst [vmem:[#allocation62_spill] sm:$0xff] %v8877_v61 }
 0x357   : > { %v3575_v10 = vpop.f32.mrf.mxu1 }
 0x358   : > { %v8880_v31 = vadd.f32 %v3575_v10, %v9984_v53  ;;  %v6358_v10 = vld [vmem:[#allocation10 + $0x20] sm:$0xff]  ;;  %v4649_v53 = vshrl.u32 %v4553_v35, 16 }
 0x359   : > { %5256 = vmatpush.bf16.msrb.mxu3 %v6358_v10 }
 0x35a   : > { %9985 = vst [vmem:[#allocation65_spill] sm:$0xff] %v8880_v31  ;;  %v4651_v51 = vrot.slane %v4649_v53, 4  ;;  %v9992_v31 = vld [vmem:[#allocation57_spill] sm:$0xff] }
 0x35b   : > { %v3950_v28 = vpop.f32.mrf.mxu2 }
 0x35c   : > { %v8882_v22 = vadd.f32 %v3950_v28, %v3614_v60  ;;  %v9991_v60 = vld [vmem:[#allocation56_spill] sm:$0xff]  ;;  %v4655_v30 = vor.u32 %v4654_v1, %v4651_v51 }
 0x35e   : > { %9986 = vst [vmem:[#allocation72_spill] sm:$0xff] %v8882_v22  ;;  %v4656_v19 = vsel %vm9993_vm1, %v4646_v21, %v4655_v30 }
 0x35f   : > { %v3578_v46 = vpop.f32.mrf.mxu1 }
 0x360   : > { %v3616_v49 = vadd.f32 %v3578_v46, %v8653_v33 }
 0x362   : > { %4823 = vmatmul.bf16.gmra.mxu1 %v4647_v37 }
 0x363   : > { %v8889_v61 = vpop.f32.mrf.mxu2 }
 0x364   : > { %9990 = vst [vmem:[#allocation74_spill] sm:$0xff] %v8889_v61  ;;  %v9994_v61 = vld [vmem:[#allocation71_spill] sm:$0xff] }
 0x365   : > { %v4554_v35 = vsel %vm9902_vm12, %v9994_v61, 0  ;;  %v10000_v61 = vld [vmem:[#allocation81_spill] sm:$0xff] }
 0x366   : > { %vm10001_vm12 = vnez %v10000_v61 }
 0x367   : > { %v3580_v44 = vpop.f32.mrf.mxu1  ;;  %v4555_v22 = vsel %vm10001_vm12, %v7835_v54, 0 }
 0x368   : > { %v8892_v28 = vadd.f32 %v3580_v44, %v9991_v60  ;;  %v4658_v44 = vshrl.u32 %v4554_v35, 16  ;;  %v4661_v60 = vshll.u32 %v4554_v35, 16 }
 0x36a   : > { %v4663_v51 = vrot.slane %v4661_v60, 5  ;;  %v4670_v60 = vshll.u32 %v4555_v22, 16 }
 0x36b   : > { %v3955_v33 = vpop.f32.mrf.mxu2 }
 0x36c   : > { %v8894_v46 = vadd.f32 %v3955_v33, %v3616_v49  ;;  %v4660_v49 = vrot.slane %v4658_v44, 4  ;;  %v4667_v44 = vshrl.u32 %v4555_v22, 16 }
 0x36e   : > { %v4669_v54 = vrot.slane %v4667_v44, 4 }
 0x36f   : > { %v3583_v37 = vpop.f32.mrf.mxu1 }
 0x370   : > { %v3618_v63 = vadd.f32 %v3583_v37, %v9992_v31  ;;  %v4664_v31 = vor.u32 %v4663_v51, %v4660_v49  ;;  %v10003_v49 = vld [vmem:[#allocation64_spill] sm:$0xff] }
 0x372   : > { %4828 = vmatmul.bf16.gmra.mxu1 %v4656_v19  ;;  %v4665_v37 = vsel %vm9999_vm15, %v4655_v30, %v4664_v31 }
 0x373   : > { %v8901_v10 = vpop.f32.mrf.mxu2 }
 0x374   : > { %9996 = vst [vmem:[#allocation76_spill] sm:$0xff] %v8901_v10 }
 0x377   : > { %v3585_v53 = vpop.f32.mrf.mxu1 }
 0x378   : > { %v8904_v48 = vadd.f32 %v3585_v53, %v8677_v20  ;;  %v8916_v20 = vld [vmem:[%s9365_s6] sm:$0xf] }
 0x379   : > { %10002 = vst [vmem:[#allocation83_spill] sm:$0xff] %v8916_v20  ;;  %v8919_v35 = vperm.slane %v8916_v20, 1 }
 0x37a   : > { %9997 = vst [vmem:[#allocation77_spill] sm:$0xff] %v8904_v48  ;;  %v8926_v48 = vpop.f32.mrf.mxu0 }
 0x37b   : > { %v3960_v1 = vpop.f32.mrf.mxu2 }
 0x37c   : > { %v8906_v33 = vadd.f32 %v3960_v1, %v3618_v63  ;;  %v6357_v63 = vld [vmem:[#allocation10 + $0x18] sm:$0xff]  ;;  %v4672_v1 = vrot.slane %v4670_v60, 5 }
 0x37d   : > { %5257 = vmatpush.bf16.msrb.mxu3 %v6357_v63  ;;  %v6369_v60 = vld [vmem:[#allocation11 + $0x38] sm:$0xff] }
 0x37e   : > { %9998 = vst [vmem:[#allocation80_spill] sm:$0xff] %v8906_v33  ;;  %v4673_v20 = vor.u32 %v4672_v1, %v4669_v54  ;;  %5455 = vmatpush.bf16.msrb.mxu0 %v6369_v60 }
 0x37f   : > { %v4794_v21 = vpop.f32.mrf.mxu1 }
 0x380   : > { %v4874_v19 = vadd.f32 %v4794_v21, %v8684_v4  ;;  %v8924_v21 = vpop.f32.mrf.mxu3  ;;  %v4674_v22 = vsel %vm10004_vm13, %v4664_v31, %v4673_v20 }
 0x382   : > { %4833 = vmatmul.bf16.gmra.mxu1 %v4665_v37  ;;  %v4907_v53 = vadd.f32 %v8919_v35, %v4874_v19  ;;  %v10005_v19 = vld [vmem:[#allocation84_spill] sm:$0xff] }
 0x383   : > { %vm10006_vm5 = vnez %v10005_v19 }
 0x384   : > { %v4939_v37 = vmax.f32 %v4907_v53, 0.0  ;;  %v4556_v63 = vsel %vm10006_vm5, %v8100_v26, 0 }
 0x387   : > { %v4796_v30 = vpop.f32.mrf.mxu1 }
 0x388   : > { %v4875_v51 = vadd.f32 %v4796_v30, %v10003_v49  ;;  %v4676_v30 = vshrl.u32 %v4556_v63, 16  ;;  %v4679_v49 = vshll.u32 %v4556_v63, 16  ;;  %v8933_v53 = vpop.f32.mrf.mxu3 }
 0x38a   : > { %v4908_v4 = vadd.f32 %v8919_v35, %v4875_v51  ;;  %v8935_v51 = vpop.f32.mrf.mxu0  ;;  %v4678_v1 = vrot.slane %v4676_v30, 4  ;;  %v6356_v30 = vld [vmem:[#allocation10 + $0x10] sm:$0xff] }
 0x38b   : > { %5258 = vmatpush.bf16.msrb.mxu3 %v6356_v30  ;;  %v6368_v30 = vld [vmem:[#allocation11 + $0x30] sm:$0xff] }
 0x38c   : > { %v4940_v61 = vmax.f32 %v4908_v4, 0.0  ;;  %v4681_v4 = vrot.slane %v4679_v49, 5  ;;  %5456 = vmatpush.bf16.msrb.mxu0 %v6368_v30  ;;  %v4559_v30 = vsel %vm10012_vm4, %v8408_v18, 0 }
 0x38e   : > { %v4971_v33 = vpack.c.bf16 %v4940_v61, %v4939_v37 }
 0x38f   : > { %v4799_v10 = vpop.f32.mrf.mxu1 }
 0x390   : > { %5059 = vmatmul.bf16.vlgmr.msrb.gmra.mxu2 %v4971_v33  ;;  %v4876_v44 = vadd.f32 %v4799_v10, %v8700_v2  ;;  %v4682_v2 = vor.u32 %v4681_v4, %v4678_v1  ;;  %v8940_v19 = vpop.f32.mrf.mxu3 }
 0x392   : > { %4838 = vmatmul.bf16.gmra.mxu1 %v4674_v22  ;;  %v4909_v33 = vadd.f32 %v8919_v35, %v4876_v44  ;;  %v8942_v63 = vpop.f32.mrf.mxu0  ;;  %v4683_v60 = vsel %vm10007_vm10, %v4673_v20, %v4682_v2 }
 0x394   : > { %v4941_v26 = vmax.f32 %v4909_v33, 0.0 }
 0x397   : > { %v4801_v54 = vpop.f32.mrf.mxu1 }
 0x398   : > { %v4877_v31 = vadd.f32 %v4801_v54, %v8709_v5  ;;  %v4557_v5 = vsel %vm10008_vm3, %v8212_v52, 0 }
 0x399   : > { %v4685_v49 = vshrl.u32 %v4557_v5, 16  ;;  %v4688_v54 = vshll.u32 %v4557_v5, 16 }
 0x39a   : > { %v4910_v37 = vadd.f32 %v8919_v35, %v4877_v31 }
 0x39b   : > { %v4687_v4 = vrot.slane %v4685_v49, 4 }
 0x39c   : > { %v4942_v61 = vmax.f32 %v4910_v37, 0.0  ;;  %v4690_v37 = vrot.slane %v4688_v54, 5 }
 0x39e   : > { %v4972_v10 = vpack.c.bf16 %v4942_v61, %v4941_v26  ;;  %v8951_v26 = vpop.f32.mrf.mxu3  ;;  %v8954_v61 = vpop.f32.mrf.mxu0 }
 0x39f   : > { %v4804_v22 = vpop.f32.mrf.mxu1 }
 0x3a0   : > { %5064 = vmatmul.bf16.gmra.mxu2 %v4972_v10  ;;  %v4878_v44 = vadd.f32 %v4804_v22, %v8716_v25  ;;  %v4691_v25 = vor.u32 %v4690_v37, %v4687_v4 }
 0x3a2   : > { %4843 = vmatmul.bf16.gmra.mxu1 %v4683_v60  ;;  %v4911_v31 = vadd.f32 %v8919_v35, %v4878_v44  ;;  %v4692_v60 = vsel %vm10009_vm11, %v4682_v2, %v4691_v25 }
 0x3a4   : > { %v4943_v52 = vmax.f32 %v4911_v31, 0.0 }
 0x3a6   : > { %v8960_v5 = vpop.f32.mrf.mxu3  ;;  %v8963_v49 = vpop.f32.mrf.mxu0 }
 0x3a7   : > { %v4806_v33 = vpop.f32.mrf.mxu1 }
 0x3a8   : > { %v4879_v1 = vadd.f32 %v4806_v33, %v8725_v3  ;;  %v4558_v3 = vsel %vm10010_vm14, %v8347_v16, 0 }
 0x3a9   : > { %v4694_v54 = vshrl.u32 %v4558_v3, 16  ;;  %v4697_v33 = vshll.u32 %v4558_v3, 16  ;;  %v3974_v3 = vadd.f32 %v8752_v58, %v8737_v6 }
 0x3aa   : > { %v4912_v20 = vadd.f32 %v8919_v35, %v4879_v1 }
 0x3ab   : > { %v4696_v4 = vrot.slane %v4694_v54, 4  ;;  %v4699_v37 = vrot.slane %v4697_v33, 5  ;;  %v4335_v54 = vadd.f32 %v8933_v53, %v3974_v3 }
 0x3ac   : > { %v4944_v8 = vmax.f32 %v4912_v20, 0.0 }
 0x3ae   : > { %v4973_v10 = vpack.c.bf16 %v4944_v8, %v4943_v52  ;;  %v4700_v52 = vor.u32 %v4699_v37, %v4696_v4  ;;  %v8968_v8 = vpop.f32.mrf.mxu3 }
 0x3af   : > { %v4809_v22 = vpop.f32.mrf.mxu1 }
 0x3b0   : > { %5069 = vmatmul.bf16.gmra.mxu2 %v4973_v10  ;;  %v4880_v44 = vadd.f32 %v4809_v22, %v8732_v34  ;;  %v8970_v10 = vpop.f32.mrf.mxu0 }
 0x3b2   : > { %4848 = vmatmul.bf16.gmra.mxu1 %v4692_v60  ;;  %v4913_v1 = vadd.f32 %v8919_v35, %v4880_v44  ;;  %v4334_v60 = vadd.f32 %v8924_v21, %v8743_v47  ;;  %v4522_v47 = vadd.f32 %v8935_v51, %v4335_v54  ;;  %v4336_v51 = vadd.f32 %v8940_v19, %v8763_v15 }
 0x3b4   : > { %v4945_v16 = vmax.f32 %v4913_v1, 0.0  ;;  %v4521_v44 = vadd.f32 %v8926_v48, %v4334_v60  ;;  %v4703_v1 = vshrl.u32 %v4559_v30, 16  ;;  %v4523_v60 = vadd.f32 %v8942_v63, %v4336_v51 }
 0x3b6   : > { %v4281_v58 = vpop.f32.mrf.mxu3  ;;  %v4705_v4 = vrot.slane %v4703_v1, 4 }
 0x3b7   : > { %v4811_v31 = vpop.f32.mrf.mxu1 }
 0x3b8   : > { %v4881_v2 = vadd.f32 %v4811_v31, %v8745_v12  ;;  %v4701_v12 = vsel %vm10011_vm2, %v4691_v25, %v4700_v52  ;;  %v6355_v31 = vld [vmem:[#allocation10 + $0x8] sm:$0xff]  ;;  %v8984_v48 = vpop.f32.mrf.mxu0 }
 0x3b9   : > { %5259 = vmatpush.bf16.msrb.mxu3 %v6355_v31 }
 0x3ba   : > { %v4914_v40 = vadd.f32 %v8919_v35, %v4881_v2  ;;  %v4706_v2 = vshll.u32 %v4559_v30, 16 }
 0x3bc   : > { %v4946_v20 = vmax.f32 %v4914_v40, 0.0  ;;  %v4708_v37 = vrot.slane %v4706_v2, 5 }
 0x3be   : > { %v4974_v34 = vpack.c.bf16 %v4946_v20, %v4945_v16  ;;  %v4709_v40 = vor.u32 %v4708_v37, %v4705_v4  ;;  %v4283_v3 = vpop.f32.mrf.mxu3  ;;  %v4338_v4 = vadd.f32 %v8960_v5, %v8784_v41 }
 0x3bf   : > { %v4814_v22 = vpop.f32.mrf.mxu1 }
 0x3c0   : > { %5074 = vmatmul.bf16.gmra.mxu2 %v4974_v34  ;;  %v4882_v33 = vadd.f32 %v4814_v22, %v4521_v44  ;;  %v3976_v34 = vadd.f32 %v8770_v9, %v8757_v14  ;;  %v4710_v22 = vsel %vm9967_vm0, %v4700_v52, %v4709_v40  ;;  %v4470_v44 = vpop.f32.mrf.mxu0 }
 0x3c2   : > { %4853 = vmatmul.bf16.gmra.mxu1 %v4701_v12  ;;  %v4915_v21 = vadd.f32 %v8919_v35, %v4882_v33  ;;  %v4560_v12 = vsel %vm10013_vm8, %v8511_v27, 0  ;;  %v4337_v30 = vadd.f32 %v8951_v26, %v3976_v34  ;;  %v6367_v33 = vld [vmem:[#allocation11 + $0x28] sm:$0xff] }
 0x3c3   : > { %v4712_v15 = vshrl.u32 %v4560_v12, 16  ;;  %v4715_v19 = vshll.u32 %v4560_v12, 16  ;;  %5457 = vmatpush.bf16.msrb.mxu0 %v6367_v33  ;;  %v4340_v12 = vadd.f32 %v4281_v58, %v8808_v55 }
 0x3c4   : > { %v4947_v45 = vmax.f32 %v4915_v21, 0.0  ;;  %v4524_v14 = vadd.f32 %v8954_v61, %v4337_v30  ;;  %v3978_v61 = vadd.f32 %v8794_v0, %v8775_v62 }
 0x3c5   : > { %v4714_v31 = vrot.slane %v4712_v15, 4  ;;  %v4717_v1 = vrot.slane %v4715_v19, 5  ;;  %v4527_v15 = vadd.f32 %v8984_v48, %v4340_v12 }
 0x3c6   : > { %v4286_v38 = vpop.f32.mrf.mxu3 }
 0x3c7   : > { %v4816_v6 = vpop.f32.mrf.mxu1  ;;  %v4718_v26 = vor.u32 %v4717_v1, %v4714_v31  ;;  %v4342_v48 = vadd.f32 %v4286_v38, %v8822_v39 }
 0x3c8   : > { %v4883_v25 = vadd.f32 %v4816_v6, %v4522_v47  ;;  %v4473_v6 = vpop.f32.mrf.mxu0 }
 0x3c9   : > { %v4719_v37 = vsel %vm10014_vm9, %v4709_v40, %v4718_v26 }
 0x3ca   : > { %v4916_v18 = vadd.f32 %v8919_v35, %v4883_v25 }
 0x3cc   : > { %v4948_v53 = vmax.f32 %v4916_v18, 0.0  ;;  %v4525_v18 = vadd.f32 %v8963_v49, %v4338_v4 }
 0x3ce   : > { %v4975_v16 = vpack.c.bf16 %v4948_v53, %v4947_v45  ;;  %v4339_v45 = vadd.f32 %v8968_v8, %v3978_v61  ;;  %v4288_v51 = vpop.f32.mrf.mxu3  ;;  %v3980_v8 = vadd.f32 %v8815_v23, %v8804_v50 }
 0x3cf   : > { %v4819_v20 = vpop.f32.mrf.mxu1 }
 0x3d0   : > { %5079 = vmatmul.bf16.gmra.mxu2 %v4975_v16  ;;  %v4884_v54 = vadd.f32 %v4819_v20, %v4523_v60  ;;  %v6354_v16 = vld [vmem:[#allocation10] sm:$0xff]  ;;  %v4526_v20 = vadd.f32 %v8970_v10, %v4339_v45  ;;  %v4475_v34 = vpop.f32.mrf.mxu0  ;;  %v4341_v19 = vadd.f32 %v4283_v3, %v3980_v8  ;;  %v3982_v3 = vadd.f32 %v8829_v43, %v8820_v29 }
 0x3d1   : > { %5260 = vmatpush.bf16.msrb.mxu3 %v6354_v16  ;;  %v9023_v16 = vpop.f32.mrf.mxu2 }
 0x3d2   : > { %4858 = vmatmul.bf16.gmra.mxu1 %v4710_v22  ;;  %v4917_v52 = vadd.f32 %v8919_v35, %v4884_v54  ;;  %v10015_v54 = vld [vmem:[#allocation22_spill] sm:$0xff] }
 0x3d3   : > { %v4720_v33 = vsel %vm10016_vm6, %v4718_v26, %v10015_v54  ;;  %v4343_v26 = vadd.f32 %v4288_v51, %v3982_v3  ;;  %v3984_v51 = vadd.f32 %v8841_v7, %v8832_v24 }
 0x3d4   : > { %v4949_v27 = vmax.f32 %v4917_v52, 0.0  ;;  %v4528_v52 = vadd.f32 %v4470_v44, %v4341_v19  ;;  %v4529_v44 = vadd.f32 %v4473_v6, %v4342_v48 }
 0x3d5   : > { %v4530_v61 = vadd.f32 %v4475_v34, %v4343_v26 }
 0x3d6   : > { %v4291_v30 = vpop.f32.mrf.mxu3 }
 0x3d7   : > { %v4821_v9 = vpop.f32.mrf.mxu1  ;;  %v4344_v6 = vadd.f32 %v4291_v30, %v8834_v32 }
 0x3d8   : > { %v4885_v63 = vadd.f32 %v4821_v9, %v4524_v14  ;;  %v4478_v10 = vpop.f32.mrf.mxu0  ;;  %v6366_v9 = vld [vmem:[#allocation11 + $0x20] sm:$0xff] }
 0x3d9   : > { %5458 = vmatpush.bf16.msrb.mxu0 %v6366_v9  ;;  %v4531_v34 = vadd.f32 %v4478_v10, %v4344_v6  ;;  %v10018_v10 = vld [vmem:[#allocation23_spill] sm:$0xff]  ;;  %v6364_v6 = vld [vmem:[#allocation11 + $0x10] sm:$0xff] }
 0x3da   : > { %v4918_v2 = vadd.f32 %v8919_v35, %v4885_v63 }
 0x3dc   : > { %v4950_v47 = vmax.f32 %v4918_v2, 0.0 }
 0x3de   : > { %v4976_v21 = vpack.c.bf16 %v4950_v47, %v4949_v27  ;;  %v4293_v31 = vpop.f32.mrf.mxu3 }
 0x3df   : > { %v4824_v25 = vpop.f32.mrf.mxu1 }
 0x3e0   : > { %5084 = vmatmul.bf16.gmra.mxu2 %v4976_v21  ;;  %v4886_v53 = vadd.f32 %v4824_v25, %v4525_v18  ;;  %v4480_v23 = vpop.f32.mrf.mxu0 }
 0x3e2   : > { %4863 = vmatmul.bf16.gmra.mxu1 %v4719_v37  ;;  %v4919_v41 = vadd.f32 %v8919_v35, %v4886_v53 }
 0x3e4   : > { %v4951_v0 = vmax.f32 %v4919_v41, 0.0 }
 0x3e6   : > { %v4296_v21 = vpop.f32.mrf.mxu3 }
 0x3e7   : > { %v4826_v22 = vpop.f32.mrf.mxu1 }
 0x3e8   : > { %v4887_v5 = vadd.f32 %v4826_v22, %v4526_v20  ;;  %v4483_v4 = vpop.f32.mrf.mxu0 }
 0x3ea   : > { %v4920_v62 = vadd.f32 %v8919_v35, %v4887_v5  ;;  %v4345_v5 = vadd.f32 %v4293_v31, %v3984_v51 }
 0x3ec   : > { %v4952_v40 = vmax.f32 %v4920_v62, 0.0 }
 0x3ee   : > { %v4977_v60 = vpack.c.bf16 %v4952_v40, %v4951_v0  ;;  %v4298_v38 = vpop.f32.mrf.mxu3  ;;  %v6365_v0 = vld [vmem:[#allocation11 + $0x18] sm:$0xff]  ;;  %v4532_v40 = vadd.f32 %v4480_v23, %v4345_v5 }
 0x3ef   : > { %v4829_v49 = vpop.f32.mrf.mxu1  ;;  %5459 = vmatpush.bf16.msrb.mxu0 %v6365_v0 }
 0x3f0   : > { %5089 = vmatmul.bf16.gmra.mxu2 %v4977_v60  ;;  %v4888_v14 = vadd.f32 %v4829_v49, %v4527_v15  ;;  %v4485_v29 = vpop.f32.mrf.mxu0  ;;  %v10017_v15 = vld [vmem:[#allocation19_spill] sm:$0xff] }
 0x3f2   : > { %4868 = vmatmul.bf16.gmra.mxu1 %v4720_v33  ;;  %v4921_v55 = vadd.f32 %v8919_v35, %v4888_v14 }
 0x3f3   : > { %5460 = vmatpush.bf16.msrb.mxu0 %v6364_v6 }
 0x3f4   : > { %v4953_v1 = vmax.f32 %v4921_v55, 0.0  ;;  %v3986_v55 = vadd.f32 %v8853_v56, %v8844_v57 }
 0x3f6   : > { %v4301_v49 = vpop.f32.mrf.mxu3 }
 0x3f7   : > { %v4831_v63 = vpop.f32.mrf.mxu1 }
 0x3f8   : > { %v4889_v58 = vadd.f32 %v4831_v63, %v4528_v52  ;;  %v4488_v54 = vpop.f32.mrf.mxu0  ;;  %v4346_v63 = vadd.f32 %v4296_v21, %v8846_v59 }
 0x3fa   : > { %v4922_v50 = vadd.f32 %v8919_v35, %v4889_v58  ;;  %v4533_v58 = vadd.f32 %v4483_v4, %v4346_v63  ;;  %v10020_v4 = vld [vmem:[#allocation27_spill] sm:$0xff] }
 0x3fc   : > { %v4954_v2 = vmax.f32 %v4922_v50, 0.0 }
 0x3fe   : > { %v4978_v27 = vpack.c.bf16 %v4954_v2, %v4953_v1  ;;  %v4303_v31 = vpop.f32.mrf.mxu3  ;;  %v4347_v1 = vadd.f32 %v4298_v38, %v3986_v55 }
 0x3ff   : > { %v4834_v47 = vpop.f32.mrf.mxu1 }
 0x400   : > { %5094 = vmatmul.bf16.gmra.mxu2 %v4978_v27  ;;  %v4890_v25 = vadd.f32 %v4834_v47, %v4529_v44  ;;  %v4490_v50 = vpop.f32.mrf.mxu0  ;;  %v4534_v27 = vadd.f32 %v4485_v29, %v4347_v1 }
 0x402   : > { %v4923_v18 = vadd.f32 %v8919_v35, %v4890_v25  ;;  %v10019_v25 = vld [vmem:[#allocation24_spill] sm:$0xff] }
 0x404   : > { %v4955_v20 = vmax.f32 %v4923_v18, 0.0 }
 0x406   : > { %v4306_v59 = vpop.f32.mrf.mxu3 }
 0x407   : > { %v4836_v37 = vpop.f32.mrf.mxu1 }
 0x408   : > { %v4891_v45 = vadd.f32 %v4836_v37, %v4530_v61  ;;  %v4493_v37 = vpop.f32.mrf.mxu0 }
 0x40a   : > { %v4924_v53 = vadd.f32 %v8919_v35, %v4891_v45 }
 0x40c   : > { %v4956_v39 = vmax.f32 %v4924_v53, 0.0 }
 0x40e   : > { %v4979_v22 = vpack.c.bf16 %v4956_v39, %v4955_v20  ;;  %v4348_v20 = vadd.f32 %v4301_v49, %v8858_v42  ;;  %v3988_v39 = vadd.f32 %v8865_v13, %v8856_v17  ;;  %v10021_v17 = vld [vmem:[#allocation28_spill] sm:$0xff] }
 0x40f   : > { %v4839_v43 = vpop.f32.mrf.mxu1 }
 0x410   : > { %5099 = vmatmul.bf16.gmra.mxu2 %v4979_v22  ;;  %v4892_v62 = vadd.f32 %v4839_v43, %v4531_v34  ;;  %v4535_v38 = vadd.f32 %v4488_v54, %v4348_v20  ;;  %v4349_v29 = vadd.f32 %v4303_v31, %v3988_v39  ;;  %v4308_v34 = vpop.f32.mrf.mxu3 }
 0x412   : > { %v4925_v12 = vadd.f32 %v8919_v35, %v4892_v62  ;;  %v4536_v51 = vadd.f32 %v4490_v50, %v4349_v29  ;;  %v6363_v29 = vld [vmem:[#allocation11 + $0x8] sm:$0xff] }
 0x413   : > { %v5060_v41 = vpop.f32.mrf.mxu2  ;;  %5461 = vmatpush.bf16.msrb.mxu0 %v6363_v29 }
 0x414   : > { %v4957_v30 = vmax.f32 %v4925_v12, 0.0  ;;  %v9031_v24 = vadd.f32 %v5060_v41, %v10017_v15  ;;  %v4495_v41 = vpop.f32.mrf.mxu0  ;;  %v10022_v12 = vld [vmem:[#allocation32_spill] sm:$0xff]  ;;  %v10023_v15 = vld [vmem:[#allocation62_spill] sm:$0xff] }
 0x417   : > { %v4841_v60 = vpop.f32.mrf.mxu1 }
 0x418   : > { %v4893_v8 = vadd.f32 %v4841_v60, %v4532_v40 }
 0x41a   : > { %v4926_v33 = vadd.f32 %v8919_v35, %v4893_v8 }
 0x41b   : > { %v5062_v32 = vpop.f32.mrf.mxu2 }
 0x41c   : > { %v4958_v7 = vmax.f32 %v4926_v33, 0.0  ;;  %v9034_v19 = vadd.f32 %v5062_v32, %v10018_v10  ;;  %v4311_v10 = vpop.f32.mrf.mxu3 }
 0x41e   : > { %v5172_v14 = vpack.c.bf16 %v9034_v19, %v9031_v24  ;;  %v4980_v9 = vpack.c.bf16 %v4958_v7, %v4957_v30  ;;  %v4350_v30 = vadd.f32 %v4306_v59, %v8870_v36  ;;  %v3990_v7 = vadd.f32 %v10023_v15, %v8868_v11  ;;  %v10024_v11 = vld [vmem:[#allocation34_spill] sm:$0xff] }
 0x41f   : > { %v4844_v52 = vpop.f32.mrf.mxu1 }
 0x420   : > { %5104 = vmatmul.bf16.gmra.mxu2 %v4980_v9  ;;  %5261 = vmatmul.bf16.vlgmr.msrb.gmra.mxu3 %v5172_v14  ;;  %v4894_v2 = vadd.f32 %v4844_v52, %v4533_v58  ;;  %v4498_v14 = vpop.f32.mrf.mxu0  ;;  %v4537_v9 = vadd.f32 %v4493_v37, %v4350_v30  ;;  %v4351_v63 = vadd.f32 %v4308_v34, %v3990_v7  ;;  %v10027_v37 = vld [vmem:[#allocation65_spill] sm:$0xff]  ;;  %v10031_v7 = vld [vmem:[#allocation76_spill] sm:$0xff] }
 0x422   : > { %v4927_v48 = vadd.f32 %v8919_v35, %v4894_v2  ;;  %v4538_v58 = vadd.f32 %v4495_v41, %v4351_v63 }
 0x423   : > { %v5065_v23 = vpop.f32.mrf.mxu2 }
 0x424   : > { %v4959_v21 = vmax.f32 %v4927_v48, 0.0  ;;  %v9044_v57 = vadd.f32 %v5065_v23, %v10019_v25  ;;  %v4313_v1 = vpop.f32.mrf.mxu3 }
 0x427   : > { %v4846_v47 = vpop.f32.mrf.mxu1 }
 0x428   : > { %v4895_v3 = vadd.f32 %v4846_v47, %v4534_v27  ;;  %v4500_v36 = vpop.f32.mrf.mxu0 }
 0x42a   : > { %v4928_v44 = vadd.f32 %v8919_v35, %v4895_v3 }
 0x42b   : > { %v5067_v26 = vpop.f32.mrf.mxu2 }
 0x42c   : > { %v4960_v56 = vmax.f32 %v4928_v44, 0.0  ;;  %v9047_v61 = vadd.f32 %v5067_v26, %v10020_v4  ;;  %v10025_v44 = vld [vmem:[#allocation38_spill] sm:$0xff] }
 0x42e   : > { %v5173_v18 = vpack.c.bf16 %v9047_v61, %v9044_v57  ;;  %v4981_v45 = vpack.c.bf16 %v4960_v56, %v4959_v21  ;;  %v10026_v56 = vld [vmem:[#allocation72_spill] sm:$0xff] }
 0x42f   : > { %v4849_v53 = vpop.f32.mrf.mxu1  ;;  %v4352_v4 = vadd.f32 %v4311_v10, %v10026_v56  ;;  %v3994_v10 = vadd.f32 %v10031_v7, %v8892_v28 }
 0x430   : > { %5109 = vmatmul.bf16.gmra.mxu2 %v4981_v45  ;;  %5266 = vmatmul.bf16.gmra.mxu3 %v5173_v18  ;;  %v4896_v43 = vadd.f32 %v4849_v53, %v4535_v38  ;;  %v10028_v18 = vld [vmem:[#allocation74_spill] sm:$0xff]  ;;  %v4316_v38 = vpop.f32.mrf.mxu3 }
 0x431   : > { %v3992_v45 = vadd.f32 %v10028_v18, %v10027_v37  ;;  %v4539_v53 = vadd.f32 %v4498_v14, %v4352_v4  ;;  %v4354_v15 = vadd.f32 %v4316_v38, %v8894_v46  ;;  %v10035_v4 = vld [vmem:[#allocation77_spill] sm:$0xff]  ;;  %v6362_v18 = vld [vmem:[#allocation11] sm:$0xff] }
 0x432   : > { %v4929_v62 = vadd.f32 %v8919_v35, %v4896_v43  ;;  %v4503_v43 = vpop.f32.mrf.mxu0  ;;  %v3996_v37 = vadd.f32 %v9023_v16, %v10035_v4  ;;  %5462 = vmatpush.bf16.msrb.mxu0 %v6362_v18  ;;  %v10036_v16 = vld [vmem:[#allocation43_spill] sm:$0xff] }
 0x433   : > { %v5070_v22 = vpop.f32.mrf.mxu2  ;;  %v4353_v39 = vadd.f32 %v4313_v1, %v3992_v45  ;;  %v4541_v14 = vadd.f32 %v4503_v43, %v4354_v15 }
 0x434   : > { %v4961_v60 = vmax.f32 %v4929_v62, 0.0  ;;  %v9057_v13 = vadd.f32 %v5070_v22, %v10021_v17  ;;  %v10030_v17 = vld [vmem:[#allocation29_spill] sm:$0xff] }
 0x435   : > { %v4540_v6 = vadd.f32 %v4500_v36, %v4353_v39 }
 0x437   : > { %v4851_v5 = vpop.f32.mrf.mxu1 }
 0x438   : > { %v4897_v0 = vadd.f32 %v4851_v5, %v4536_v51 }
 0x43a   : > { %v4930_v42 = vadd.f32 %v8919_v35, %v4897_v0 }
 0x43b   : > { %v5072_v40 = vpop.f32.mrf.mxu2 }
 0x43c   : > { %v4962_v49 = vmax.f32 %v4930_v42, 0.0  ;;  %v9060_v8 = vadd.f32 %v5072_v40, %v10022_v12  ;;  %v10029_v42 = vld [vmem:[#allocation25_spill] sm:$0xff]  ;;  %v4318_v12 = vpop.f32.mrf.mxu3 }
 0x43e   : > { %v5174_v54 = vpack.c.bf16 %v9060_v8, %v9057_v13  ;;  %v4982_v33 = vpack.c.bf16 %v4962_v49, %v4961_v60 }
 0x43f   : > { %v4854_v32 = vpop.f32.mrf.mxu1 }
 0x440   : > { %5114 = vmatmul.bf16.gmra.mxu2 %v4982_v33  ;;  %5271 = vmatmul.bf16.gmra.mxu3 %v5174_v54  ;;  %v4898_v55 = vadd.f32 %v4854_v32, %v4537_v9  ;;  %v4505_v32 = vpop.f32.mrf.mxu0 }
 0x442   : > { %v4931_v50 = vadd.f32 %v8919_v35, %v4898_v55 }
 0x443   : > { %v5075_v52 = vpop.f32.mrf.mxu2 }
 0x444   : > { %v4963_v47 = vmax.f32 %v4931_v50, 0.0  ;;  %v9070_v48 = vadd.f32 %v5075_v52, %v10024_v11  ;;  %v4355_v52 = vadd.f32 %v4318_v12, %v3994_v10  ;;  %v10033_v11 = vld [vmem:[#allocation42_spill] sm:$0xff] }
 0x446   : > { %v4542_v55 = vadd.f32 %v4505_v32, %v4355_v52  ;;  %v10038_v32 = vld [vmem:[#allocation45_spill] sm:$0xff] }
 0x447   : > { %v4856_v31 = vpop.f32.mrf.mxu1 }
 0x448   : > { %v4899_v23 = vadd.f32 %v4856_v31, %v4538_v58  ;;  %v4321_v31 = vpop.f32.mrf.mxu3  ;;  %v4508_v1 = vpop.f32.mrf.mxu0 }
 0x44a   : > { %v4932_v2 = vadd.f32 %v8919_v35, %v4899_v23 }
 0x44b   : > { %v5077_v27 = vpop.f32.mrf.mxu2 }
 0x44c   : > { %v4964_v3 = vmax.f32 %v4932_v2, 0.0  ;;  %v9073_v26 = vadd.f32 %v5077_v27, %v10025_v44  ;;  %v10032_v27 = vld [vmem:[#allocation35_spill] sm:$0xff] }
 0x44e   : > { %v5175_v59 = vpack.c.bf16 %v9073_v26, %v9070_v48  ;;  %v4983_v21 = vpack.c.bf16 %v4964_v3, %v4963_v47 }
 0x44f   : > { %v4859_v25 = vpop.f32.mrf.mxu1 }
 0x450   : > { %5119 = vmatmul.bf16.gmra.mxu2 %v4983_v21  ;;  %5276 = vmatmul.bf16.gmra.mxu3 %v5175_v59  ;;  %v4900_v22 = vadd.f32 %v4859_v25, %v4539_v53  ;;  %v10034_v25 = vld [vmem:[#allocation80_spill] sm:$0xff]  ;;  %v4323_v45 = vpop.f32.mrf.mxu3 }
 0x451   : > { %v4356_v56 = vadd.f32 %v4321_v31, %v10034_v25  ;;  %v4357_v38 = vadd.f32 %v4323_v45, %v3996_v37 }
 0x452   : > { %v4933_v34 = vadd.f32 %v8919_v35, %v4900_v22 }
 0x453   : > { %v5080_v20 = vpop.f32.mrf.mxu2  ;;  %v4543_v53 = vadd.f32 %v4508_v1, %v4356_v56 }
 0x454   : > { %v4965_v0 = vmax.f32 %v4933_v34, 0.0  ;;  %v9083_v40 = vadd.f32 %v5080_v20, %v10029_v42  ;;  %v4510_v20 = vpop.f32.mrf.mxu0  ;;  %v10037_v42 = vld [vmem:[#allocation44_spill] sm:$0xff] }
 0x455   : > { %v4544_v29 = vadd.f32 %v4510_v20, %v4357_v38 }
 0x457   : > { %v4861_v51 = vpop.f32.mrf.mxu1 }
 0x458   : > { %v4901_v41 = vadd.f32 %v4861_v51, %v4540_v6 }
 0x45a   : > { %v4934_v5 = vadd.f32 %v8919_v35, %v4901_v41 }
 0x45b   : > { %v5082_v62 = vpop.f32.mrf.mxu2 }
 0x45c   : > { %v4966_v60 = vmax.f32 %v4934_v5, 0.0  ;;  %v9086_v49 = vadd.f32 %v5082_v62, %v10030_v17 }
 0x45e   : > { %v5176_v54 = vpack.c.bf16 %v9086_v49, %v9083_v40  ;;  %v4984_v33 = vpack.c.bf16 %v4966_v60, %v4965_v0 }
 0x45f   : > { %v4864_v30 = vpop.f32.mrf.mxu1 }
 0x460   : > { %5124 = vmatmul.bf16.gmra.mxu2 %v4984_v33  ;;  %5281 = vmatmul.bf16.gmra.mxu3 %v5176_v54  ;;  %v4902_v63 = vadd.f32 %v4864_v30, %v4541_v14 }
 0x462   : > { %v4935_v50 = vadd.f32 %v8919_v35, %v4902_v63  ;;  %v10041_v63 = vld [vmem:[#allocation53_spill] sm:$0xff] }
 0x463   : > { %v5085_v9 = vpop.f32.mrf.mxu2 }
 0x464   : > { %v4967_v46 = vmax.f32 %v4935_v50, 0.0  ;;  %v9096_v47 = vadd.f32 %v5085_v9, %v10032_v27  ;;  %v10040_v9 = vld [vmem:[#allocation47_spill] sm:$0xff]  ;;  %v10043_v27 = vld [vmem:[#allocation58_spill] sm:$0xff] }
 0x467   : > { %v4866_v58 = vpop.f32.mrf.mxu1 }
 0x468   : > { %v4903_v23 = vadd.f32 %v4866_v58, %v4542_v55 }
 0x46a   : > { %v4936_v2 = vadd.f32 %v8919_v35, %v4903_v23  ;;  %v10042_v23 = vld [vmem:[#allocation83_spill] sm:$0xff] }
 0x46b   : > { %v5087_v36 = vpop.f32.mrf.mxu2  ;;  %v9133_v1 = vperm.slane %v10042_v23, 2 }
 0x46c   : > { %v4968_v28 = vmax.f32 %v4936_v2, 0.0  ;;  %v9099_v3 = vadd.f32 %v5087_v36, %v10033_v11  ;;  %v10044_v11 = vld [vmem:[#allocation61_spill] sm:$0xff] }
 0x46e   : > { %v5177_v44 = vpack.c.bf16 %v9099_v3, %v9096_v47  ;;  %v4985_v59 = vpack.c.bf16 %v4968_v28, %v4967_v46 }
 0x46f   : > { %v4869_v21 = vpop.f32.mrf.mxu1 }
 0x470   : > { %5129 = vmatmul.bf16.gmra.mxu2 %v4985_v59  ;;  %5286 = vmatmul.bf16.gmra.mxu3 %v5177_v44  ;;  %v4904_v22 = vadd.f32 %v4869_v21, %v4543_v53 }
 0x472   : > { %v4937_v6 = vadd.f32 %v8919_v35, %v4904_v22  ;;  %v10046_v22 = vld [vmem:[#allocation66_spill] sm:$0xff] }
 0x473   : > { %v5090_v39 = vpop.f32.mrf.mxu2 }
 0x474   : > { %v4969_v5 = vmax.f32 %v4937_v6, 0.0  ;;  %v9109_v62 = vadd.f32 %v5090_v39, %v10036_v16  ;;  %v10045_v39 = vld [vmem:[#allocation63_spill] sm:$0xff] }
 0x477   : > { %v4871_v43 = vpop.f32.mrf.mxu1 }
 0x478   : > { %v4905_v51 = vadd.f32 %v4871_v43, %v4544_v29 }
 0x47a   : > { %v4938_v34 = vadd.f32 %v8919_v35, %v4905_v51  ;;  %v10039_v35 = vld [vmem:[#allocation55_spill] sm:$0xff] }
 0x47b   : > { %v5092_v41 = vpop.f32.mrf.mxu2 }
 0x47c   : > { %v4970_v0 = vmax.f32 %v4938_v34, 0.0  ;;  %v9112_v60 = vadd.f32 %v5092_v41, %v10037_v42 }
 0x47e   : > { %v5178_v17 = vpack.c.bf16 %v9112_v60, %v9109_v62  ;;  %v4986_v12 = vpack.c.bf16 %v4970_v0, %v4969_v5 }
 0x480   : > { %5134 = vmatmul.bf16.gmra.mxu2 %v4986_v12  ;;  %5291 = vmatmul.bf16.gmra.mxu3 %v5178_v17  ;;  %v10047_v12 = vld [vmem:[#allocation68_spill] sm:$0xff] }
 0x483   : > { %v5095_v54 = vpop.f32.mrf.mxu2 }
 0x484   : > { %v9117_v30 = vadd.f32 %v5095_v54, %v10038_v32 }
 0x48b   : > { %v5097_v33 = vpop.f32.mrf.mxu2 }
 0x48c   : > { %v9120_v15 = vadd.f32 %v5097_v33, %v10039_v35  ;;  %v10048_v33 = vld [vmem:[#allocation73_spill] sm:$0xff] }
 0x48e   : > { %v5179_v7 = vpack.c.bf16 %v9120_v15, %v9117_v30 }
 0x490   : > { %5296 = vmatmul.bf16.gmra.mxu3 %v5179_v7 }
 0x493   : > { %v5100_v10 = vpop.f32.mrf.mxu2 }
 0x494   : > { %v9125_v52 = vadd.f32 %v5100_v10, %v10040_v9 }
 0x49b   : > { %v5102_v14 = vpop.f32.mrf.mxu2 }
 0x49c   : > { %v9128_v55 = vadd.f32 %v5102_v14, %v10041_v63 }
 0x49e   : > { %v5180_v58 = vpack.c.bf16 %v9128_v55, %v9125_v52 }
 0x4a0   : > { %5301 = vmatmul.bf16.gmra.mxu3 %v5180_v58 }
 0x4a3   : > { %v5105_v31 = vpop.f32.mrf.mxu2  ;;  %v5262_v50 = vpop.f32.mrf.mxu3 }
 0x4a4   : > { %v5263_v2 = vadd.f32 %v5262_v50, %v9133_v1  ;;  %v9137_v28 = vadd.f32 %v5105_v31, %v10043_v27  ;;  %v10050_v27 = vld [vmem:[#allocation54_spill] sm:$0xff] }
 0x4a6   : > { %v5342_v21 = vmax.f32 %v5263_v2, 0.0 }
 0x4ab   : > { %v5107_v36 = vpop.f32.mrf.mxu2  ;;  %v5264_v46 = vpop.f32.mrf.mxu3 }
 0x4ac   : > { %v9140_v44 = vadd.f32 %v5107_v36, %v10044_v11  ;;  %v5265_v59 = vadd.f32 %v5264_v46, %v9133_v1  ;;  %v10049_v36 = vld [vmem:[#allocation49_spill] sm:$0xff] }
 0x4ae   : > { %v5181_v25 = vpack.c.bf16 %v9140_v44, %v9137_v28  ;;  %v5343_v56 = vmax.f32 %v5265_v59, 0.0 }
 0x4b0   : > { %v5374_v4 = vpack.c.bf16 %v5343_v56, %v5342_v21  ;;  %5306 = vmatmul.bf16.gmra.mxu3 %v5181_v25 }
 0x4b2   : > { %5463 = vmatmul.bf16.vlgmr.msrb.gmra.mxu0 %v5374_v4 }
 0x4b3   : > { %v5110_v37 = vpop.f32.mrf.mxu2  ;;  %v5267_v18 = vpop.f32.mrf.mxu3 }
 0x4b4   : > { %v5268_v45 = vadd.f32 %v5267_v18, %v9133_v1  ;;  %v9147_v38 = vadd.f32 %v5110_v37, %v10045_v39  ;;  %v10051_v39 = vld [vmem:[#allocation60_spill] sm:$0xff] }
 0x4b6   : > { %v5344_v6 = vmax.f32 %v5268_v45, 0.0 }
 0x4bb   : > { %v5112_v53 = vpop.f32.mrf.mxu2  ;;  %v5269_v20 = vpop.f32.mrf.mxu3 }
 0x4bc   : > { %v9150_v29 = vadd.f32 %v5112_v53, %v10046_v22  ;;  %v5270_v43 = vadd.f32 %v5269_v20, %v9133_v1 }
 0x4be   : > { %v5182_v51 = vpack.c.bf16 %v9150_v29, %v9147_v38  ;;  %v5345_v34 = vmax.f32 %v5270_v43, 0.0  ;;  %v10052_v43 = vld [vmem:[#allocation69_spill] sm:$0xff] }
 0x4c0   : > { %5311 = vmatmul.bf16.gmra.mxu3 %v5182_v51  ;;  %v5375_v41 = vpack.c.bf16 %v5345_v34, %v5344_v6 }
 0x4c2   : > { %5468 = vmatmul.bf16.gmra.mxu0 %v5375_v41 }
 0x4c3   : > { %v5115_v5 = vpop.f32.mrf.mxu2  ;;  %v5272_v16 = vpop.f32.mrf.mxu3 }
 0x4c4   : > { %v5273_v0 = vadd.f32 %v5272_v16, %v9133_v1  ;;  %v9157_v54 = vadd.f32 %v5115_v5, %v10047_v12 }
 0x4c6   : > { %v5346_v7 = vmax.f32 %v5273_v0, 0.0 }
 0x4cb   : > { %v5117_v42 = vpop.f32.mrf.mxu2  ;;  %v5274_v17 = vpop.f32.mrf.mxu3 }
 0x4cc   : > { %v9160_v32 = vadd.f32 %v5117_v42, %v10048_v33  ;;  %v5275_v35 = vadd.f32 %v5274_v17, %v9133_v1 }
 0x4ce   : > { %v5183_v10 = vpack.c.bf16 %v9160_v32, %v9157_v54  ;;  %v5347_v14 = vmax.f32 %v5275_v35, 0.0  ;;  %v10053_v35 = vld [vmem:[#allocation92_spill] sm:$0xff] }
 0x4d0   : > { %5316 = vmatmul.bf16.gmra.mxu3 %v5183_v10  ;;  %v5376_v9 = vpack.c.bf16 %v5347_v14, %v5346_v7  ;;  %v10054_v10 = vld [vmem:[#allocation95_spill] sm:$0xff] }
 0x4d2   : > { %5473 = vmatmul.bf16.gmra.mxu0 %v5376_v9 }
 0x4d3   : > { %v5120_v63 = vpop.f32.mrf.mxu2  ;;  %v5277_v58 = vpop.f32.mrf.mxu3 }
 0x4d4   : > { %v5278_v31 = vadd.f32 %v5277_v58, %v9133_v1  ;;  %v9167_v46 = vadd.f32 %v5120_v63, %v10049_v36 }
 0x4d6   : > { %v5348_v21 = vmax.f32 %v5278_v31, 0.0 }
 0x4db   : > { %v5122_v50 = vpop.f32.mrf.mxu2  ;;  %v5279_v2 = vpop.f32.mrf.mxu3 }
 0x4dc   : > { %v9170_v11 = vadd.f32 %v5122_v50, %v10050_v27  ;;  %v5280_v59 = vadd.f32 %v5279_v2, %v9133_v1 }
 0x4de   : > { %v5184_v25 = vpack.c.bf16 %v9170_v11, %v9167_v46  ;;  %v5349_v56 = vmax.f32 %v5280_v59, 0.0 }
 0x4e0   : > { %5321 = vmatmul.bf16.gmra.mxu3 %v5184_v25  ;;  %v5377_v4 = vpack.c.bf16 %v5349_v56, %v5348_v21  ;;  %v10055_v25 = vld [vmem:[#allocation97_spill] sm:$0xff] }
 0x4e2   : > { %5478 = vmatmul.bf16.gmra.mxu0 %v5377_v4  ;;  %v10056_v4 = vld [vmem:[#allocation98_spill] sm:$0xff] }
 0x4e3   : > { %v5125_v37 = vpop.f32.mrf.mxu2  ;;  %v5282_v18 = vpop.f32.mrf.mxu3 }
 0x4e4   : > { %v5283_v45 = vadd.f32 %v5282_v18, %v9133_v1  ;;  %v9177_v22 = vadd.f32 %v5125_v37, %v10051_v39 }
 0x4e6   : > { %v5350_v34 = vmax.f32 %v5283_v45, 0.0 }
 0x4eb   : > { %v5127_v53 = vpop.f32.mrf.mxu2  ;;  %v5284_v20 = vpop.f32.mrf.mxu3 }
 0x4ec   : > { %v9180_v6 = vadd.f32 %v5127_v53, %v10052_v43  ;;  %v5285_v51 = vadd.f32 %v5284_v20, %v9133_v1 }
 0x4ee   : > { %v5185_v41 = vpack.c.bf16 %v9180_v6, %v9177_v22  ;;  %v5351_v5 = vmax.f32 %v5285_v51, 0.0 }
 0x4f0   : > { %v5378_v16 = vpack.c.bf16 %v5351_v5, %v5350_v34  ;;  %5326 = vmatmul.bf16.gmra.mxu3 %v5185_v41 }
 0x4f2   : > { %5483 = vmatmul.bf16.gmra.mxu0 %v5378_v16 }
 0x4f3   : > { %v5130_v0 = vpop.f32.mrf.mxu2  ;;  %v5287_v42 = vpop.f32.mrf.mxu3 }
 0x4f4   : > { %v5288_v17 = vadd.f32 %v5287_v42, %v9133_v1  ;;  %v9187_v7 = vadd.f32 %v5130_v0, %v10053_v35  ;;  %v9210_v35 = vperm.slane %v10042_v23, 3 }
 0x4f6   : > { %v5352_v63 = vmax.f32 %v5288_v17, 0.0 }
 0x4fb   : > { %v5132_v12 = vpop.f32.mrf.mxu2  ;;  %v5289_v33 = vpop.f32.mrf.mxu3 }
 0x4fc   : > { %v9190_v14 = vadd.f32 %v5132_v12, %v10054_v10  ;;  %v5290_v9 = vadd.f32 %v5289_v33, %v9133_v1 }
 0x4fe   : > { %v5186_v58 = vpack.c.bf16 %v9190_v14, %v9187_v7  ;;  %v5353_v31 = vmax.f32 %v5290_v9, 0.0 }
 0x500   : > { %v5379_v50 = vpack.c.bf16 %v5353_v31, %v5352_v63  ;;  %5331 = vmatmul.bf16.gmra.mxu3 %v5186_v58 }
 0x502   : > { %5488 = vmatmul.bf16.gmra.mxu0 %v5379_v50 }
 0x503   : > { %v5135_v2 = vpop.f32.mrf.mxu2  ;;  %v5292_v36 = vpop.f32.mrf.mxu3 }
 0x504   : > { %v5293_v27 = vadd.f32 %v5292_v36, %v9133_v1  ;;  %v9197_v56 = vadd.f32 %v5135_v2, %v10055_v25 }
 0x506   : > { %v5354_v45 = vmax.f32 %v5293_v27, 0.0 }
 0x50b   : > { %v5137_v59 = vpop.f32.mrf.mxu2  ;;  %v5294_v21 = vpop.f32.mrf.mxu3 }
 0x50c   : > { %v9200_v37 = vadd.f32 %v5137_v59, %v10056_v4  ;;  %v5295_v18 = vadd.f32 %v5294_v21, %v9133_v1 }
 0x50e   : > { %v5187_v53 = vpack.c.bf16 %v9200_v37, %v9197_v56  ;;  %v5355_v20 = vmax.f32 %v5295_v18, 0.0 }
 0x510   : > { %v5380_v39 = vpack.c.bf16 %v5355_v20, %v5354_v45  ;;  %5336 = vmatmul.bf16.gmra.mxu3 %v5187_v53 }
 0x512   : > { %5493 = vmatmul.bf16.gmra.mxu0 %v5380_v39 }
 0x513   : > { %v5297_v43 = vpop.f32.mrf.mxu3 }
 0x514   : > { %v5298_v51 = vadd.f32 %v5297_v43, %v9133_v1 }
 0x516   : > { %v5356_v5 = vmax.f32 %v5298_v51, 0.0 }
 0x51b   : > { %v5299_v34 = vpop.f32.mrf.mxu3 }
 0x51c   : > { %v5300_v41 = vadd.f32 %v5299_v34, %v9133_v1 }
 0x51e   : > { %v5357_v16 = vmax.f32 %v5300_v41, 0.0 }
 0x520   : > { %v5381_v0 = vpack.c.bf16 %v5357_v16, %v5356_v5 }
 0x522   : > { %5498 = vmatmul.bf16.gmra.mxu0 %v5381_v0 }
 0x523   : > { %v5302_v42 = vpop.f32.mrf.mxu3 }
 0x524   : > { %v5303_v17 = vadd.f32 %v5302_v42, %v9133_v1 }
 0x526   : > { %v5358_v10 = vmax.f32 %v5303_v17, 0.0 }
 0x52b   : > { %v5304_v12 = vpop.f32.mrf.mxu3 }
 0x52c   : > { %v5305_v33 = vadd.f32 %v5304_v12, %v9133_v1 }
 0x52e   : > { %v5359_v9 = vmax.f32 %v5305_v33, 0.0 }
 0x52f   : > { %v5464_v63 = vpop.f32.mrf.mxu0 }
 0x530   : > { %v5382_v58 = vpack.c.bf16 %v5359_v9, %v5358_v10  ;;  %v5465_v31 = vadd.f32 %v5464_v63, %v9210_v35 }
 0x532   : > { %v5544_v50 = vadd.f32 %v5465_v31, %v9031_v24  ;;  %5503 = vmatmul.bf16.gmra.mxu0 %v5382_v58 }
 0x533   : > { %v5307_v2 = vpop.f32.mrf.mxu3 }
 0x534   : > { %5576 = vst [vmem:[%s9215_s19] sm:$0xff] %v5544_v50  ;;  %v5308_v27 = vadd.f32 %v5307_v2, %v9133_v1 }
 0x536   : > { %v5360_v25 = vmax.f32 %v5308_v27, 0.0 }
 0x537   : > { %v5466_v36 = vpop.f32.mrf.mxu0 }
 0x538   : > { %v5467_v23 = vadd.f32 %v5466_v36, %v9210_v35 }
 0x53a   : > { %v5545_v59 = vadd.f32 %v5467_v23, %v9034_v19 }
 0x53b   : > { %v5309_v21 = vpop.f32.mrf.mxu3 }
 0x53c   : > { %5577 = vst [vmem:[%s9215_s19 + $0x8] sm:$0xff] %v5545_v59  ;;  %v5310_v24 = vadd.f32 %v5309_v21, %v9133_v1 }
 0x53e   : > { %v5361_v4 = vmax.f32 %v5310_v24, 0.0 }
 0x53f   : > { %v5469_v18 = vpop.f32.mrf.mxu0 }
 0x540   : > { %v5383_v45 = vpack.c.bf16 %v5361_v4, %v5360_v25  ;;  %v5470_v53 = vadd.f32 %v5469_v18, %v9210_v35 }
 0x542   : > { %v5546_v20 = vadd.f32 %v5470_v53, %v9044_v57  ;;  %5508 = vmatmul.bf16.gmra.mxu0 %v5383_v45 }
 0x543   : > { %v5312_v39 = vpop.f32.mrf.mxu3 }
 0x544   : > { %5578 = vst [vmem:[%s9215_s19 + $0x10] sm:$0xff] %v5546_v20  ;;  %v5313_v51 = vadd.f32 %v5312_v39, %v9133_v1 }
 0x546   : > { %v5362_v16 = vmax.f32 %v5313_v51, 0.0 }
 0x547   : > { %v5471_v43 = vpop.f32.mrf.mxu0 }
 0x548   : > { %v5472_v19 = vadd.f32 %v5471_v43, %v9210_v35 }
 0x54a   : > { %v5547_v34 = vadd.f32 %v5472_v19, %v9047_v61 }
 0x54b   : > { %v5314_v41 = vpop.f32.mrf.mxu3 }
 0x54c   : > { %5579 = vst [vmem:[%s9215_s19 + $0x18] sm:$0xff] %v5547_v34  ;;  %v5315_v5 = vadd.f32 %v5314_v41, %v9133_v1 }
 0x54e   : > { %v5363_v0 = vmax.f32 %v5315_v5, 0.0 }
 0x54f   : > { %v5474_v42 = vpop.f32.mrf.mxu0 }
 0x550   : > { %v5384_v57 = vpack.c.bf16 %v5363_v0, %v5362_v16  ;;  %v5475_v17 = vadd.f32 %v5474_v42, %v9210_v35 }
 0x552   : > { %v5548_v12 = vadd.f32 %v5475_v17, %v9057_v13  ;;  %5513 = vmatmul.bf16.gmra.mxu0 %v5384_v57 }
 0x553   : > { %v5317_v33 = vpop.f32.mrf.mxu3 }
 0x554   : > { %5580 = vst [vmem:[%s9215_s19 + $0x20] sm:$0xff] %v5548_v12  ;;  %v5318_v9 = vadd.f32 %v5317_v33, %v9133_v1 }
 0x556   : > { %v5364_v50 = vmax.f32 %v5318_v9, 0.0 }
 0x557   : > { %v5476_v10 = vpop.f32.mrf.mxu0 }
 0x558   : > { %v5477_v61 = vadd.f32 %v5476_v10, %v9210_v35 }
 0x55a   : > { %v5549_v63 = vadd.f32 %v5477_v61, %v9060_v8 }
 0x55b   : > { %v5319_v58 = vpop.f32.mrf.mxu3 }
 0x55c   : > { %5581 = vst [vmem:[%s9215_s19 + $0x28] sm:$0xff] %v5549_v63  ;;  %v5320_v31 = vadd.f32 %v5319_v58, %v9133_v1 }
 0x55e   : > { %v5365_v2 = vmax.f32 %v5320_v31, 0.0 }
 0x55f   : > { %v5479_v36 = vpop.f32.mrf.mxu0 }
 0x560   : > { %v5385_v13 = vpack.c.bf16 %v5365_v2, %v5364_v50  ;;  %v5480_v23 = vadd.f32 %v5479_v36, %v9210_v35 }
 0x562   : > { %v5550_v27 = vadd.f32 %v5480_v23, %v9070_v48  ;;  %5518 = vmatmul.bf16.gmra.mxu0 %v5385_v13 }
 0x563   : > { %v5322_v59 = vpop.f32.mrf.mxu3 }
 0x564   : > { %5582 = vst [vmem:[%s9215_s19 + $0x30] sm:$0xff] %v5550_v27  ;;  %v5323_v24 = vadd.f32 %v5322_v59, %v9133_v1 }
 0x566   : > { %v5366_v45 = vmax.f32 %v5323_v24, 0.0 }
 0x567   : > { %v5481_v21 = vpop.f32.mrf.mxu0 }
 0x568   : > { %v5482_v8 = vadd.f32 %v5481_v21, %v9210_v35 }
 0x56a   : > { %v5551_v25 = vadd.f32 %v5482_v8, %v9073_v26 }
 0x56b   : > { %v5324_v4 = vpop.f32.mrf.mxu3 }
 0x56c   : > { %5583 = vst [vmem:[%s9215_s19 + $0x38] sm:$0xff] %v5551_v25  ;;  %v5325_v18 = vadd.f32 %v5324_v4, %v9133_v1 }
 0x56e   : > { %v5367_v53 = vmax.f32 %v5325_v18, 0.0 }
 0x56f   : > { %v5484_v20 = vpop.f32.mrf.mxu0 }
 0x570   : > { %v5386_v48 = vpack.c.bf16 %v5367_v53, %v5366_v45  ;;  %v5485_v39 = vadd.f32 %v5484_v20, %v9210_v35 }
 0x572   : > { %v5552_v43 = vadd.f32 %v5485_v39, %v9083_v40  ;;  %5523 = vmatmul.bf16.gmra.mxu0 %v5386_v48 }
 0x573   : > { %v5327_v19 = vpop.f32.mrf.mxu3 }
 0x574   : > { %5584 = vst [vmem:[%s9215_s19 + $0x40] sm:$0xff] %v5552_v43  ;;  %v5328_v34 = vadd.f32 %v5327_v19, %v9133_v1 }
 0x576   : > { %v5368_v0 = vmax.f32 %v5328_v34, 0.0 }
 0x577   : > { %v5486_v51 = vpop.f32.mrf.mxu0 }
 0x578   : > { %v5487_v26 = vadd.f32 %v5486_v51, %v9210_v35 }
 0x57a   : > { %v5553_v41 = vadd.f32 %v5487_v26, %v9086_v49 }
 0x57b   : > { %v5329_v5 = vpop.f32.mrf.mxu3 }
 0x57c   : > { %5585 = vst [vmem:[%s9215_s19 + $0x48] sm:$0xff] %v5553_v41  ;;  %v5330_v16 = vadd.f32 %v5329_v5, %v9133_v1 }
 0x57e   : > { %v5369_v42 = vmax.f32 %v5330_v16, 0.0 }
 0x57f   : > { %v5489_v57 = vpop.f32.mrf.mxu0 }
 0x580   : > { %v5387_v40 = vpack.c.bf16 %v5369_v42, %v5368_v0  ;;  %v5490_v17 = vadd.f32 %v5489_v57, %v9210_v35 }
 0x582   : > { %v5554_v12 = vadd.f32 %v5490_v17, %v9096_v47  ;;  %5528 = vmatmul.bf16.gmra.mxu0 %v5387_v40 }
 0x583   : > { %v5332_v33 = vpop.f32.mrf.mxu3 }
 0x584   : > { %5586 = vst [vmem:[%s9215_s19 + $0x50] sm:$0xff] %v5554_v12  ;;  %v5333_v61 = vadd.f32 %v5332_v33, %v9133_v1 }
 0x586   : > { %v5370_v31 = vmax.f32 %v5333_v61, 0.0 }
 0x587   : > { %v5491_v10 = vpop.f32.mrf.mxu0 }
 0x588   : > { %v5492_v49 = vadd.f32 %v5491_v10, %v9210_v35 }
 0x58a   : > { %v5555_v9 = vadd.f32 %v5492_v49, %v9099_v3 }
 0x58b   : > { %v5334_v63 = vpop.f32.mrf.mxu3 }
 0x58c   : > { %5587 = vst [vmem:[%s9215_s19 + $0x58] sm:$0xff] %v5555_v9  ;;  %v5335_v58 = vadd.f32 %v5334_v63, %v9133_v1 }
 0x58e   : > { %v5371_v50 = vmax.f32 %v5335_v58, 0.0 }
 0x58f   : > { %v5494_v2 = vpop.f32.mrf.mxu0 }
 0x590   : > { %v5388_v47 = vpack.c.bf16 %v5371_v50, %v5370_v31  ;;  %v5495_v36 = vadd.f32 %v5494_v2, %v9210_v35 }
 0x592   : > { %v5556_v13 = vadd.f32 %v5495_v36, %v9109_v62  ;;  %5533 = vmatmul.bf16.gmra.mxu0 %v5388_v47 }
 0x593   : > { %v5337_v23 = vpop.f32.mrf.mxu3 }
 0x594   : > { %5588 = vst [vmem:[%s9215_s19 + $0x60] sm:$0xff] %v5556_v13  ;;  %v5338_v59 = vadd.f32 %v5337_v23, %v9133_v1 }
 0x596   : > { %v5372_v25 = vmax.f32 %v5338_v59, 0.0 }
 0x597   : > { %v5496_v27 = vpop.f32.mrf.mxu0 }
 0x598   : > { %v5497_v3 = vadd.f32 %v5496_v27, %v9210_v35 }
 0x59a   : > { %v5557_v21 = vadd.f32 %v5497_v3, %v9112_v60 }
 0x59b   : > { %v5339_v8 = vpop.f32.mrf.mxu3 }
 0x59c   : > { %5589 = vst [vmem:[%s9215_s19 + $0x68] sm:$0xff] %v5557_v21  ;;  %v5340_v24 = vadd.f32 %v5339_v8, %v9133_v1 }
 0x59e   : > { %v5373_v4 = vmax.f32 %v5340_v24, 0.0 }
 0x59f   : > { %v5499_v62 = vpop.f32.mrf.mxu0 }
 0x5a0   : > { %v5389_v18 = vpack.c.bf16 %v5373_v4, %v5372_v25  ;;  %v5500_v45 = vadd.f32 %v5499_v62, %v9210_v35 }
 0x5a2   : > { %v5558_v53 = vadd.f32 %v5500_v45, %v9117_v30  ;;  %5538 = vmatmul.bf16.gmra.mxu0 %v5389_v18 }
 0x5a4   : > { %5590 = vst [vmem:[%s9215_s19 + $0x70] sm:$0xff] %v5558_v53 }
 0x5a7   : > { %v5501_v20 = vpop.f32.mrf.mxu0 }
 0x5a8   : > { %v5502_v60 = vadd.f32 %v5501_v20, %v9210_v35 }
 0x5aa   : > { %v5559_v48 = vadd.f32 %v5502_v60, %v9120_v15 }
 0x5ac   : > { %5591 = vst [vmem:[%s9215_s19 + $0x78] sm:$0xff] %v5559_v48 }
 0x5af   : > { %v5504_v1 = vpop.f32.mrf.mxu0 }
 0x5b0   : > { %v5505_v39 = vadd.f32 %v5504_v1, %v9210_v35 }
 0x5b2   : > { %v5560_v43 = vadd.f32 %v5505_v39, %v9125_v52 }
 0x5b4   : > { %5592 = vst [vmem:[%s9215_s19 + $0x80] sm:$0xff] %v5560_v43 }
 0x5b7   : > { %v5506_v19 = vpop.f32.mrf.mxu0 }
 0x5b8   : > { %v5507_v30 = vadd.f32 %v5506_v19, %v9210_v35 }
 0x5ba   : > { %v5561_v51 = vadd.f32 %v5507_v30, %v9128_v55 }
 0x5bc   : > { %5593 = vst [vmem:[%s9215_s19 + $0x88] sm:$0xff] %v5561_v51 }
 0x5bf   : > { %v5509_v26 = vpop.f32.mrf.mxu0 }
 0x5c0   : > { %v5510_v34 = vadd.f32 %v5509_v26, %v9210_v35 }
 0x5c2   : > { %v5562_v15 = vadd.f32 %v5510_v34, %v9137_v28 }
 0x5c4   : > { %5594 = vst [vmem:[%s9215_s19 + $0x90] sm:$0xff] %v5562_v15 }
 0x5c7   : > { %v5511_v41 = vpop.f32.mrf.mxu0 }
 0x5c8   : > { %v5512_v5 = vadd.f32 %v5511_v41, %v9210_v35 }
 0x5ca   : > { %v5563_v52 = vadd.f32 %v5512_v5, %v9140_v44 }
 0x5cc   : > { %5595 = vst [vmem:[%s9215_s19 + $0x98] sm:$0xff] %v5563_v52 }
 0x5cf   : > { %v5514_v16 = vpop.f32.mrf.mxu0 }
 0x5d0   : > { %v5515_v0 = vadd.f32 %v5514_v16, %v9210_v35 }
 0x5d2   : > { %v5564_v55 = vadd.f32 %v5515_v0, %v9147_v38 }
 0x5d4   : > { %5596 = vst [vmem:[%s9215_s19 + $0xa0] sm:$0xff] %v5564_v55 }
 0x5d7   : > { %v5516_v42 = vpop.f32.mrf.mxu0 }
 0x5d8   : > { %v5517_v57 = vadd.f32 %v5516_v42, %v9210_v35 }
 0x5da   : > { %v5565_v28 = vadd.f32 %v5517_v57, %v9150_v29 }
 0x5dc   : > { %5597 = vst [vmem:[%s9215_s19 + $0xa8] sm:$0xff] %v5565_v28 }
 0x5df   : > { %v5519_v40 = vpop.f32.mrf.mxu0 }
 0x5e0   : > { %v5520_v17 = vadd.f32 %v5519_v40, %v9210_v35 }
 0x5e2   : > { %v5566_v44 = vadd.f32 %v5520_v17, %v9157_v54 }
 0x5e4   : > { %5598 = vst [vmem:[%s9215_s19 + $0xb0] sm:$0xff] %v5566_v44 }
 0x5e7   : > { %v5521_v12 = vpop.f32.mrf.mxu0 }
 0x5e8   : > { %v5522_v33 = vadd.f32 %v5521_v12, %v9210_v35 }
 0x5ea   : > { %v5567_v38 = vadd.f32 %v5522_v33, %v9160_v32 }
 0x5ec   : > { %5599 = vst [vmem:[%s9215_s19 + $0xb8] sm:$0xff] %v5567_v38 }
 0x5ef   : > { %v5524_v10 = vpop.f32.mrf.mxu0 }
 0x5f0   : > { %v5525_v49 = vadd.f32 %v5524_v10, %v9210_v35 }
 0x5f2   : > { %v5568_v29 = vadd.f32 %v5525_v49, %v9167_v46 }
 0x5f4   : > { %5600 = vst [vmem:[%s9215_s19 + $0xc0] sm:$0xff] %v5568_v29 }
 0x5f7   : > { %v5526_v61 = vpop.f32.mrf.mxu0 }
 0x5f8   : > { %v5527_v9 = vadd.f32 %v5526_v61, %v9210_v35 }
 0x5fa   : > { %v5569_v54 = vadd.f32 %v5527_v9, %v9170_v11 }
 0x5fc   : > { %5601 = vst [vmem:[%s9215_s19 + $0xc8] sm:$0xff] %v5569_v54 }
 0x5ff   : > { %v5529_v63 = vpop.f32.mrf.mxu0 }
 0x600   : > { %v5530_v58 = vadd.f32 %v5529_v63, %v9210_v35 }
 0x602   : > { %v5570_v32 = vadd.f32 %v5530_v58, %v9177_v22 }
 0x604   : > { %5602 = vst [vmem:[%s9215_s19 + $0xd0] sm:$0xff] %v5570_v32 }
 0x607   : > { %v5531_v31 = vpop.f32.mrf.mxu0 }
 0x608   : > { %v5532_v50 = vadd.f32 %v5531_v31, %v9210_v35 }
 0x60a   : > { %v5571_v46 = vadd.f32 %v5532_v50, %v9180_v6 }
 0x60c   : > { %5603 = vst [vmem:[%s9215_s19 + $0xd8] sm:$0xff] %v5571_v46 }
 0x60f   : > { %v5534_v2 = vpop.f32.mrf.mxu0 }
 0x610   : > { %v5535_v11 = vadd.f32 %v5534_v2, %v9210_v35 }
 0x612   : > { %v5572_v47 = vadd.f32 %v5535_v11, %v9187_v7 }
 0x614   : > { %5604 = vst [vmem:[%s9215_s19 + $0xe0] sm:$0xff] %v5572_v47 }
 0x617   : > { %v5536_v36 = vpop.f32.mrf.mxu0 }
 0x618   : > { %v5537_v13 = vadd.f32 %v5536_v36, %v9210_v35 }
 0x61a   : > { %v5573_v22 = vadd.f32 %v5537_v13, %v9190_v14 }
 0x61c   : > { %5605 = vst [vmem:[%s9215_s19 + $0xe8] sm:$0xff] %v5573_v22 }
 0x61f   : > { %v5539_v23 = vpop.f32.mrf.mxu0 }
 0x620   : > { %v5540_v27 = vadd.f32 %v5539_v23, %v9210_v35 }
 0x622   : > { %v5574_v6 = vadd.f32 %v5540_v27, %v9197_v56 }
 0x624   : > { %5606 = vst [vmem:[%s9215_s19 + $0xf0] sm:$0xff] %v5574_v6 }
 0x627   : > { %v5541_v7 = vpop.f32.mrf.mxu0 }
 0x628   : > { %v5542_v3 = vadd.f32 %v5541_v7, %v9210_v35 }
 0x62a   : > { %v5575_v14 = vadd.f32 %v5542_v3, %v9200_v37 }
 0x62c   : > { %5607 = vst [vmem:[%s9215_s19 + $0xf8] sm:$0xff] %v5575_v14 }
 0x62d   : > { %6706 = shalt.err (!%p6703_p9)
}
 0x62e   : > { %s6768_s13 = smov 128   ;;  %s6769_s19 = smov 8  }
 0x62f   : > { %6417 = dma.vmem_to_hbm [thread:$0]  (%p6911_p13), %s5622_s23, 4096, %s5624_s22, %s5609_s1, %s6768_s13, %s6768_s13, %s6769_s19  }
 0x630 PF: > { %s5638_s11 = sand.u32 1, %s6745_s24   ;;  %p10057_p10 = scmp.ge.s32.totalorder %s6757_s27, 2 }
 0x631   : > { %s5639_s16 = scalar_lea.sflag [#allocation4], %s5638_s11 }
 0x632   : > { %p6440_p11 = pnand %p10057_p10, %p6916_p4 }
 0x634   : > { %p6441_p0 = pneg %p6440_p11 }
 0x636   : > { %6740 = dma.done.wait (%p6441_p0), %s5639_s16, 4096  }
 0x637   : > { %6742 = vsyncadd (%p6441_p0), %s5639_s16, 4294963200  ;;  %p23_p2 = scmp.ge.s32.totalorder %s6891_s20, 4   ;;  %s10058_s24 = smov %s6749_s25 }
 0x638   : > { %s10059_s25 = smov %s6753_s26  ;;  %s10060_s26 = smov %s6903_s29 }
 0x639   : > { %s10061_s27 = smov %s6891_s20  ;;  %25 = sbr.rel (!%p23_p2) target bundleno = 10 (0xa), region = 113 }
 0x63e   :  { %5645 = vsyncpa [#allocation3], 1 }
 0x63f   :  { %5647 = vsyncpa [#allocation3 + $0x1], 1 }
 0x640   :  { %5648 = vsyncpa [#allocation6], 1 }
 0x641   :  { %5649 = vsyncpa [#allocation9], 1 }
 0x642   :  { %5650 = vsyncpa [#allocation12], 1 }
 0x643   :  { %5651 = vsyncpa [#allocation4], 1 }
 0x644   :  { %5653 = vsyncpa [#allocation4 + $0x1], 1 }

</bundles_post_ra>
